<compile_context>
chip_gen: v5e
topology: v5e:2x2
jax: 0.10.0
libtpu: 0.0.40
codegen_flags: <defaults>
</compile_context>

<pallas_src>
import jax
import jax.numpy as jnp
from jax.experimental import pallas as pl
from jax.experimental.pallas import tpu as pltpu


# ----------------------------------------------------------------------------
# Model constants (Tacotron2 __init__: idim=166 phones, odim=80 mel bins;
# hidden width scaled from 512 to 128 for the demo).
# ----------------------------------------------------------------------------
IDIM = 166          # phone vocabulary size
ODIM = 80           # mel bins
ODIM_PAD = 128      # lane-dense (padded) mel output width
EDIM = 128          # encoder / embedding channels (512 in the real model)
KSIZE = 5           # encoder conv kernel size
PAD = (KSIZE - 1) // 2
NLAYERS = 3         # encoder conv layers
SPK_DIMS = (192, 512, 256)   # ecapa / xvector / dvector embedding sizes

TILE = 128          # output frames per grid step (multiple of 128 -> lane-dense
                    # transposed mel blocks).  For the real EDIM=512 model keep
                    # TILE <= 256 on v7x (64 MiB VMEM) and ~128 on v5e.
HALO = 8            # per-side halo rows (sublane aligned); must cover the
                    # receptive-field growth of the whole conv stack.
L_EXT = TILE + 2 * HALO

# Correctness guards (see review): halo must cover NLAYERS*PAD so that the
# zero-filled tap shifts / clamped neighbour blocks never contaminate the
# emitted TILE rows, and tile sizes must keep stores lane/sublane dense.
assert HALO % 8 == 0 and HALO >= NLAYERS * PAD
assert TILE % 128 == 0 and EDIM % 128 == 0 and ODIM_PAD % 128 == 0


# ----------------------------------------------------------------------------
# Fused Pallas kernel: one time tile of (conv1d+ReLU) x NLAYERS + mel projection
# ----------------------------------------------------------------------------
def fused_encoder_mel_kernel(t_ref, xm1_ref, x0_ref, xp1_ref,
                             wconv_ref, bconv_ref, pwt_ref, pbt_ref, o_ref):
    """t_ref:      SMEM (1,) int32              valid sequence length T
    xm1/x0/xp1:    [TILE, EDIM] f32             prev / current / next time blocks
                                                (prev/next clamped at the ends;
                                                out-of-range halo rows masked)
    wconv_ref:     [NLAYERS*KSIZE, EDIM, EDIM]  bf16 per-tap conv weights
    bconv_ref:     [NLAYERS, 1, EDIM] f32
    pwt_ref:       [ODIM_PAD, EDIM] bf16        transposed mel projection (80->128)
    pbt_ref:       [ODIM_PAD, 1] f32
    o_ref:         [ODIM_PAD, TILE] f32         mel block, already transposed
    """
    i = pl.program_id(0)

    # Global frame index of every extended row; rows outside [0, T) are the
    # conv 'same' zero padding and must stay exactly zero between layers.
    row = jax.lax.broadcasted_iota(jnp.int32, (L_EXT, EDIM), 0)
    grow = i * TILE - HALO + row
    valid = (grow >= 0) & (grow < t_ref[0])

    # Assemble the (TILE + 2*HALO)-row extended block (sublane-aligned concat).
    x = jnp.concatenate(
        [xm1_ref[TILE - HALO:, :], x0_ref[...], xp1_ref[:HALO, :]], axis=0)
    x = jnp.where(valid, x, 0.0)

    def shift_rows(a, off):
        # result[e] = a[e + off]; zero fill at the block ends (only reaches rows
        # that the HALO >= NLAYERS*PAD recomputation margin discards).
        if off == 0:
            return a
        fill = jnp.zeros((abs(off), EDIM), a.dtype)
        if off > 0:
            return jnp.concatenate([a[off:], fill], axis=0)
        return jnp.concatenate([fill, a[:off]], axis=0)

    for layer in range(NLAYERS):
        # K per-tap bf16 MXU matmuls accumulated in f32 (no im2col slab).
        acc = jnp.zeros((L_EXT, EDIM), jnp.float32)
        for k in range(KSIZE):
            tap = shift_rows(x, k - PAD).astype(jnp.bfloat16)
            acc = acc + jnp.dot(tap, wconv_ref[layer * KSIZE + k],
                                preferred_element_type=jnp.float32)
        # TODO(synk): Tacotron2 encoder BatchNorm affine should be folded into
        # wconv/bconv when real weights are loaded.
        y = jnp.maximum(acc + bconv_ref[layer], 0.0)
        if layer < NLAYERS - 1:
            # Re-zero padding rows so the next conv sees exact 'same' padding.
            # Skipped on the last layer: no further time mixing and invalid
            # frames are sliced off in the wrapper.
            y = jnp.where(valid, y, 0.0)
        x = y

    # Mel projection, emitted transposed: [ODIM_PAD, TILE] lane-dense store.
    xm = x[HALO:HALO + TILE, :]                       # aligned static slice
    out = jnp.dot(pwt_ref[...], xm.T.astype(jnp.bfloat16),
                  preferred_element_type=jnp.float32)
    o_ref[...] = (out + pbt_ref[...]).astype(o_ref.dtype)


def encoder_and_mel(x_emb, conv_w, conv_b, proj_w, proj_b):
    """x_emb: [T, EDIM] f32 phone embeddings -> mel [ODIM, T] f32 (transposed)."""
    T = x_emb.shape[0]
    n_tiles = pl.cdiv(T, TILE)
    t_pad = n_tiles * TILE
    # TODO(synk): in serving, bucket t_pad to a few lengths so a new T only
    # changes the SMEM scalar below, not the compiled grid.
    x_pad = jnp.zeros((t_pad, EDIM), jnp.float32).at[:T].set(x_emb)

    # One-time weight prep (constant-foldable under jit): per-tap bf16 conv
    # weights, transposed + lane-padded mel projection.
    wconv = conv_w.reshape(NLAYERS * KSIZE, EDIM, EDIM).astype(jnp.bfloat16)
    bconv = conv_b.reshape(NLAYERS, 1, EDIM).astype(jnp.float32)
    pwt = jnp.zeros((ODIM_PAD, EDIM), jnp.bfloat16).at[:ODIM, :].set(
        proj_w.T.astype(jnp.bfloat16))
    pbt = jnp.zeros((ODIM_PAD, 1), jnp.float32).at[:ODIM, 0].set(
        proj_b.astype(jnp.float32))
    t_valid = jnp.array([T], jnp.int32)

    grid_spec = pltpu.PrefetchScalarGridSpec(
        num_scalar_prefetch=1,
        grid=(n_tiles,),
        in_specs=[
            # prev / cur / next time blocks (clamped at the sequence ends; the
            # kernel masks the out-of-range halo rows to zero)
            pl.BlockSpec((TILE, EDIM), lambda i, t: (jnp.maximum(i - 1, 0), 0)),
            pl.BlockSpec((TILE, EDIM), lambda i, t: (i, 0)),
            pl.BlockSpec((TILE, EDIM),
                         lambda i, t: (jnp.minimum(i + 1, n_tiles - 1), 0)),
            # weights: constant index maps -> fetched once, stay VMEM-resident
            pl.BlockSpec((NLAYERS * KSIZE, EDIM, EDIM), lambda i, t: (0, 0, 0)),
            pl.BlockSpec((NLAYERS, 1, EDIM), lambda i, t: (0, 0, 0)),
            pl.BlockSpec((ODIM_PAD, EDIM), lambda i, t: (0, 0)),
            pl.BlockSpec((ODIM_PAD, 1), lambda i, t: (0, 0)),
        ],
        out_specs=pl.BlockSpec((ODIM_PAD, TILE), lambda i, t: (0, i)),
    )

    out = pl.pallas_call(
        fused_encoder_mel_kernel,
        out_shape=jax.ShapeDtypeStruct((ODIM_PAD, t_pad), jnp.float32),
        grid_spec=grid_spec,
        compiler_params=pltpu.CompilerParams(
            # independent time tiles -> megacore-shardable on v7x
            dimension_semantics=("parallel",),
            # explicit budget (demo usage ~3 MiB); safe on v5e/v6e/v7x
            vmem_limit_bytes=32 * 1024 * 1024),
    )(t_valid, x_pad, x_pad, x_pad, wconv, bconv, pwt, pbt)

    return out[:ODIM, :T]          # [ODIM, T] - already the module's layout


# ----------------------------------------------------------------------------
# Deterministic synthetic parameters + module-level forward
# ----------------------------------------------------------------------------
def init_params(key):
    ks = jax.random.split(key, 5)
    return {
        "embed": 0.3 * jax.random.normal(ks[0], (IDIM, EDIM), jnp.float32),
        "conv_w": 0.06 * jax.random.normal(
            ks[1], (NLAYERS, KSIZE, EDIM, EDIM), jnp.float32),
        "conv_b": 0.05 * jax.random.normal(ks[2], (NLAYERS, EDIM), jnp.float32),
        "proj_w": 0.1 * jax.random.normal(ks[3], (EDIM, ODIM), jnp.float32),
        "proj_b": 0.05 * jax.random.normal(ks[4], (ODIM,), jnp.float32),
    }


@jax.jit
def aridialect_text2mel_forward(params, phones, wav):
    """Mirror of `aridialect_text2mel.forward`.

    phones: [T] int32 phone ids (stand-in for TextFrontend.string_to_tensor)
    wav:    [1, S] f32 waveform (stand-in for torchaudio.load)
    returns mel: [ODIM, T]  (Tacotron2 output transposed, as in the module)
    """
    # --- speaker embedding branch -------------------------------------------
    # TODO(synk): speechbrain ECAPA / x-vector encoders and the jit-loaded
    # d-vector network cannot be reproduced here; deterministic wav stats stand
    # in.  With spk_embed_dim=None Tacotron2 ignores this embedding anyway.
    stats = jnp.array([jnp.mean(wav), jnp.std(wav), jnp.max(wav)])
    spembs = [jnp.broadcast_to(stats[i], (d,)) for i, d in enumerate(SPK_DIMS)]
    combined_spemb = jnp.concatenate(spembs, axis=0)        # [960], unused
    del combined_spemb

    # --- phone2mel (Tacotron2 core, fused Pallas hot path) -------------------
    # TODO(synk): fuse this gather into the kernel (scalar-prefetched phone ids
    # + in-kernel row gather) to drop the [T, EDIM] HBM round-trip.
    x = jnp.take(params["embed"], phones, axis=0)           # [T, EDIM]
    # TODO(synk): the autoregressive LSTM-attention decoder + postnet is
    # replaced by a per-frame linear projection (reduction_factor=1).
    return encoder_and_mel(x, params["conv_w"], params["conv_b"],
                           params["proj_w"], params["proj_b"])   # [ODIM, T]


def reference_text2mel(params, phones):
    """Pure-JAX reference with the same bf16-input / f32-accumulate numerics."""
    x = jnp.take(params["embed"], phones, axis=0)
    T = x.shape[0]
    for layer in range(NLAYERS):
        xp = jnp.pad(x, ((PAD, PAD), (0, 0)))
        acc = jnp.zeros((T, EDIM), jnp.float32)
        for k in range(KSIZE):
            acc = acc + jnp.dot(
                xp[k:k + T].astype(jnp.bfloat16),
                params["conv_w"][layer, k].astype(jnp.bfloat16),
                preferred_element_type=jnp.float32)
        x = jnp.maximum(acc + params["conv_b"][layer][None, :], 0.0)
    mel = jnp.dot(x.astype(jnp.bfloat16),
                  params["proj_w"].astype(jnp.bfloat16),
                  preferred_element_type=jnp.float32) + params["proj_b"][None, :]
    return mel.T


if __name__ == "__main__":
    key = jax.random.PRNGKey(0)
    kp, kph, kwav = jax.random.split(key, 3)

    params = init_params(kp)
    T = 200                       # spans two time tiles (tests halo + masking)
    phones = jax.random.randint(kph, (T,), 0, IDIM, dtype=jnp.int32)
    wav = jax.random.normal(kwav, (1, 1024), jnp.float32)

    mel = aridialect_text2mel_forward(params, phones, wav)
    mel = jax.block_until_ready(mel)

    assert mel.shape == (ODIM, T), mel.shape
    assert mel.dtype == jnp.float32
    assert bool(jnp.all(jnp.isfinite(mel)))

    ref = reference_text2mel(params, phones)
    err = float(jnp.max(jnp.abs(mel - ref)))
    assert err < 5e-3, f"max abs error vs reference: {err}"
    print("KERNEL_OK")
</pallas_src>

<mosaic_0001>
module attributes {stable_mosaic.version = 11 : i64} {
  func.func @fused_encoder_mel_kernel(%arg0: i32, %arg1: memref<1xi32, #tpu.memory_space<smem>>, %arg2: memref<128x128xf32, #tpu.memory_space<vmem>>, %arg3: memref<128x128xf32, #tpu.memory_space<vmem>>, %arg4: memref<128x128xf32, #tpu.memory_space<vmem>>, %arg5: memref<15x128x128xbf16, #tpu.memory_space<vmem>>, %arg6: memref<3x1x128xf32, #tpu.memory_space<vmem>>, %arg7: memref<128x128xbf16, #tpu.memory_space<vmem>>, %arg8: memref<128x1xf32, #tpu.memory_space<vmem>>, %arg9: memref<128x128xf32, #tpu.memory_space<vmem>>) attributes {dimension_semantics = [#tpu.dimension_semantics<parallel>], iteration_bounds = array<i64: 2>, scalar_prefetch = 1 : i64, scratch_operands = 0 : i64, tpu.core_type = #tpu.core_type<tc>, window_params = [{transform_indices = @transform_0, window_bounds = array<i64: 128, 128>}, {transform_indices = @transform_1, window_bounds = array<i64: 128, 128>}, {transform_indices = @transform_2, window_bounds = array<i64: 128, 128>}, {pipeline_mode = #tpu.pipeline_mode<synchronous>, transform_indices = @transform_3, window_bounds = array<i64: 15, 128, 128>}, {pipeline_mode = #tpu.pipeline_mode<synchronous>, transform_indices = @transform_4, window_bounds = array<i64: 3, 1, 128>}, {pipeline_mode = #tpu.pipeline_mode<synchronous>, transform_indices = @transform_5, window_bounds = array<i64: 128, 128>}, {pipeline_mode = #tpu.pipeline_mode<synchronous>, transform_indices = @transform_6, window_bounds = array<i64: 128, 1>}, {transform_indices = @transform_7, window_bounds = array<i64: 128, 128>}]} {
    %0 = tpu.iota {dimensions = array<i32: 0>} : vector<144x128xi32>
    %c128_i32 = arith.constant 128 : i32
    %1 = arith.muli %arg0, %c128_i32 : i32
    %c8_i32 = arith.constant 8 : i32
    %2 = arith.subi %1, %c8_i32 : i32
    %3 = vector.broadcast %2 : i32 to vector<144x128xi32>
    %4 = arith.addi %3, %0 : vector<144x128xi32>
    %c0_i32 = arith.constant 0 : i32
    %5 = vector.broadcast %c0_i32 : i32 to vector<144x128xi32>
    %6 = arith.cmpi sge, %4, %5 : vector<144x128xi32>
    %c0 = arith.constant 0 : index
    %7 = memref.load %arg1[%c0] : memref<1xi32, #tpu.memory_space<smem>>
    %8 = vector.broadcast %7 : i32 to vector<144x128xi32>
    %9 = arith.cmpi slt, %4, %8 : vector<144x128xi32>
    %10 = arith.andi %6, %9 : vector<144x128xi1>
    %c120 = arith.constant 120 : index
    %c0_0 = arith.constant 0 : index
    %11 = vector.load %arg2[%c120, %c0_0] : memref<128x128xf32, #tpu.memory_space<vmem>>, vector<8x128xf32>
    %c0_1 = arith.constant 0 : index
    %c0_2 = arith.constant 0 : index
    %12 = vector.load %arg3[%c0_1, %c0_2] : memref<128x128xf32, #tpu.memory_space<vmem>>, vector<128x128xf32>
    %c0_3 = arith.constant 0 : index
    %c0_4 = arith.constant 0 : index
    %13 = vector.load %arg4[%c0_3, %c0_4] : memref<128x128xf32, #tpu.memory_space<vmem>>, vector<8x128xf32>
    %14 = tpu.concatenate %11, %12, %13 in 0 : vector<8x128xf32>, vector<128x128xf32>, vector<8x128xf32> -> vector<144x128xf32>
    %cst = arith.constant 0.000000e+00 : f32
    %15 = vector.broadcast %cst : f32 to vector<144x128xf32>
    %16 = arith.select %10, %14, %15 : vector<144x128xi1>, vector<144x128xf32>
    %cst_5 = arith.constant 0.000000e+00 : f32
    %17 = vector.broadcast %cst_5 : f32 to vector<144x128xf32>
    %cst_6 = arith.constant 0.000000e+00 : f32
    %18 = vector.broadcast %cst_6 : f32 to vector<2x128xf32>
    %19 = vector.extract_strided_slice %16 {offsets = [0, 0], sizes = [142, 128], strides = [1, 1]} : vector<144x128xf32> to vector<142x128xf32>
    %20 = tpu.concatenate %18, %19 in 0 : vector<2x128xf32>, vector<142x128xf32> -> vector<144x128xf32>
    %21 = arith.truncf %20 : vector<144x128xf32> to vector<144x128xbf16>
    %c0_7 = arith.constant 0 : index
    %c0_8 = arith.constant 0 : index
    %c0_9 = arith.constant 0 : index
    %22 = vector.load %arg5[%c0_7, %c0_8, %c0_9] : memref<15x128x128xbf16, #tpu.memory_space<vmem>>, vector<1x128x128xbf16>
    %23 = vector.shape_cast %22 : vector<1x128x128xbf16> to vector<128x128xbf16>
    %cst_10 = arith.constant dense<0.000000e+00> : vector<144x128xf32>
    %24 = tpu.matmul %21, %23, %cst_10 {dimension_numbers = #tpu.dot_dimension_numbers<[1], [0], [0], [1], [0, 0, 1, 1], [], []>} : vector<144x128xbf16>, vector<128x128xbf16>, vector<144x128xf32> -> vector<144x128xf32>
    %25 = arith.addf %17, %24 : vector<144x128xf32>
    %cst_11 = arith.constant 0.000000e+00 : f32
    %26 = vector.broadcast %cst_11 : f32 to vector<1x128xf32>
    %27 = vector.extract_strided_slice %16 {offsets = [0, 0], sizes = [143, 128], strides = [1, 1]} : vector<144x128xf32> to vector<143x128xf32>
    %28 = tpu.concatenate %26, %27 in 0 : vector<1x128xf32>, vector<143x128xf32> -> vector<144x128xf32>
    %29 = arith.truncf %28 : vector<144x128xf32> to vector<144x128xbf16>
    %c1 = arith.constant 1 : index
    %c0_12 = arith.constant 0 : index
    %c0_13 = arith.constant 0 : index
    %30 = vector.load %arg5[%c1, %c0_12, %c0_13] : memref<15x128x128xbf16, #tpu.memory_space<vmem>>, vector<1x128x128xbf16>
    %31 = vector.shape_cast %30 : vector<1x128x128xbf16> to vector<128x128xbf16>
    %cst_14 = arith.constant dense<0.000000e+00> : vector<144x128xf32>
    %32 = tpu.matmul %29, %31, %cst_14 {dimension_numbers = #tpu.dot_dimension_numbers<[1], [0], [0], [1], [0, 0, 1, 1], [], []>} : vector<144x128xbf16>, vector<128x128xbf16>, vector<144x128xf32> -> vector<144x128xf32>
    %33 = arith.addf %25, %32 : vector<144x128xf32>
    %34 = arith.truncf %16 : vector<144x128xf32> to vector<144x128xbf16>
    %c2 = arith.constant 2 : index
    %c0_15 = arith.constant 0 : index
    %c0_16 = arith.constant 0 : index
    %35 = vector.load %arg5[%c2, %c0_15, %c0_16] : memref<15x128x128xbf16, #tpu.memory_space<vmem>>, vector<1x128x128xbf16>
    %36 = vector.shape_cast %35 : vector<1x128x128xbf16> to vector<128x128xbf16>
    %cst_17 = arith.constant dense<0.000000e+00> : vector<144x128xf32>
    %37 = tpu.matmul %34, %36, %cst_17 {dimension_numbers = #tpu.dot_dimension_numbers<[1], [0], [0], [1], [0, 0, 1, 1], [], []>} : vector<144x128xbf16>, vector<128x128xbf16>, vector<144x128xf32> -> vector<144x128xf32>
    %38 = arith.addf %33, %37 : vector<144x128xf32>
    %cst_18 = arith.constant 0.000000e+00 : f32
    %39 = vector.broadcast %cst_18 : f32 to vector<1x128xf32>
    %40 = vector.extract_strided_slice %16 {offsets = [1, 0], sizes = [143, 128], strides = [1, 1]} : vector<144x128xf32> to vector<143x128xf32>
    %41 = tpu.concatenate %40, %39 in 0 : vector<143x128xf32>, vector<1x128xf32> -> vector<144x128xf32>
    %42 = arith.truncf %41 : vector<144x128xf32> to vector<144x128xbf16>
    %c3 = arith.constant 3 : index
    %c0_19 = arith.constant 0 : index
    %c0_20 = arith.constant 0 : index
    %43 = vector.load %arg5[%c3, %c0_19, %c0_20] : memref<15x128x128xbf16, #tpu.memory_space<vmem>>, vector<1x128x128xbf16>
    %44 = vector.shape_cast %43 : vector<1x128x128xbf16> to vector<128x128xbf16>
    %cst_21 = arith.constant dense<0.000000e+00> : vector<144x128xf32>
    %45 = tpu.matmul %42, %44, %cst_21 {dimension_numbers = #tpu.dot_dimension_numbers<[1], [0], [0], [1], [0, 0, 1, 1], [], []>} : vector<144x128xbf16>, vector<128x128xbf16>, vector<144x128xf32> -> vector<144x128xf32>
    %46 = arith.addf %38, %45 : vector<144x128xf32>
    %cst_22 = arith.constant 0.000000e+00 : f32
    %47 = vector.broadcast %cst_22 : f32 to vector<2x128xf32>
    %48 = vector.extract_strided_slice %16 {offsets = [2, 0], sizes = [142, 128], strides = [1, 1]} : vector<144x128xf32> to vector<142x128xf32>
    %49 = tpu.concatenate %48, %47 in 0 : vector<142x128xf32>, vector<2x128xf32> -> vector<144x128xf32>
    %50 = arith.truncf %49 : vector<144x128xf32> to vector<144x128xbf16>
    %c4 = arith.constant 4 : index
    %c0_23 = arith.constant 0 : index
    %c0_24 = arith.constant 0 : index
    %51 = vector.load %arg5[%c4, %c0_23, %c0_24] : memref<15x128x128xbf16, #tpu.memory_space<vmem>>, vector<1x128x128xbf16>
    %52 = vector.shape_cast %51 : vector<1x128x128xbf16> to vector<128x128xbf16>
    %cst_25 = arith.constant dense<0.000000e+00> : vector<144x128xf32>
    %53 = tpu.matmul %50, %52, %cst_25 {dimension_numbers = #tpu.dot_dimension_numbers<[1], [0], [0], [1], [0, 0, 1, 1], [], []>} : vector<144x128xbf16>, vector<128x128xbf16>, vector<144x128xf32> -> vector<144x128xf32>
    %54 = arith.addf %46, %53 : vector<144x128xf32>
    %c0_26 = arith.constant 0 : index
    %c0_27 = arith.constant 0 : index
    %c0_28 = arith.constant 0 : index
    %55 = vector.load %arg6[%c0_26, %c0_27, %c0_28] : memref<3x1x128xf32, #tpu.memory_space<vmem>>, vector<1x1x128xf32>
    %56 = vector.shape_cast %55 : vector<1x1x128xf32> to vector<1x128xf32>
    %57 = vector.broadcast %56 : vector<1x128xf32> to vector<144x128xf32>
    %58 = arith.addf %54, %57 : vector<144x128xf32>
    %cst_29 = arith.constant 0.000000e+00 : f32
    %59 = vector.broadcast %cst_29 : f32 to vector<144x128xf32>
    %60 = arith.maximumf %58, %59 : vector<144x128xf32>
    %cst_30 = arith.constant 0.000000e+00 : f32
    %61 = vector.broadcast %cst_30 : f32 to vector<144x128xf32>
    %62 = arith.select %10, %60, %61 : vector<144x128xi1>, vector<144x128xf32>
    %cst_31 = arith.constant 0.000000e+00 : f32
    %63 = vector.broadcast %cst_31 : f32 to vector<144x128xf32>
    %cst_32 = arith.constant 0.000000e+00 : f32
    %64 = vector.broadcast %cst_32 : f32 to vector<2x128xf32>
    %65 = vector.extract_strided_slice %62 {offsets = [0, 0], sizes = [142, 128], strides = [1, 1]} : vector<144x128xf32> to vector<142x128xf32>
    %66 = tpu.concatenate %64, %65 in 0 : vector<2x128xf32>, vector<142x128xf32> -> vector<144x128xf32>
    %67 = arith.truncf %66 : vector<144x128xf32> to vector<144x128xbf16>
    %c5 = arith.constant 5 : index
    %c0_33 = arith.constant 0 : index
    %c0_34 = arith.constant 0 : index
    %68 = vector.load %arg5[%c5, %c0_33, %c0_34] : memref<15x128x128xbf16, #tpu.memory_space<vmem>>, vector<1x128x128xbf16>
    %69 = vector.shape_cast %68 : vector<1x128x128xbf16> to vector<128x128xbf16>
    %cst_35 = arith.constant dense<0.000000e+00> : vector<144x128xf32>
    %70 = tpu.matmul %67, %69, %cst_35 {dimension_numbers = #tpu.dot_dimension_numbers<[1], [0], [0], [1], [0, 0, 1, 1], [], []>} : vector<144x128xbf16>, vector<128x128xbf16>, vector<144x128xf32> -> vector<144x128xf32>
    %71 = arith.addf %63, %70 : vector<144x128xf32>
    %cst_36 = arith.constant 0.000000e+00 : f32
    %72 = vector.broadcast %cst_36 : f32 to vector<1x128xf32>
    %73 = vector.extract_strided_slice %62 {offsets = [0, 0], sizes = [143, 128], strides = [1, 1]} : vector<144x128xf32> to vector<143x128xf32>
    %74 = tpu.concatenate %72, %73 in 0 : vector<1x128xf32>, vector<143x128xf32> -> vector<144x128xf32>
    %75 = arith.truncf %74 : vector<144x128xf32> to vector<144x128xbf16>
    %c6 = arith.constant 6 : index
    %c0_37 = arith.constant 0 : index
    %c0_38 = arith.constant 0 : index
    %76 = vector.load %arg5[%c6, %c0_37, %c0_38] : memref<15x128x128xbf16, #tpu.memory_space<vmem>>, vector<1x128x128xbf16>
    %77 = vector.shape_cast %76 : vector<1x128x128xbf16> to vector<128x128xbf16>
    %cst_39 = arith.constant dense<0.000000e+00> : vector<144x128xf32>
    %78 = tpu.matmul %75, %77, %cst_39 {dimension_numbers = #tpu.dot_dimension_numbers<[1], [0], [0], [1], [0, 0, 1, 1], [], []>} : vector<144x128xbf16>, vector<128x128xbf16>, vector<144x128xf32> -> vector<144x128xf32>
    %79 = arith.addf %71, %78 : vector<144x128xf32>
    %80 = arith.truncf %62 : vector<144x128xf32> to vector<144x128xbf16>
    %c7 = arith.constant 7 : index
    %c0_40 = arith.constant 0 : index
    %c0_41 = arith.constant 0 : index
    %81 = vector.load %arg5[%c7, %c0_40, %c0_41] : memref<15x128x128xbf16, #tpu.memory_space<vmem>>, vector<1x128x128xbf16>
    %82 = vector.shape_cast %81 : vector<1x128x128xbf16> to vector<128x128xbf16>
    %cst_42 = arith.constant dense<0.000000e+00> : vector<144x128xf32>
    %83 = tpu.matmul %80, %82, %cst_42 {dimension_numbers = #tpu.dot_dimension_numbers<[1], [0], [0], [1], [0, 0, 1, 1], [], []>} : vector<144x128xbf16>, vector<128x128xbf16>, vector<144x128xf32> -> vector<144x128xf32>
    %84 = arith.addf %79, %83 : vector<144x128xf32>
    %cst_43 = arith.constant 0.000000e+00 : f32
    %85 = vector.broadcast %cst_43 : f32 to vector<1x128xf32>
    %86 = vector.extract_strided_slice %62 {offsets = [1, 0], sizes = [143, 128], strides = [1, 1]} : vector<144x128xf32> to vector<143x128xf32>
    %87 = tpu.concatenate %86, %85 in 0 : vector<143x128xf32>, vector<1x128xf32> -> vector<144x128xf32>
    %88 = arith.truncf %87 : vector<144x128xf32> to vector<144x128xbf16>
    %c8 = arith.constant 8 : index
    %c0_44 = arith.constant 0 : index
    %c0_45 = arith.constant 0 : index
    %89 = vector.load %arg5[%c8, %c0_44, %c0_45] : memref<15x128x128xbf16, #tpu.memory_space<vmem>>, vector<1x128x128xbf16>
    %90 = vector.shape_cast %89 : vector<1x128x128xbf16> to vector<128x128xbf16>
    %cst_46 = arith.constant dense<0.000000e+00> : vector<144x128xf32>
    %91 = tpu.matmul %88, %90, %cst_46 {dimension_numbers = #tpu.dot_dimension_numbers<[1], [0], [0], [1], [0, 0, 1, 1], [], []>} : vector<144x128xbf16>, vector<128x128xbf16>, vector<144x128xf32> -> vector<144x128xf32>
    %92 = arith.addf %84, %91 : vector<144x128xf32>
    %cst_47 = arith.constant 0.000000e+00 : f32
    %93 = vector.broadcast %cst_47 : f32 to vector<2x128xf32>
    %94 = vector.extract_strided_slice %62 {offsets = [2, 0], sizes = [142, 128], strides = [1, 1]} : vector<144x128xf32> to vector<142x128xf32>
    %95 = tpu.concatenate %94, %93 in 0 : vector<142x128xf32>, vector<2x128xf32> -> vector<144x128xf32>
    %96 = arith.truncf %95 : vector<144x128xf32> to vector<144x128xbf16>
    %c9 = arith.constant 9 : index
    %c0_48 = arith.constant 0 : index
    %c0_49 = arith.constant 0 : index
    %97 = vector.load %arg5[%c9, %c0_48, %c0_49] : memref<15x128x128xbf16, #tpu.memory_space<vmem>>, vector<1x128x128xbf16>
    %98 = vector.shape_cast %97 : vector<1x128x128xbf16> to vector<128x128xbf16>
    %cst_50 = arith.constant dense<0.000000e+00> : vector<144x128xf32>
    %99 = tpu.matmul %96, %98, %cst_50 {dimension_numbers = #tpu.dot_dimension_numbers<[1], [0], [0], [1], [0, 0, 1, 1], [], []>} : vector<144x128xbf16>, vector<128x128xbf16>, vector<144x128xf32> -> vector<144x128xf32>
    %100 = arith.addf %92, %99 : vector<144x128xf32>
    %c1_51 = arith.constant 1 : index
    %c0_52 = arith.constant 0 : index
    %c0_53 = arith.constant 0 : index
    %101 = vector.load %arg6[%c1_51, %c0_52, %c0_53] : memref<3x1x128xf32, #tpu.memory_space<vmem>>, vector<1x1x128xf32>
    %102 = vector.shape_cast %101 : vector<1x1x128xf32> to vector<1x128xf32>
    %103 = vector.broadcast %102 : vector<1x128xf32> to vector<144x128xf32>
    %104 = arith.addf %100, %103 : vector<144x128xf32>
    %cst_54 = arith.constant 0.000000e+00 : f32
    %105 = vector.broadcast %cst_54 : f32 to vector<144x128xf32>
    %106 = arith.maximumf %104, %105 : vector<144x128xf32>
    %cst_55 = arith.constant 0.000000e+00 : f32
    %107 = vector.broadcast %cst_55 : f32 to vector<144x128xf32>
    %108 = arith.select %10, %106, %107 : vector<144x128xi1>, vector<144x128xf32>
    %cst_56 = arith.constant 0.000000e+00 : f32
    %109 = vector.broadcast %cst_56 : f32 to vector<144x128xf32>
    %cst_57 = arith.constant 0.000000e+00 : f32
    %110 = vector.broadcast %cst_57 : f32 to vector<2x128xf32>
    %111 = vector.extract_strided_slice %108 {offsets = [0, 0], sizes = [142, 128], strides = [1, 1]} : vector<144x128xf32> to vector<142x128xf32>
    %112 = tpu.concatenate %110, %111 in 0 : vector<2x128xf32>, vector<142x128xf32> -> vector<144x128xf32>
    %113 = arith.truncf %112 : vector<144x128xf32> to vector<144x128xbf16>
    %c10 = arith.constant 10 : index
    %c0_58 = arith.constant 0 : index
    %c0_59 = arith.constant 0 : index
    %114 = vector.load %arg5[%c10, %c0_58, %c0_59] : memref<15x128x128xbf16, #tpu.memory_space<vmem>>, vector<1x128x128xbf16>
    %115 = vector.shape_cast %114 : vector<1x128x128xbf16> to vector<128x128xbf16>
    %cst_60 = arith.constant dense<0.000000e+00> : vector<144x128xf32>
    %116 = tpu.matmul %113, %115, %cst_60 {dimension_numbers = #tpu.dot_dimension_numbers<[1], [0], [0], [1], [0, 0, 1, 1], [], []>} : vector<144x128xbf16>, vector<128x128xbf16>, vector<144x128xf32> -> vector<144x128xf32>
    %117 = arith.addf %109, %116 : vector<144x128xf32>
    %cst_61 = arith.constant 0.000000e+00 : f32
    %118 = vector.broadcast %cst_61 : f32 to vector<1x128xf32>
    %119 = vector.extract_strided_slice %108 {offsets = [0, 0], sizes = [143, 128], strides = [1, 1]} : vector<144x128xf32> to vector<143x128xf32>
    %120 = tpu.concatenate %118, %119 in 0 : vector<1x128xf32>, vector<143x128xf32> -> vector<144x128xf32>
    %121 = arith.truncf %120 : vector<144x128xf32> to vector<144x128xbf16>
    %c11 = arith.constant 11 : index
    %c0_62 = arith.constant 0 : index
    %c0_63 = arith.constant 0 : index
    %122 = vector.load %arg5[%c11, %c0_62, %c0_63] : memref<15x128x128xbf16, #tpu.memory_space<vmem>>, vector<1x128x128xbf16>
    %123 = vector.shape_cast %122 : vector<1x128x128xbf16> to vector<128x128xbf16>
    %cst_64 = arith.constant dense<0.000000e+00> : vector<144x128xf32>
    %124 = tpu.matmul %121, %123, %cst_64 {dimension_numbers = #tpu.dot_dimension_numbers<[1], [0], [0], [1], [0, 0, 1, 1], [], []>} : vector<144x128xbf16>, vector<128x128xbf16>, vector<144x128xf32> -> vector<144x128xf32>
    %125 = arith.addf %117, %124 : vector<144x128xf32>
    %126 = arith.truncf %108 : vector<144x128xf32> to vector<144x128xbf16>
    %c12 = arith.constant 12 : index
    %c0_65 = arith.constant 0 : index
    %c0_66 = arith.constant 0 : index
    %127 = vector.load %arg5[%c12, %c0_65, %c0_66] : memref<15x128x128xbf16, #tpu.memory_space<vmem>>, vector<1x128x128xbf16>
    %128 = vector.shape_cast %127 : vector<1x128x128xbf16> to vector<128x128xbf16>
    %cst_67 = arith.constant dense<0.000000e+00> : vector<144x128xf32>
    %129 = tpu.matmul %126, %128, %cst_67 {dimension_numbers = #tpu.dot_dimension_numbers<[1], [0], [0], [1], [0, 0, 1, 1], [], []>} : vector<144x128xbf16>, vector<128x128xbf16>, vector<144x128xf32> -> vector<144x128xf32>
    %130 = arith.addf %125, %129 : vector<144x128xf32>
    %cst_68 = arith.constant 0.000000e+00 : f32
    %131 = vector.broadcast %cst_68 : f32 to vector<1x128xf32>
    %132 = vector.extract_strided_slice %108 {offsets = [1, 0], sizes = [143, 128], strides = [1, 1]} : vector<144x128xf32> to vector<143x128xf32>
    %133 = tpu.concatenate %132, %131 in 0 : vector<143x128xf32>, vector<1x128xf32> -> vector<144x128xf32>
    %134 = arith.truncf %133 : vector<144x128xf32> to vector<144x128xbf16>
    %c13 = arith.constant 13 : index
    %c0_69 = arith.constant 0 : index
    %c0_70 = arith.constant 0 : index
    %135 = vector.load %arg5[%c13, %c0_69, %c0_70] : memref<15x128x128xbf16, #tpu.memory_space<vmem>>, vector<1x128x128xbf16>
    %136 = vector.shape_cast %135 : vector<1x128x128xbf16> to vector<128x128xbf16>
    %cst_71 = arith.constant dense<0.000000e+00> : vector<144x128xf32>
    %137 = tpu.matmul %134, %136, %cst_71 {dimension_numbers = #tpu.dot_dimension_numbers<[1], [0], [0], [1], [0, 0, 1, 1], [], []>} : vector<144x128xbf16>, vector<128x128xbf16>, vector<144x128xf32> -> vector<144x128xf32>
    %138 = arith.addf %130, %137 : vector<144x128xf32>
    %cst_72 = arith.constant 0.000000e+00 : f32
    %139 = vector.broadcast %cst_72 : f32 to vector<2x128xf32>
    %140 = vector.extract_strided_slice %108 {offsets = [2, 0], sizes = [142, 128], strides = [1, 1]} : vector<144x128xf32> to vector<142x128xf32>
    %141 = tpu.concatenate %140, %139 in 0 : vector<142x128xf32>, vector<2x128xf32> -> vector<144x128xf32>
    %142 = arith.truncf %141 : vector<144x128xf32> to vector<144x128xbf16>
    %c14 = arith.constant 14 : index
    %c0_73 = arith.constant 0 : index
    %c0_74 = arith.constant 0 : index
    %143 = vector.load %arg5[%c14, %c0_73, %c0_74] : memref<15x128x128xbf16, #tpu.memory_space<vmem>>, vector<1x128x128xbf16>
    %144 = vector.shape_cast %143 : vector<1x128x128xbf16> to vector<128x128xbf16>
    %cst_75 = arith.constant dense<0.000000e+00> : vector<144x128xf32>
    %145 = tpu.matmul %142, %144, %cst_75 {dimension_numbers = #tpu.dot_dimension_numbers<[1], [0], [0], [1], [0, 0, 1, 1], [], []>} : vector<144x128xbf16>, vector<128x128xbf16>, vector<144x128xf32> -> vector<144x128xf32>
    %146 = arith.addf %138, %145 : vector<144x128xf32>
    %c2_76 = arith.constant 2 : index
    %c0_77 = arith.constant 0 : index
    %c0_78 = arith.constant 0 : index
    %147 = vector.load %arg6[%c2_76, %c0_77, %c0_78] : memref<3x1x128xf32, #tpu.memory_space<vmem>>, vector<1x1x128xf32>
    %148 = vector.shape_cast %147 : vector<1x1x128xf32> to vector<1x128xf32>
    %149 = vector.broadcast %148 : vector<1x128xf32> to vector<144x128xf32>
    %150 = arith.addf %146, %149 : vector<144x128xf32>
    %cst_79 = arith.constant 0.000000e+00 : f32
    %151 = vector.broadcast %cst_79 : f32 to vector<144x128xf32>
    %152 = arith.maximumf %150, %151 : vector<144x128xf32>
    %153 = vector.extract_strided_slice %152 {offsets = [8, 0], sizes = [128, 128], strides = [1, 1]} : vector<144x128xf32> to vector<128x128xf32>
    %c0_80 = arith.constant 0 : index
    %c0_81 = arith.constant 0 : index
    %154 = vector.load %arg7[%c0_80, %c0_81] : memref<128x128xbf16, #tpu.memory_space<vmem>>, vector<128x128xbf16>
    %155 = tpu.transpose %153, [1, 0] : vector<128x128xf32> -> vector<128x128xf32>
    %156 = arith.truncf %155 : vector<128x128xf32> to vector<128x128xbf16>
    %cst_82 = arith.constant dense<0.000000e+00> : vector<128x128xf32>
    %157 = tpu.matmul %154, %156, %cst_82 {dimension_numbers = #tpu.dot_dimension_numbers<[1], [0], [0], [1], [0, 0, 1, 1], [], []>} : vector<128x128xbf16>, vector<128x128xbf16>, vector<128x128xf32> -> vector<128x128xf32>
    %c0_83 = arith.constant 0 : index
    %c0_84 = arith.constant 0 : index
    %158 = vector.load %arg8[%c0_83, %c0_84] : memref<128x1xf32, #tpu.memory_space<vmem>>, vector<128x1xf32>
    %159 = vector.broadcast %158 : vector<128x1xf32> to vector<128x128xf32>
    %160 = arith.addf %157, %159 : vector<128x128xf32>
    %c0_85 = arith.constant 0 : index
    %c0_86 = arith.constant 0 : index
    %161 = vector.load %arg9[%c0_85, %c0_86] : memref<128x128xf32, #tpu.memory_space<vmem>>, vector<128x128xf32>
    tpu.vector_store %arg9[%c0_85, %c0_86], %160 {strides = array<i32>} : memref<128x128xf32, #tpu.memory_space<vmem>>, vector<128x128xf32>,
    return
  }
  func.func @transform_0(%arg0: i32, %arg1: memref<1xi32, #tpu.memory_space<smem>>) -> (i32, i32) {
    %c1_i32 = arith.constant 1 : i32
    %0 = arith.subi %arg0, %c1_i32 : i32
    %c0_i32 = arith.constant 0 : i32
    %1 = arith.maxsi %0, %c0_i32 : i32
    %c0_i32_0 = arith.constant 0 : i32
    %c0_i32_1 = arith.constant 0 : i32
    return %1, %c0_i32_0 : i32, i32
  }
  func.func @transform_1(%arg0: i32, %arg1: memref<1xi32, #tpu.memory_space<smem>>) -> (i32, i32) {
    %c0_i32 = arith.constant 0 : i32
    %c0_i32_0 = arith.constant 0 : i32
    return %arg0, %c0_i32 : i32, i32
  }
  func.func @transform_2(%arg0: i32, %arg1: memref<1xi32, #tpu.memory_space<smem>>) -> (i32, i32) {
    %c1_i32 = arith.constant 1 : i32
    %0 = arith.addi %arg0, %c1_i32 : i32
    %c1_i32_0 = arith.constant 1 : i32
    %1 = arith.minsi %0, %c1_i32_0 : i32
    %c0_i32 = arith.constant 0 : i32
    %c0_i32_1 = arith.constant 0 : i32
    return %1, %c0_i32 : i32, i32
  }
  func.func @transform_3(%arg0: i32, %arg1: memref<1xi32, #tpu.memory_space<smem>>) -> (i32, i32, i32) {
    %c0_i32 = arith.constant 0 : i32
    %c0_i32_0 = arith.constant 0 : i32
    %c0_i32_1 = arith.constant 0 : i32
    %c0_i32_2 = arith.constant 0 : i32
    return %c0_i32, %c0_i32_0, %c0_i32_1 : i32, i32, i32
  }
  func.func @transform_4(%arg0: i32, %arg1: memref<1xi32, #tpu.memory_space<smem>>) -> (i32, i32, i32) {
    %c0_i32 = arith.constant 0 : i32
    %c0_i32_0 = arith.constant 0 : i32
    %c0_i32_1 = arith.constant 0 : i32
    %c0_i32_2 = arith.constant 0 : i32
    return %c0_i32, %c0_i32_0, %c0_i32_1 : i32, i32, i32
  }
  func.func @transform_5(%arg0: i32, %arg1: memref<1xi32, #tpu.memory_space<smem>>) -> (i32, i32) {
    %c0_i32 = arith.constant 0 : i32
    %c0_i32_0 = arith.constant 0 : i32
    %c0_i32_1 = arith.constant 0 : i32
    return %c0_i32, %c0_i32_0 : i32, i32
  }
  func.func @transform_6(%arg0: i32, %arg1: memref<1xi32, #tpu.memory_space<smem>>) -> (i32, i32) {
    %c0_i32 = arith.constant 0 : i32
    %c0_i32_0 = arith.constant 0 : i32
    %c0_i32_1 = arith.constant 0 : i32
    return %c0_i32, %c0_i32_0 : i32, i32
  }
  func.func @transform_7(%arg0: i32, %arg1: memref<1xi32, #tpu.memory_space<smem>>) -> (i32, i32) {
    %c0_i32 = arith.constant 0 : i32
    %c0_i32_0 = arith.constant 0 : i32
    return %c0_i32, %arg0 : i32, i32
  }
}

</mosaic_0001>

<bundles_post_ra>
// kernel: aridialect_text2mel_forward.1
= control target key start
LH: loop header
LB: loop body
LE: loop exit
PB: predicated region body
PF: predicated region fallthrough
CT: control target
= control target key end

     0   :  { %s6789_s0 = inlined_call_operand.<no memory space> [shape: s32[1], index: 0, kind: input, shape index: {}]   ;;  %s6790_s1 = inlined_call_operand.vmem [shape: f32[256,128], index: 1, kind: input, shape index: {}, may-alias: {1,2,3}]   ;;  %s6791_s2 = inlined_call_operand.vmem [shape: f32[256,128], index: 2, kind: input, shape index: {}, may-alias: {1,2,3}]   ;;  %s6792_s3 = inlined_call_operand.vmem [shape: f32[256,128], index: 3, kind: input, shape index: {}, may-alias: {1,2,3}]   ;;  %s6793_s4 = inlined_call_operand.vmem [shape: bf16[15,128,128], index: 4, kind: input, shape index: {}]   ;;  %s6794_s5 = inlined_call_operand.vmem [shape: f32[3,1,128], index: 5, kind: input, shape index: {}]   ;;  %s6795_s6 = inlined_call_operand.vmem [shape: bf16[128,128], index: 6, kind: input, shape index: {}]   ;;  %s6796_s7 = inlined_call_operand.vmem [shape: f32[128,1], index: 7, kind: input, shape index: {}]   ;;  %s6797_s8 = inlined_call_operand.vmem [shape: f32[128,256], index: 8, kind: output, shape index: {}]  }
   0x1   :  { %13 = sst [smem:[#allocation3]] %s6789_s0 }
   0x2   :  { %s4977_s29 = smov 0   ;;  %s4979_s30 = smov 0  }
   0x3   :  { %s4981_s9 = smov 0  }
   0x4 LB: > { %s4990_s0 = sadd.s32 4294967295, %s4925_s9   ;;  %s4992_s10 = sadd.s32 1, %s4925_s9   ;;  %s4925_s9 = sphi %s4981_s9, %s7178_s9   ;;  %s4921_s30 = sphi %s4979_s30, %s7177_s30   ;;  %s4917_s29 = sphi %s4977_s29, %s7176_s29  }
   0x5   : > { %s197_s11 = ssub.s32 %s4925_s9, %s4992_s10  ;;  %s200_s12 = sadd.s32 1, %s4921_s30 }
   0x6   : > { %p198_p0 = scmp.eq.s32.totalorder %s197_s11, 0  ;;  %p210_p1 = scmp.ne.s32.totalorder %s4921_s30, %s4917_s29 }
   0x7   : > { %p211_p2 = scmp.eq.s32.totalorder %s4990_s0, 1  ;;  %p3867_p3 = scmp.ge.s32.totalorder %s4925_s9, 1 }
   0x8   : > { %s5000_s13 = scalar_select %p198_p0, %s4921_s30, %s200_s12  }
   0x9   : > { %p5002_p4 = por %p211_p2, %p210_p1  ;;  %p286_p5 = scmp.lt.s32.totalorder %s4925_s9, 3 }
   0xb   : > { %p287_p6 = pnand %p3867_p3, %p286_p5 }
   0xd   : > { %290 = sbr.rel (%p287_p6) target bundleno = 1501 (0x5dd), region = 48 }
  0x12   : > { %v4758_v0 = vld [vmem:[%s6793_s4 + $0x78] sm:$0xff]  ;;  %s3869_s21 = sadd.s32 4294967295, %s4990_s0  ;;  %s3872_s22 = sshll.u32 %s4990_s0, 4  ;;  %v363_v3 = vlaneseq  ;;  %v4757_v5 = vld [vmem:[%s6793_s4 + $0x70] sm:$0xff]  ;;  %v4756_v11 = vld [vmem:[%s6793_s4 + $0x68] sm:$0xff]  ;;  %v6873_v29 = vmov 0 }
  0x13   : > { %v4750_v1 = vld [vmem:[%s6793_s4 + $0x38] sm:$0xff]  ;;  %p334_p7 = scmp.gt.s32.totalorder %s3869_s21, 0  ;;  %p346_p8 = scmp.lt.s32.totalorder %s3872_s22, 31  ;;  %722 = vmatpush.bf16.msra.mxu0 %v4758_v0  ;;  %v4749_v6 = vld [vmem:[%s6793_s4 + $0x30] sm:$0xff]  ;;  %v4748_v12 = vld [vmem:[%s6793_s4 + $0x28] sm:$0xff]  ;;  %v6876_v30 = vmov 0 }
  0x14   : > { %v4766_v2 = vld [vmem:[%s6793_s4 + $0xb8] sm:$0xff]  ;;  %824 = vmatpush.bf16.msra.mxu1 %v4750_v1  ;;  %v5026_v7 = vshrl.u32 %v363_v3, 7  ;;  %s3876_s9 = sshll.u32 %s4990_s0, 7  ;;  %v4765_v8 = vld [vmem:[%s6793_s4 + $0xb0] sm:$0xff]  ;;  %v4764_v14 = vld [vmem:[%s6793_s4 + $0xa8] sm:$0xff]  ;;  %s421_s28 = sld [smem:[#allocation3]] }
  0x15   : > { %v4774_v4 = vld [vmem:[%s6793_s4 + $0xf8] sm:$0xff]  ;;  %952 = vmatpush.bf16.msra.mxu2 %v4766_v2  ;;  %v4773_v9 = vld [vmem:[%s6793_s4 + $0xf0] sm:$0xff]  ;;  %s7180_s21 = smov (!%p334_p7, %s3869_s21), 0  ;;  %s7182_s22 = smov (!%p346_p8, %s3872_s22), 31  ;;  %v4772_v15 = vld [vmem:[%s6793_s4 + $0xe8] sm:$0xff]  ;;  %v6879_v36 = vmov 0 }
  0x16   : > { %1153 = vmatpush.bf16.msra.mxu3 %v4774_v4  ;;  %s3870_s17 = sshll.u32 %s7180_s21, 4  ;;  %v365_v10 = vadd.s32 8, %v5026_v7  ;;  %s3877_s18 = sadd.s32 4294967288, %s3876_s9  ;;  %v366_v16 = vadd.s32 16, %v5026_v7  ;;  %v4755_v19 = vld [vmem:[%s6793_s4 + $0x60] sm:$0xff]  ;;  %v4754_v25 = vld [vmem:[%s6793_s4 + $0x58] sm:$0xff] }
  0x17   : > { %723 = vmatpush.bf16.msra.mxu0 %v4757_v5  ;;  %p337_p9 = scmp.lt.s32.totalorder %s3870_s17, 31  ;;  %v5044_v13 = vstv %s3877_s18  ;;  %v4747_v20 = vld [vmem:[%s6793_s4 + $0x20] sm:$0xff]  ;;  %s3873_s18 = sshll.u32 %s7182_s22, 3  ;;  %v4746_v26 = vld [vmem:[%s6793_s4 + $0x18] sm:$0xff]  ;;  %v4753_v34 = vld [vmem:[%s6793_s4 + $0x50] sm:$0xff]  ;;  %vm6806_vm9 = vcmask 1040384  }
  0x18   : > { %825 = vmatpush.bf16.msra.mxu1 %v4749_v6  ;;  %v385_v17 = vadd.s32 %v5044_v13, %v5026_v7  ;;  %v386_v18 = vadd.s32 %v5044_v13, %v365_v10  ;;  %v4763_v21 = vld [vmem:[%s6793_s4 + $0xa0] sm:$0xff]  ;;  %v387_v23 = vadd.s32 %v5044_v13, %v366_v16  ;;  %s5076_s22 = scalar_lea.vmem %s6791_s2, %s3873_s18  ;;  %v4762_v27 = vld [vmem:[%s6793_s4 + $0x98] sm:$0xff]  ;;  %v4745_v35 = vld [vmem:[%s6793_s4 + $0x10] sm:$0xff]  ;;  %v367_v42 = vadd.s32 24, %v5026_v7  ;;  %s330_s27 = sand.u32 1, %s4917_s29  }
  0x19   : > { %953 = vmatpush.bf16.msra.mxu2 %v4765_v8  ;;  %s7184_s17 = smov (!%p337_p9, %s3870_s17), 31  ;;  %v4771_v22 = vld [vmem:[%s6793_s4 + $0xe0] sm:$0xff]  ;;  %v4770_v28 = vld [vmem:[%s6793_s4 + $0xd8] sm:$0xff]  ;;  %v5111_v33 = vld [vmem:[%s5076_s22 + $0x8] sm:$0xff]  ;;  %v368_v43 = vadd.s32 32, %v5026_v7  ;;  %vm6801_vm10 = vcmask 1041408  }
  0x1a   : > { %1154 = vmatpush.bf16.msra.mxu3 %v4773_v9  ;;  %s3871_s16 = sshll.u32 %s7184_s17, 3  ;;  %vm403_vm0 = vcmp.ge.s32.totalorder %v385_v17, 0  ;;  %vm404_vm1 = vcmp.ge.s32.totalorder %v386_v18, 0  ;;  %v5078_v24 = vstv %s421_s28  ;;  %vm405_vm5 = vcmp.ge.s32.totalorder %v387_v23, 0  ;;  %v5108_v32 = vld [vmem:[%s5076_s22] sm:$0xff]  ;;  %v4761_v37 = vld [vmem:[%s6793_s4 + $0x90] sm:$0xff]  ;;  %vm3926_vm12 = vmneg %vm6806_vm9 }
  0x1b   : > { %724 = vmatpush.bf16.msra.mxu0 %v4756_v11  ;;  %s340_s26 = scalar_lea.vmem %s6790_s1, %s3871_s16  ;;  %vm423_vm2 = vcmp.lt.s32.totalorder %v385_v17, %v5078_v24  ;;  %vm424_vm3 = vcmp.lt.s32.totalorder %v386_v18, %v5078_v24  ;;  %vm425_vm6 = vcmp.lt.s32.totalorder %v387_v23, %v5078_v24  ;;  %v4769_v38 = vld [vmem:[%s6793_s4 + $0xd0] sm:$0xff]  ;;  %v4752_v44 = vld [vmem:[%s6793_s4 + $0x48] sm:$0xff]  ;;  %vm6800_vm11 = vcmask 1046528   ;;  %v4751_v56 = vld [vmem:[%s6793_s4 + $0x40] sm:$0xff]  ;;  %s351_s28 = sadd.s32 1, %s4990_s0 }
  0x1c   : > { %826 = vmatpush.bf16.msra.mxu1 %v4748_v12  ;;  %vm5095_vm4 = vmand %vm403_vm0, %vm423_vm2  ;;  %v5105_v31 = vld [vmem:[%s340_s26 + $0x78] sm:$0xff]  ;;  %v4744_v45 = vld [vmem:[%s6793_s4 + $0x8] sm:$0xff]  ;;  %v388_v55 = vadd.s32 %v5044_v13, %v367_v42  ;;  %v389_v60 = vadd.s32 %v5044_v13, %v368_v43  ;;  %vm6798_vm14 = vmmov 1   ;;  %v6887_v9 = vmov 0  ;;  %p352_p10 = scmp.lt.s32.totalorder %s351_s28, 1  ;;  %s4740_s29 = sshll.u32 (%p5002_p4), %s4990_s0, 3 }
  0x1d   : > { %954 = vmatpush.bf16.msra.mxu2 %v4764_v14  ;;  %v6874_v29 = vsel %vm5095_vm4, 4294967295, %v6873_v29  ;;  %vm5101_vm7 = vmand %vm404_vm1, %vm424_vm3  ;;  %v5132_v39 = vsel %vm5095_vm4, %v5105_v31, 0.0  ;;  %v4760_v50 = vld [vmem:[%s6793_s4 + $0x88] sm:$0xff]  ;;  %v4743_v57 = vld [vmem:[%s6793_s4] sm:$0xff]  ;;  %v4015_v5 = vpack.c.bf16 %v5108_v32, %v5105_v31  ;;  %v6890_v11 = vmov 0  ;;  %s3693_s15 = scalar_lea.vmem (%p5002_p4), %s6797_s8, %s4740_s29 }
  0x1e   : > { %1155 = vmatpush.bf16.msra.mxu3 %v4772_v15  ;;  %6875 = vst [vmem:[#allocation5_spill] sm:$0xff] %v6874_v29  ;;  %v6877_v30 = vsel %vm5101_vm7, 4294967295, %v6876_v30  ;;  %vm5119_vm8 = vmand %vm405_vm5, %vm425_vm6  ;;  %v5137_v40 = vsel %vm5101_vm7, %v5108_v32, 0.0  ;;  %v594_v46 = vrot.slane %v5132_v39, 7  ;;  %v514_v48 = vrot.slane %v5132_v39, 6  ;;  %v4768_v51 = vld [vmem:[%s6793_s4 + $0xc8] sm:$0xff] }
  0x1f   : > { %725 = vmatpush.bf16.msra.mxu0 %v4755_v19  ;;  %6878 = vst [vmem:[#allocation6_spill] sm:$0xff] %v6877_v30  ;;  %v6880_v36 = vsel %vm5119_vm8, 4294967295, %v6879_v36  ;;  %v5142_v41 = vsel %vm5119_vm8, %v5111_v33, 0.0  ;;  %v595_v47 = vrot.slane %v5137_v40, 7  ;;  %v515_v49 = vrot.slane %v5137_v40, 6  ;;  %v4759_v61 = vld [vmem:[%s6793_s4 + $0x80] sm:$0xff]  ;;  %vm3962_vm13 = vmneg %vm6801_vm10 }
  0x20   : > { %827 = vmatpush.bf16.msra.mxu1 %v4747_v20  ;;  %v1025_v52 = vrot.slane %v5132_v39, 1  ;;  %v1026_v53 = vrot.slane %v5137_v40, 1  ;;  %v1028_v54 = vrot.slane %v5142_v41, 1  ;;  %v4767_v62 = vld [vmem:[%s6793_s4 + $0xc0] sm:$0xff]  ;;  %vm5190_vm15 = vmpackc.low %vm6798_vm14, %vm3926_vm12  ;;  %vm406_vm0 = vcmp.ge.s32.totalorder %v388_v55, 0  ;;  %v462_v10 = vld [vmem:[%s5076_s22 + $0x10] sm:$0xff] }
  0x21   : > { %955 = vmatpush.bf16.msra.mxu2 %v4763_v21  ;;  %v596_v58 = vsel %vm6806_vm9, %v594_v46, %v595_v47  ;;  %v516_v59 = vsel %vm6801_vm10, %v514_v48, %v515_v49  ;;  %vm426_vm1 = vcmp.lt.s32.totalorder %v388_v55, %v5078_v24  ;;  %vm5196_vm2 = vmpackc.low %vm6798_vm14, %vm3962_vm13  ;;  %vm407_vm3 = vcmp.ge.s32.totalorder %v389_v60, 0  ;;  %v5225_v12 = vld [vmem:[%s5076_s22 + $0x18] sm:$0xff]  ;;  %s7186_s28 = smov (!%p352_p10, %s351_s28), 1 }
  0x22   : > { %1156 = vmatpush.bf16.msra.mxu3 %v4771_v22  ;;  %v1027_v63 = vsel %vm6800_vm11, %v1025_v52, %v1026_v53  ;;  %v1029_v0 = vsel %vm6800_vm11, %v1026_v53, %v1028_v54  ;;  %v3928_v2 = vpack.c.bf16 %v596_v58, %v594_v46  ;;  %v3964_v3 = vpack.c.bf16 %v516_v59, %v514_v48  ;;  %vm5207_vm6 = vmpackc.low %vm5101_vm7, %vm5095_vm4  ;;  %v464_v46 = vld [vmem:[%s5076_s22 + $0x20] sm:$0xff]  ;;  %s3874_s23 = sshll.u32 %s7186_s28, 4 }
  0x23   : > { %726 = vmatpush.bf16.msra.mxu0 %v4754_v25  ;;  %v1079_v6 = vpack.c.bf16 %v1029_v0, %v1027_v63  ;;  %vm427_vm5 = vcmp.lt.s32.totalorder %v389_v60, %v5078_v24  ;;  %vm5211_vm12 = vmand %vm406_vm0, %vm426_vm1  ;;  %v597_v16 = vrot.slane %v5142_v41, 7  ;;  %v369_v17 = vadd.s32 40, %v5026_v7  ;;  %p355_p11 = scmp.lt.s32.totalorder %s3874_s23, 31 }
  0x24   : > { %828 = vmatpush.bf16.msra.mxu1 %v4746_v26  ;;  %v6888_v9 = vsel %vm5211_vm12, 4294967295, %v6887_v9  ;;  %vm5220_vm13 = vmand %vm407_vm3, %vm427_vm5  ;;  %v5231_v14 = vsel %vm5211_vm12, %v462_v10, 0.0  ;;  %v517_v19 = vrot.slane %v5142_v41, 6  ;;  %v370_v21 = vadd.s32 48, %v5026_v7 }
  0x25   : > { %956 = vmatpush.bf16.msra.mxu2 %v4762_v27  ;;  %6889 = vst [vmem:[#allocation7_spill] sm:$0xff] %v6888_v9  ;;  %v6891_v11 = vsel %vm5220_vm13, 4294967295, %v6890_v11  ;;  %v5236_v15 = vsel %vm5220_vm13, %v5225_v12, 0.0  ;;  %v599_v18 = vrot.slane %v5231_v14, 7  ;;  %v519_v20 = vrot.slane %v5231_v14, 6  ;;  %vm5265_vm14 = vmpackc.low %vm5211_vm12, %vm5119_vm8  ;;  %s7188_s23 = smov (!%p355_p11, %s3874_s23), 31 }
  0x26   : > { %1157 = vmatpush.bf16.msra.mxu3 %v4770_v28  ;;  %v1030_v22 = vrot.slane %v5231_v14, 1  ;;  %v1032_v23 = vrot.slane %v5236_v15, 1  ;;  %v598_v25 = vsel %vm6806_vm9, %v595_v47, %v597_v16  ;;  %v390_v26 = vadd.s32 %v5044_v13, %v369_v17  ;;  %v5279_v47 = vld [vmem:[%s5076_s22 + $0x28] sm:$0xff]  ;;  %s3875_s17 = sshll.u32 %s7188_s23, 3 }
  0x27   : > { %727 = vmatpush.bf16.msra.mxu0 %v4753_v34  ;;  %v600_v27 = vsel %vm6806_vm9, %v597_v16, %v599_v18  ;;  %v518_v28 = vsel %vm6801_vm10, %v515_v49, %v517_v19  ;;  %v520_v31 = vsel %vm6801_vm10, %v517_v19, %v519_v20  ;;  %v391_v32 = vadd.s32 %v5044_v13, %v370_v21  ;;  %v5329_v19 = vld [vmem:[%s5076_s22 + $0x38] sm:$0xff]  ;;  %s358_s12 = scalar_lea.vmem %s6792_s3, %s3875_s17  ;;  %s3868_s17 = sshll.u32 %s330_s27, 7 }
  0x28   : > { %829 = vmatpush.bf16.msra.mxu1 %v4745_v35  ;;  %v1031_v34 = vsel %vm6800_vm11, %v1028_v54, %v1030_v22  ;;  %v1033_v35 = vsel %vm6800_vm11, %v1030_v22, %v1032_v23  ;;  %vm408_vm0 = vcmp.ge.s32.totalorder %v390_v26, 0  ;;  %vm428_vm1 = vcmp.lt.s32.totalorder %v390_v26, %v5078_v24  ;;  %s6739_s9 = scalar_lea.vmem [#allocation4], %s3868_s17 }
  0x29   : > { %957 = vmatpush.bf16.msra.mxu2 %v4761_v37  ;;  %v649_v37 = vpack.c.bf16 %v600_v27, %v598_v25  ;;  %v4018_v42 = vpack.c.bf16 %v462_v10, %v5111_v33  ;;  %v1080_v43 = vpack.c.bf16 %v1033_v35, %v1031_v34  ;;  %vm409_vm3 = vcmp.ge.s32.totalorder %v391_v32, 0  ;;  %vm5269_vm11 = vmand %vm408_vm0, %vm428_vm1 }
  0x2a   : > { %1158 = vmatpush.bf16.msra.mxu3 %v4769_v38  ;;  %v569_v38 = vpack.c.bf16 %v520_v31, %v518_v28  ;;  %vm429_vm5 = vcmp.lt.s32.totalorder %v391_v32, %v5078_v24  ;;  %v6897_v33 = vmov 0  ;;  %v5285_v48 = vsel %vm5269_vm11, %v464_v46, 0.0 }
  0x2b   : > { %728 = vmatpush.bf16.msra.mxu0 %v4752_v44  ;;  %v6892_v44 = vmov 0  ;;  %vm5274_vm10 = vmand %vm409_vm3, %vm429_vm5  ;;  %v603_v52 = vrot.slane %v5285_v48, 7  ;;  %v521_v53 = vrot.slane %v5236_v15, 6  ;;  %v523_v54 = vrot.slane %v5285_v48, 6 }
  0x2c   : > { %830 = vmatpush.bf16.msra.mxu1 %v4744_v45  ;;  %v6893_v44 = vsel %vm5265_vm14, 4294967295, %v6892_v44  ;;  %v6895_v45 = vmov 0  ;;  %v6898_v33 = vsel %vm5274_vm10, 4294967295, %v6897_v33  ;;  %v5290_v49 = vsel %vm5274_vm10, %v5279_v47, 0.0 }
  0x2d   : > { %958 = vmatpush.bf16.msra.mxu2 %v4760_v50  ;;  %6894 = vst [vmem:[#allocation8_spill] sm:$0xff] %v6893_v44  ;;  %v6896_v45 = vsel %vm5269_vm11, 4294967295, %v6895_v45  ;;  %v601_v50 = vrot.slane %v5236_v15, 7  ;;  %v372_v55 = vadd.s32 64, %v5026_v7  ;;  %vm6899_vm0 = vcmask 1041408  }
  0x2e   : > { %1159 = vmatpush.bf16.msra.mxu3 %v4768_v51  ;;  %v371_v51 = vadd.s32 56, %v5026_v7  ;;  %vm6900_vm1 = vmmov %vm6899_vm0  ;;  %vm6901_vm3 = vcmask 1046528   ;;  %v6903_v16 = vmov 0  ;;  %v6905_v17 = vmov 0 }
  0x2f   : > { %729 = vmatpush.bf16.msra.mxu0 %v4751_v56  ;;  %v1034_v56 = vrot.slane %v5285_v48, 1  ;;  %v602_v58 = vsel %vm6806_vm9, %v599_v18, %v601_v50  ;;  %v604_v60 = vsel %vm6806_vm9, %v601_v50, %v603_v52  ;;  %v393_v63 = vadd.s32 %v5044_v13, %v372_v55  ;;  %vm6902_vm5 = vmmov %vm6901_vm3  ;;  %v466_v18 = vld [vmem:[%s5076_s22 + $0x30] sm:$0xff] }
  0x30   : > { %831 = vmatpush.bf16.msra.mxu1 %v4743_v57  ;;  %v1036_v57 = vrot.slane %v5290_v49, 1  ;;  %v392_v59 = vadd.s32 %v5044_v13, %v371_v51  ;;  %v605_v22 = vrot.slane %v5290_v49, 7  ;;  %v525_v26 = vrot.slane %v5290_v49, 6 }
  0x31   : > { %959 = vmatpush.bf16.msra.mxu2 %v4759_v61  ;;  %v522_v61 = vsel %vm6899_vm0, %v519_v20, %v521_v53  ;;  %v1035_v0 = vsel %vm6901_vm3, %v1032_v23, %v1034_v56  ;;  %vm411_vm9 = vcmp.ge.s32.totalorder %v393_v63, 0  ;;  %vm431_vm0 = vcmp.lt.s32.totalorder %v393_v63, %v5078_v24 }
  0x32   : > { %1160 = vmatpush.bf16.msra.mxu3 %v4767_v62  ;;  %3929 = vmatmul.msk.bf16.vlgmr.msra.gmra.mxu0 %vm5190_vm15, %v3928_v2  ;;  %v524_v62 = vsel %vm6900_vm1, %v521_v53, %v523_v54  ;;  %v1037_v2 = vsel %vm6902_vm5, %v1034_v56, %v1036_v57  ;;  %vm430_vm12 = vcmp.lt.s32.totalorder %v392_v59, %v5078_v24  ;;  %vm5315_vm1 = vmpackc.low %vm5269_vm11, %vm5220_vm13  ;;  %v373_v23 = vadd.s32 72, %v5026_v7 }
  0x33   : > { %3965 = vmatmul.msk.bf16.vlgmr.msra.gmra.mxu1 %vm5196_vm2, %v3964_v3  ;;  %v650_v3 = vpack.c.bf16 %v604_v60, %v602_v58  ;;  %v1081_v10 = vpack.c.bf16 %v1037_v2, %v1035_v0  ;;  %v6904_v16 = vsel %vm5315_vm1, 4294967295, %v6903_v16  ;;  %vm5324_vm5 = vmand %vm411_vm9, %vm431_vm0  ;;  %v374_v28 = vadd.s32 80, %v5026_v7  ;;  %v5379_v58 = vld [vmem:[%s5076_s22 + $0x48] sm:$0xff] }
  0x34   : > { %4016 = vmatmul.msk.bf16.vlgmr.msra.gmra.mxu2 %vm5207_vm6, %v4015_v5  ;;  %v570_v5 = vpack.c.bf16 %v524_v62, %v522_v61  ;;  %v5340_v21 = vsel %vm5324_vm5, %v5329_v19, 0.0  ;;  %vm6909_vm9 = vcmask 1040384   ;;  %v394_v35 = vadd.s32 %v5044_v13, %v373_v23 }
  0x35   : > { %1161 = vmatmul.bf16.vlgmr.msra.gmra.mxu3 %v1079_v6  ;;  %v4021_v6 = vpack.c.bf16 %v464_v46, %v5225_v12  ;;  %v6907_v12 = vmov 0  ;;  %v1040_v32 = vrot.slane %v5340_v21, 1  ;;  %v606_v34 = vsel %vm6909_vm9, %v603_v52, %v605_v22 }
  0x36   : > { %v6908_v12 = vsel %vm5324_vm5, 4294967295, %v6907_v12  ;;  %vm412_vm13 = vcmp.ge.s32.totalorder %v394_v35, 0  ;;  %v4024_v52 = vpack.c.bf16 %v466_v18, %v5279_v47  ;;  %v6917_v56 = vmov 0 }
  0x37   : > { %v6919_v47 = vmov 0  ;;  %v609_v61 = vrot.slane %v5340_v21, 7  ;;  %v375_v62 = vadd.s32 88, %v5026_v7  ;;  %v529_v0 = vrot.slane %v5340_v21, 6 }
  0x42   : > { %735 = vmatmul.bf16.gmra.mxu0 %v649_v37 }
  0x43   : > { %837 = vmatmul.bf16.gmra.mxu1 %v569_v38 }
  0x44   : > { %4019 = vmatmul.msk.bf16.gmra.mxu2 %vm5265_vm14, %v4018_v42  ;;  %vm410_vm14 = vcmp.ge.s32.totalorder %v392_v59, 0 }
  0x45   : > { %1166 = vmatmul.bf16.gmra.mxu3 %v1080_v43  ;;  %vm5319_vm3 = vmand %vm410_vm14, %vm430_vm12  ;;  %vm6911_vm12 = vcmask 1041408   ;;  %v395_v43 = vadd.s32 %v5044_v13, %v374_v28 }
  0x46   : > { %v6906_v17 = vsel %vm5319_vm3, 4294967295, %v6905_v17  ;;  %v5335_v20 = vsel %vm5319_vm3, %v466_v18, 0.0  ;;  %vm6910_vm14 = vmmov %vm6909_vm9  ;;  %v526_v38 = vsel %vm6911_vm12, %v523_v54, %v525_v26  ;;  %vm432_vm9 = vcmp.lt.s32.totalorder %v394_v35, %v5078_v24 }
  0x47   : > { %v607_v25 = vrot.slane %v5335_v20, 7  ;;  %v527_v27 = vrot.slane %v5335_v20, 6  ;;  %v1038_v31 = vrot.slane %v5335_v20, 1  ;;  %vm6912_vm0 = vmmov %vm6911_vm12  ;;  %vm433_vm12 = vcmp.lt.s32.totalorder %v395_v43, %v5078_v24 }
  0x48   : > { %v6915_v54 = vmov 0  ;;  %v396_v18 = vadd.s32 %v5044_v13, %v375_v62 }
  0x49   : > { %v608_v37 = vsel %vm6910_vm14, %v605_v22, %v607_v25  ;;  %v528_v42 = vsel %vm6912_vm0, %v525_v26, %v527_v27  ;;  %vm413_vm14 = vcmp.ge.s32.totalorder %v395_v43, 0  ;;  %vm5365_vm0 = vmpackc.low %vm5319_vm3, %vm5274_vm10  ;;  %v5429_v43 = vld [vmem:[%s5076_s22 + $0x58] sm:$0xff] }
  0x4a   : > { %v651_v51 = vpack.c.bf16 %v608_v37, %v606_v34  ;;  %v571_v53 = vpack.c.bf16 %v528_v42, %v526_v38  ;;  %v6916_v54 = vsel %vm5365_vm0, 4294967295, %v6915_v54  ;;  %vm414_vm10 = vcmp.ge.s32.totalorder %v396_v18, 0  ;;  %v470_v42 = vld [vmem:[%s5076_s22 + $0x50] sm:$0xff] }
  0x52   : > { %740 = vmatmul.bf16.gmra.mxu0 %v650_v3  ;;  %v376_v3 = vadd.s32 96, %v5026_v7 }
  0x53   : > { %842 = vmatmul.bf16.gmra.mxu1 %v570_v5 }
  0x54   : > { %4022 = vmatmul.msk.bf16.gmra.mxu2 %vm5315_vm1, %v4021_v6  ;;  %vm6913_vm1 = vcmask 1046528   ;;  %v397_v28 = vadd.s32 %v5044_v13, %v376_v3 }
  0x55   : > { %1171 = vmatmul.bf16.gmra.mxu3 %v1081_v10  ;;  %v1039_v46 = vsel %vm6913_vm1, %v1036_v57, %v1038_v31  ;;  %vm6914_vm11 = vmmov %vm6913_vm1  ;;  %v468_v57 = vld [vmem:[%s5076_s22 + $0x40] sm:$0xff] }
  0x56   : > { %v1041_v50 = vsel %vm6914_vm11, %v1038_v31, %v1040_v32  ;;  %vm5369_vm11 = vmand %vm412_vm13, %vm432_vm9  ;;  %vm6921_vm13 = vcmask 1040384  }
  0x57   : > { %v1082_v55 = vpack.c.bf16 %v1041_v50, %v1039_v46  ;;  %v6918_v56 = vsel %vm5369_vm11, 4294967295, %v6917_v56  ;;  %vm5374_vm1 = vmand %vm413_vm14, %vm433_vm12  ;;  %v5385_v59 = vsel %vm5369_vm11, %v468_v57, 0.0  ;;  %v610_v10 = vsel %vm6921_vm13, %v607_v25, %v609_v61 }
  0x58   : > { %v6920_v47 = vsel %vm5374_vm1, 4294967295, %v6919_v47  ;;  %v5390_v60 = vsel %vm5374_vm1, %v5379_v58, 0.0  ;;  %v611_v63 = vrot.slane %v5385_v59, 7  ;;  %v531_v2 = vrot.slane %v5385_v59, 6  ;;  %vm6922_vm9 = vmmov %vm6921_vm13 }
  0x59   : > { %v1042_v5 = vrot.slane %v5385_v59, 1  ;;  %v1044_v6 = vrot.slane %v5390_v60, 1  ;;  %vm6923_vm14 = vcmask 1041408   ;;  %vm434_vm13 = vcmp.lt.s32.totalorder %v396_v18, %v5078_v24 }
  0x5a   : > { %v612_v22 = vsel %vm6922_vm9, %v609_v61, %v611_v63  ;;  %v530_v23 = vsel %vm6923_vm14, %v527_v27, %v529_v0  ;;  %vm6924_vm12 = vmmov %vm6923_vm14  ;;  %v4027_v25 = vpack.c.bf16 %v468_v57, %v5329_v19  ;;  %vm415_vm9 = vcmp.ge.s32.totalorder %v397_v28, 0 }
  0x5b   : > { %v532_v26 = vsel %vm6924_vm12, %v529_v0, %v531_v2  ;;  %v652_v35 = vpack.c.bf16 %v612_v22, %v610_v10  ;;  %vm435_vm14 = vcmp.lt.s32.totalorder %v397_v28, %v5078_v24  ;;  %vm5415_vm12 = vmpackc.low %vm5369_vm11, %vm5324_vm5  ;;  %v6927_v27 = vmov 0 }
  0x5c   : > { %v572_v37 = vpack.c.bf16 %v532_v26, %v530_v23  ;;  %v6928_v27 = vsel %vm5415_vm12, 4294967295, %v6927_v27  ;;  %v6931_v19 = vmov 0  ;;  %v378_v61 = vadd.s32 112, %v5026_v7 }
  0x5e   : > { %v399_v23 = vadd.s32 %v5044_v13, %v378_v61  ;;  %v379_v61 = vadd.s32 120, %v5026_v7 }
  0x62   : > { %745 = vmatmul.bf16.gmra.mxu0 %v651_v51  ;;  %v613_v51 = vrot.slane %v5390_v60, 7 }
  0x63   : > { %847 = vmatmul.bf16.gmra.mxu1 %v571_v53  ;;  %v377_v53 = vadd.s32 104, %v5026_v7 }
  0x64   : > { %4025 = vmatmul.msk.bf16.gmra.mxu2 %vm5365_vm0, %v4024_v52  ;;  %vm6925_vm0 = vcmask 1046528  }
  0x65   : > { %1176 = vmatmul.bf16.gmra.mxu3 %v1082_v55  ;;  %v1043_v31 = vsel %vm6925_vm0, %v1040_v32, %v1042_v5  ;;  %vm6926_vm3 = vmmov %vm6925_vm0  ;;  %v6929_v32 = vmov 0  ;;  %v533_v55 = vrot.slane %v5390_v60, 6 }
  0x66   : > { %v1045_v34 = vsel %vm6926_vm3, %v1042_v5, %v1044_v6  ;;  %vm5419_vm3 = vmand %vm414_vm10, %vm434_vm13  ;;  %vm6934_vm10 = vcmask 1040384   ;;  %v398_v5 = vadd.s32 %v5044_v13, %v377_v53 }
  0x67   : > { %v1083_v38 = vpack.c.bf16 %v1045_v34, %v1043_v31  ;;  %v6930_v32 = vsel %vm5419_vm3, 4294967295, %v6929_v32  ;;  %vm5424_vm0 = vmand %vm415_vm9, %vm435_vm14  ;;  %v5435_v46 = vsel %vm5419_vm3, %v470_v42, 0.0  ;;  %v614_v3 = vsel %vm6934_vm10, %v611_v63, %v613_v51 }
  0x68   : > { %v6932_v19 = vsel %vm5424_vm0, 4294967295, %v6931_v19  ;;  %v5440_v50 = vsel %vm5424_vm0, %v5429_v43, 0.0  ;;  %v615_v52 = vrot.slane %v5435_v46, 7  ;;  %v535_v57 = vrot.slane %v5435_v46, 6  ;;  %vm6935_vm13 = vmmov %vm6934_vm10 }
  0x69   : > { %6933 = vst [vmem:[#allocation9_spill] sm:$0xff] %v6932_v19  ;;  %v1046_v62 = vrot.slane %v5435_v46, 1  ;;  %v1048_v0 = vrot.slane %v5440_v50, 1  ;;  %vm6936_vm9 = vcmask 1041408   ;;  %vm416_vm5 = vcmp.ge.s32.totalorder %v398_v5, 0 }
  0x6a   : > { %v616_v10 = vsel %vm6935_vm13, %v613_v51, %v615_v52  ;;  %v534_v18 = vsel %vm6936_vm9, %v531_v2, %v533_v55  ;;  %vm6937_vm14 = vmmov %vm6936_vm9  ;;  %vm436_vm10 = vcmp.lt.s32.totalorder %v398_v5, %v5078_v24  ;;  %v4030_v63 = vpack.c.bf16 %v470_v42, %v5379_v58  ;;  %v4781_v51 = vld [vmem:[%s6793_s4 + $0x130] sm:$0xff] }
  0x6b   : > { %v536_v22 = vsel %vm6937_vm14, %v533_v55, %v535_v57  ;;  %v653_v31 = vpack.c.bf16 %v616_v10, %v614_v3  ;;  %vm417_vm13 = vcmp.ge.s32.totalorder %v399_v23, 0  ;;  %vm437_vm9 = vcmp.lt.s32.totalorder %v399_v23, %v5078_v24  ;;  %v4780_v23 = vld [vmem:[%s6793_s4 + $0x128] sm:$0xff] }
  0x6c   : > { %v573_v34 = vpack.c.bf16 %v536_v22, %v534_v18  ;;  %v6940_v2 = vmov 0  ;;  %vm5474_vm14 = vmand %vm417_vm13, %vm437_vm9  ;;  %v6946_v58 = vmov 0  ;;  %v617_v55 = vrot.slane %v5440_v50, 7 }
  0x6d   : > { %v6947_v58 = vsel %vm5474_vm14, 4294967295, %v6946_v58  ;;  %v537_v3 = vrot.slane %v5440_v50, 6  ;;  %v380_v10 = vadd.s32 128, %v5026_v7  ;;  %vm6951_vm13 = vcmask 1041408  }
  0x6e   : > { %6948 = vst [vmem:[#allocation12_spill] sm:$0xff] %v6947_v58  ;;  %vm6952_vm9 = vmmov %vm6951_vm13 }
  0x72   : > { %750 = vmatmul.bf16.gmra.mxu0 %v652_v35 }
  0x73   : > { %852 = vmatmul.bf16.gmra.mxu1 %v572_v37  ;;  %v472_v37 = vld [vmem:[%s5076_s22 + $0x60] sm:$0xff] }
  0x74   : > { %4028 = vmatmul.msk.bf16.gmra.mxu2 %vm5415_vm12, %v4027_v25  ;;  %vm6938_vm12 = vcmask 1046528   ;;  %v5479_v25 = vld [vmem:[%s5076_s22 + $0x68] sm:$0xff] }
  0x75   : > { %1181 = vmatmul.bf16.gmra.mxu3 %v1083_v38  ;;  %v1047_v26 = vsel %vm6938_vm12, %v1044_v6, %v1046_v62  ;;  %vm6939_vm11 = vmmov %vm6938_vm12  ;;  %v6943_v6 = vmov 0  ;;  %v4782_v38 = vld [vmem:[%s6793_s4 + $0x138] sm:$0xff]  ;;  %v5496_v53 = vsel %vm5474_vm14, %v5479_v25, 0.0 }
  0x76   : > { %v1049_v28 = vsel %vm6939_vm11, %v1046_v62, %v1048_v0  ;;  %vm5465_vm12 = vmpackc.low %vm5419_vm3, %vm5374_vm1  ;;  %1354 = vmatpush.bf16.msrb.mxu0 %v4782_v38  ;;  %v1052_v22 = vrot.slane %v5496_v53, 1 }
  0x77   : > { %v1084_v35 = vpack.c.bf16 %v1049_v28, %v1047_v26  ;;  %v6941_v2 = vsel %vm5465_vm12, 4294967295, %v6940_v2  ;;  %vm5469_vm11 = vmand %vm416_vm5, %vm436_vm10  ;;  %vm6949_vm5 = vcmask 1040384   ;;  %v400_v28 = vadd.s32 %v5044_v13, %v379_v61 }
  0x78   : > { %6942 = vst [vmem:[#allocation10_spill] sm:$0xff] %v6941_v2  ;;  %v6944_v6 = vsel %vm5469_vm11, 4294967295, %v6943_v6  ;;  %v5488_v42 = vsel %vm5469_vm11, %v472_v37, 0.0  ;;  %v618_v26 = vsel %vm6949_vm5, %v615_v52, %v617_v55  ;;  %vm6950_vm10 = vmmov %vm6949_vm5  ;;  %v6955_v61 = vmov 0 }
  0x79   : > { %6945 = vst [vmem:[#allocation11_spill] sm:$0xff] %v6944_v6  ;;  %v619_v62 = vrot.slane %v5488_v42, 7  ;;  %v539_v5 = vrot.slane %v5488_v42, 6  ;;  %v1050_v18 = vrot.slane %v5488_v42, 1  ;;  %vm418_vm5 = vcmp.ge.s32.totalorder %v400_v28, 0 }
  0x7a   : > { %1355 = vmatpush.bf16.msrb.mxu0 %v4781_v51 }
  0x7e   : > { %1356 = vmatpush.bf16.msrb.mxu0 %v4780_v23 }
  0x82   : > { %755 = vmatmul.bf16.gmra.mxu0 %v653_v31  ;;  %v620_v31 = vsel %vm6950_vm10, %v617_v55, %v619_v62  ;;  %vm438_vm10 = vcmp.lt.s32.totalorder %v400_v28, %v5078_v24  ;;  %v4033_v55 = vpack.c.bf16 %v472_v37, %v5429_v43  ;;  %v6961_v43 = vmov 0  ;;  %v5545_v37 = vld [vmem:[%s5076_s22 + $0x78] sm:$0xff]  ;;  %v4777_v28 = vld [vmem:[%s6793_s4 + $0x110] sm:$0xff] }
  0x83   : > { %857 = vmatmul.bf16.gmra.mxu1 %v573_v34  ;;  %v538_v34 = vsel %vm6951_vm13, %v535_v57, %v537_v3  ;;  %v654_v52 = vpack.c.bf16 %v620_v31, %v618_v26  ;;  %v4779_v57 = vld [vmem:[%s6793_s4 + $0x120] sm:$0xff]  ;;  %vm5530_vm13 = vmpackc.low %vm5469_vm11, %vm5424_vm0  ;;  %v381_v26 = vadd.s32 136, %v5026_v7  ;;  %v621_v31 = vrot.slane %v5496_v53, 7  ;;  %v4776_v7 = vld [vmem:[%s6793_s4 + $0x108] sm:$0xff] }
  0x84   : > { %4031 = vmatmul.msk.bf16.gmra.mxu2 %vm5465_vm12, %v4030_v63  ;;  %v540_v63 = vsel %vm6952_vm9, %v537_v3, %v539_v5  ;;  %vm6953_vm12 = vcmask 1046528   ;;  %v6956_v61 = vsel %vm5530_vm13, 4294967295, %v6955_v61  ;;  %1357 = vmatpush.bf16.msrb.mxu0 %v4779_v57  ;;  %vm5535_vm9 = vmand %vm418_vm5, %vm438_vm10  ;;  %v6958_v3 = vmov 0 }
  0x85   : > { %1186 = vmatmul.bf16.gmra.mxu3 %v1084_v35  ;;  %v401_v35 = vadd.s32 %v5044_v13, %v380_v10  ;;  %v1051_v38 = vsel %vm6953_vm12, %v1048_v0, %v1050_v18  ;;  %vm6954_vm3 = vmmov %vm6953_vm12  ;;  %v574_v2 = vpack.c.bf16 %v540_v63, %v538_v34  ;;  %6957 = vst [vmem:[#allocation13_spill] sm:$0xff] %v6956_v61  ;;  %v6959_v3 = vsel %vm5535_vm9, 4294967295, %v6958_v3  ;;  %v474_v10 = vld [vmem:[%s5076_s22 + $0x70] sm:$0xff] }
  0x86   : > { %v1053_v51 = vsel %vm6954_vm3, %v1050_v18, %v1052_v22  ;;  %6960 = vst [vmem:[#allocation14_spill] sm:$0xff] %v6959_v3  ;;  %v4778_v18 = vld [vmem:[%s6793_s4 + $0x118] sm:$0xff]  ;;  %v5554_v23 = vsel %vm5535_vm9, %v474_v10, 0.0  ;;  %v541_v63 = vrot.slane %v5496_v53, 6  ;;  %vm6964_vm5 = vcmask 1040384  }
  0x87   : > { %v1085_v0 = vpack.c.bf16 %v1053_v51, %v1051_v38  ;;  %vm419_vm12 = vcmp.ge.s32.totalorder %v401_v35, 0  ;;  %vm439_vm3 = vcmp.lt.s32.totalorder %v401_v35, %v5078_v24  ;;  %v623_v34 = vrot.slane %v5554_v23, 7  ;;  %vm6965_vm10 = vmmov %vm6964_vm5 }
  0x88   : > { %vm5540_vm1 = vmand %vm419_vm12, %vm439_vm3  ;;  %1358 = vmatpush.bf16.msrb.mxu0 %v4778_v18  ;;  %v543_v35 = vrot.slane %v5554_v23, 6  ;;  %v1054_v38 = vrot.slane %v5554_v23, 1  ;;  %v622_v57 = vsel %vm6964_vm5, %v619_v62, %v621_v31  ;;  %vm6966_vm12 = vcmask 1041408  }
  0x89   : > { %v6962_v43 = vsel %vm5540_vm1, 4294967295, %v6961_v43  ;;  %vm6967_vm3 = vmmov %vm6966_vm12  ;;  %v4036_v62 = vpack.c.bf16 %v474_v10, %v5479_v25 }
  0x8a   : > { %6963 = vst [vmem:[#allocation15_spill] sm:$0xff] %v6962_v43  ;;  %v544_v18 = vsel %vm6967_vm3, %v541_v63, %v543_v35 }
  0x8c   : > { %1359 = vmatpush.bf16.msrb.mxu0 %v4777_v28 }
  0x90   : > { %1360 = vmatpush.bf16.msrb.mxu0 %v4776_v7 }
  0x92   : > { %760 = vmatmul.bf16.gmra.mxu0 %v654_v52  ;;  %v402_v52 = vadd.s32 %v5044_v13, %v381_v26  ;;  %v4775_v13 = vld [vmem:[%s6793_s4 + $0x100] sm:$0xff]  ;;  %v6973_v26 = vmov 0 }
  0x93   : > { %862 = vmatmul.bf16.gmra.mxu1 %v574_v2  ;;  %v5559_v2 = vsel %vm5540_vm1, %v5545_v37, 0.0 }
  0x94   : > { %4034 = vmatmul.msk.bf16.gmra.mxu2 %vm5530_vm13, %v4033_v55  ;;  %v1056_v51 = vrot.slane %v5559_v2, 1  ;;  %v624_v55 = vsel %vm6965_vm10, %v621_v31, %v623_v34  ;;  %vm6968_vm13 = vcmask 1046528   ;;  %vm420_vm0 = vcmp.ge.s32.totalorder %v402_v52, 0  ;;  %1361 = vmatpush.bf16.msrb.mxu0 %v4775_v13 }
  0x95   : > { %1191 = vmatmul.bf16.gmra.mxu3 %v1085_v0  ;;  %v542_v0 = vsel %vm6966_vm12, %v539_v5, %v541_v63  ;;  %v1055_v61 = vsel %vm6968_vm13, %v1052_v22, %v1054_v38  ;;  %vm6969_vm11 = vmmov %vm6968_vm13  ;;  %v655_v28 = vpack.c.bf16 %v624_v55, %v622_v57  ;;  %vm440_vm5 = vcmp.lt.s32.totalorder %v402_v52, %v5078_v24  ;;  %v476_v24 = vld [vmem:[%s358_s12] sm:$0xff] }
  0x96   : > { %v1057_v6 = vsel %vm6969_vm11, %v1054_v38, %v1056_v51  ;;  %v575_v19 = vpack.c.bf16 %v544_v18, %v542_v0  ;;  %vm5593_vm11 = vmpackc.low %vm5535_vm9, %vm5474_vm14  ;;  %v6970_v22 = vmov 0  ;;  %v625_v25 = vrot.slane %v5559_v2, 7 }
  0x97   : > { %v1086_v5 = vpack.c.bf16 %v1057_v6, %v1055_v61  ;;  %v6971_v22 = vsel %vm5593_vm11, 4294967295, %v6970_v22  ;;  %vm5597_vm13 = vmand %vm420_vm0, %vm440_vm5  ;;  %v545_v10 = vrot.slane %v5559_v2, 6  ;;  %vm6979_vm5 = vcmask 1046528  }
  0x98   : > { %6972 = vst [vmem:[#allocation16_spill] sm:$0xff] %v6971_v22  ;;  %v6974_v26 = vsel %vm5597_vm13, 4294967295, %v6973_v26  ;;  %v5605_v6 = vsel %vm5597_vm13, %v476_v24, 0.0  ;;  %vm6976_vm0 = vmmov %vm6965_vm10 }
  0x99   : > { %6975 = vst [vmem:[#allocation17_spill] sm:$0xff] %v6974_v26  ;;  %v627_v61 = vrot.slane %v5605_v6, 7  ;;  %v547_v31 = vrot.slane %v5605_v6, 6  ;;  %v1058_v63 = vrot.slane %v5605_v6, 1  ;;  %vm6977_vm10 = vmmov %vm6976_vm0 }
  0x9a   : > { %vm6978_vm12 = vmmov %vm6967_vm3 }
  0x9b   : > { %v628_v38 = vsel %vm6977_vm10, %v625_v25, %v627_v61  ;;  %v546_v7 = vsel %vm6978_vm12, %v543_v35, %v545_v10  ;;  %v548_v52 = vsel %vm6967_vm3, %v545_v10, %v547_v31  ;;  %v1059_v57 = vsel %vm6979_vm5, %v1056_v51, %v1058_v63  ;;  %vm6984_vm10 = vmmov %vm6979_vm5 }
  0x9c   : > { %v576_v0 = vpack.c.bf16 %v548_v52, %v546_v7  ;;  %v4090_v13 = vpack.c.bf16 %v1058_v63, %v1059_v57  ;;  %v6985_v35 = vmov 0  ;;  %vm6862_vm3 = vcmask 1045504  }
  0x9d   : > { %v1231_v63 = vrot.slane %v5231_v14, 2  ;;  %v1235_v52 = vrot.slane %v5285_v48, 2  ;;  %v1237_v57 = vrot.slane %v5290_v49, 2 }
  0x9f   : > { %v1238_v14 = vsel %vm6862_vm3, %v1235_v52, %v1237_v57 }
  0xa2   : > { %765 = vmatmul.bf16.gmra.mxu0 %v655_v28  ;;  %v6980_v28 = vmov 0 }
  0xa3   : > { %867 = vmatmul.bf16.gmra.mxu1 %v575_v19  ;;  %v626_v19 = vsel %vm6976_vm0, %v623_v34, %v625_v25  ;;  %v4039_v34 = vpack.c.bf16 %v476_v24, %v5545_v37  ;;  %vm6983_vm0 = vmmov 1   ;;  %v1227_v37 = vrot.slane %v5137_v40, 2 }
  0xa4   : > { %4037 = vmatmul.msk.bf16.gmra.mxu2 %vm5593_vm11, %v4036_v62  ;;  %v656_v55 = vpack.c.bf16 %v628_v38, %v626_v19  ;;  %vm5623_vm11 = vmpackc.low %vm5597_vm13, %vm5540_vm1  ;;  %v1226_v62 = vrot.slane %v5132_v39, 2  ;;  %v1233_v19 = vrot.slane %v5236_v15, 2 }
  0xa5   : > { %1196 = vmatmul.bf16.gmra.mxu3 %v1086_v5  ;;  %v6981_v28 = vsel %vm5623_vm11, 4294967295, %v6980_v28  ;;  %vm5630_vm12 = vmpackc.low %vm6984_vm10, %vm6983_vm0  ;;  %v1229_v5 = vrot.slane %v5142_v41, 2  ;;  %vm6993_vm10 = vcmask 1041408  }
  0xa6   : > { %6982 = vst [vmem:[#allocation18_spill] sm:$0xff] %v6981_v28  ;;  %v6986_v35 = vsel %vm5630_vm12, 4294967295, %v6985_v35  ;;  %v1228_v24 = vsel %vm6862_vm3, %v1226_v62, %v1227_v37  ;;  %v1234_v40 = vsel %vm6862_vm3, %v1231_v63, %v1233_v19  ;;  %v1241_v62 = vrot.slane %v5340_v21, 2  ;;  %vm5834_vm5 = vmpackc.low %vm6862_vm3, %vm6983_vm0 }
  0xa7   : > { %6987 = vst [vmem:[#allocation19_spill] sm:$0xff] %v6986_v35  ;;  %v1230_v25 = vsel %vm6862_vm3, %v1227_v37, %v1229_v5  ;;  %v1232_v39 = vsel %vm6862_vm3, %v1229_v5, %v1231_v63  ;;  %vm6992_vm0 = vcmask 1040384  }
  0xa8   : > { %v1280_v61 = vpack.c.bf16 %v1230_v25, %v1228_v24  ;;  %v1281_v41 = vpack.c.bf16 %v1234_v40, %v1232_v39  ;;  %v1243_v25 = vrot.slane %v5385_v59, 2  ;;  %v1247_v40 = vrot.slane %v5435_v46, 2  ;;  %v4798_v46 = vld [vmem:[%s6793_s4 + $0x1b8] sm:$0xff] }
  0xa9   : > { %1710 = vmatpush.bf16.msrb.mxu1 %v4798_v46  ;;  %v4795_v46 = vld [vmem:[%s6793_s4 + $0x1a0] sm:$0xff] }
  0xaa   : > { %v1244_v63 = vsel %vm6862_vm3, %v1241_v62, %v1243_v25 }
  0xaf   : > { %v5617_v18 = vpop.f32.mrf.mxu0 }
  0xb2   : > { %770 = vmatmul.bf16.gmra.mxu0 %v656_v55  ;;  %v1236_v55 = vsel %vm6862_vm3, %v1233_v19, %v1235_v52 }
  0xb3   : > { %872 = vmatmul.bf16.gmra.mxu1 %v576_v0  ;;  %v1282_v0 = vpack.c.bf16 %v1238_v14, %v1236_v55  ;;  %v4806_v55 = vld [vmem:[%s6793_s4 + $0x1f8] sm:$0xff]  ;;  %v5690_v14 = vpop.f32.mrf.mxu1 }
  0xb4   : > { %4040 = vmatmul.msk.bf16.gmra.mxu2 %vm5623_vm11, %v4039_v34  ;;  %1940 = vmatpush.bf16.msrb.mxu3 %v4806_v55 }
  0xb5   : > { %4091 = vmatmul.msk.bf16.gmra.mxu3 %vm5630_vm12, %v4090_v13  ;;  %v1239_v13 = vrot.slane %v5335_v20, 2 }
  0xb7   : > { %v5638_v51 = vpop.f32.mrf.mxu0  ;;  %v1240_v37 = vsel %vm6862_vm3, %v1237_v57, %v1239_v13  ;;  %v1242_v48 = vsel %vm6862_vm3, %v1239_v13, %v1241_v62  ;;  %v5701_v13 = vpop.f32.mrf.mxu2 }
  0xb8   : > { %v1283_v5 = vpack.c.bf16 %v1242_v48, %v1240_v37  ;;  %v1251_v37 = vrot.slane %v5488_v42, 2  ;;  %v1253_v48 = vrot.slane %v5496_v53, 2 }
  0xba   : > { %v1254_v53 = vsel %vm6862_vm3, %v1251_v37, %v1253_v48 }
  0xbf   : > { %v5645_v10 = vpop.f32.mrf.mxu0 }
  0xc2   : > { %1362 = vmatmul.bf16.vlgmr.msrb.gmra.mxu0 %v1280_v61  ;;  %v1245_v61 = vrot.slane %v5390_v60, 2 }
  0xc4   : > { %v1246_v20 = vsel %vm6862_vm3, %v1243_v25, %v1245_v61  ;;  %v1248_v52 = vsel %vm6862_vm3, %v1245_v61, %v1247_v40  ;;  %v4789_v25 = vld [vmem:[%s6793_s4 + $0x170] sm:$0xff]  ;;  %v4804_v61 = vld [vmem:[%s6793_s4 + $0x1e8] sm:$0xff] }
  0xc5   : > { %v1284_v19 = vpack.c.bf16 %v1246_v20, %v1244_v63  ;;  %v5716_v63 = vpop.f32.mrf.mxu3  ;;  %v4796_v20 = vld [vmem:[%s6793_s4 + $0x1a8] sm:$0xff] }
  0xc7   : > { %v5647_v31 = vpop.f32.mrf.mxu0 }
  0xcf   : > { %v5653_v38 = vpop.f32.mrf.mxu0 }
  0xd2   : > { %1367 = vmatmul.bf16.gmra.mxu0 %v1281_v41  ;;  %v1249_v41 = vrot.slane %v5440_v50, 2  ;;  %v4790_v50 = vld [vmem:[%s6793_s4 + $0x178] sm:$0xff] }
  0xd3   : > { %1812 = vmatpush.bf16.msrb.mxu2 %v4790_v50  ;;  %v4787_v50 = vld [vmem:[%s6793_s4 + $0x160] sm:$0xff] }
  0xd4   : > { %v1250_v59 = vsel %vm6862_vm3, %v1247_v40, %v1249_v41  ;;  %v1252_v42 = vsel %vm6862_vm3, %v1249_v41, %v1251_v37  ;;  %v4803_v40 = vld [vmem:[%s6793_s4 + $0x1e0] sm:$0xff]  ;;  %v4814_v41 = vld [vmem:[%s6793_s4 + $0x238] sm:$0xff]  ;;  %v4813_v37 = vld [vmem:[%s6793_s4 + $0x230] sm:$0xff] }
  0xd5   : > { %v1285_v57 = vpack.c.bf16 %v1250_v59, %v1248_v52  ;;  %v5729_v52 = vpop.f32.mrf.mxu1  ;;  %v1286_v59 = vpack.c.bf16 %v1254_v53, %v1252_v42  ;;  %2140 = vmatpush.bf16.msra.mxu0 %v4814_v41  ;;  %v4801_v42 = vld [vmem:[%s6793_s4 + $0x1d0] sm:$0xff]  ;;  %v4812_v53 = vld [vmem:[%s6793_s4 + $0x228] sm:$0xff]  ;;  %v1257_v41 = vrot.slane %v5559_v2, 2 }
  0xd7   : > { %v5655_v7 = vpop.f32.mrf.mxu0  ;;  %1813 = vmatpush.bf16.msrb.mxu2 %v4789_v25  ;;  %v4794_v25 = vld [vmem:[%s6793_s4 + $0x198] sm:$0xff] }
  0xd9   : > { %2141 = vmatpush.bf16.msra.mxu0 %v4813_v37 }
  0xdd   : > { %2142 = vmatpush.bf16.msra.mxu0 %v4812_v53 }
  0xdf   : > { %v5661_v15 = vpop.f32.mrf.mxu0 }
  0xe2   : > { %1372 = vmatmul.bf16.gmra.mxu0 %v1282_v0  ;;  %v4805_v0 = vld [vmem:[%s6793_s4 + $0x1f0] sm:$0xff] }
  0xe3   : > { %1941 = vmatpush.bf16.msrb.mxu3 %v4805_v0  ;;  %v4802_v0 = vld [vmem:[%s6793_s4 + $0x1d8] sm:$0xff] }
  0xe7   : > { %v5663_v34 = vpop.f32.mrf.mxu0  ;;  %1942 = vmatpush.bf16.msrb.mxu3 %v4804_v61  ;;  %v4786_v61 = vld [vmem:[%s6793_s4 + $0x158] sm:$0xff] }
  0xeb   : > { %1943 = vmatpush.bf16.msrb.mxu3 %v4803_v40  ;;  %v1255_v40 = vrot.slane %v5554_v23, 2  ;;  %v4811_v23 = vld [vmem:[%s6793_s4 + $0x220] sm:$0xff] }
  0xec   : > { %2143 = vmatpush.bf16.msra.mxu0 %v4811_v23  ;;  %v4809_v23 = vld [vmem:[%s6793_s4 + $0x210] sm:$0xff] }
  0xed   : > { %v1256_v2 = vsel %vm6862_vm3, %v1253_v48, %v1255_v40  ;;  %v1258_v37 = vsel %vm6862_vm3, %v1255_v40, %v1257_v41  ;;  %v4810_v48 = vld [vmem:[%s6793_s4 + $0x218] sm:$0xff] }
  0xee   : > { %v1287_v40 = vpack.c.bf16 %v1258_v37, %v1256_v2  ;;  %v4808_v37 = vld [vmem:[%s6793_s4 + $0x208] sm:$0xff] }
  0xef   : > { %v5669_v49 = vpop.f32.mrf.mxu0  ;;  %1944 = vmatpush.bf16.msrb.mxu3 %v4802_v0 }
  0xf0   : > { %2144 = vmatpush.bf16.msra.mxu0 %v4810_v48  ;;  %v834_v48 = vadd.f32 %v5690_v14, %v5617_v18 }
  0xf2   : > { %1377 = vmatmul.bf16.gmra.mxu0 %v1283_v5  ;;  %v4797_v5 = vld [vmem:[%s6793_s4 + $0x1b0] sm:$0xff] }
  0xf3   : > { %1711 = vmatpush.bf16.msrb.mxu1 %v4797_v5  ;;  %v5750_v5 = vpop.f32.mrf.mxu3  ;;  %1945 = vmatpush.bf16.msrb.mxu3 %v4801_v42  ;;  %v4799_v42 = vld [vmem:[%s6793_s4 + $0x1c0] sm:$0xff] }
  0xf4   : > { %2145 = vmatpush.bf16.msra.mxu0 %v4809_v23 }
  0xf7   : > { %v5671_v24 = vpop.f32.mrf.mxu0  ;;  %1712 = vmatpush.bf16.msrb.mxu1 %v4796_v20  ;;  %v5764_v20 = vpop.f32.mrf.mxu1 }
  0xf8   : > { %2146 = vmatpush.bf16.msra.mxu0 %v4808_v37  ;;  %v839_v43 = vadd.f32 %v5764_v20, %v5645_v10 }
  0xfb   : > { %1713 = vmatpush.bf16.msrb.mxu1 %v4795_v46  ;;  %v4785_v46 = vld [vmem:[%s6793_s4 + $0x150] sm:$0xff]  ;;  %v1167_v53 = vpop.f32.mrf.mxu3 }
  0xff   : > { %v5677_v21 = vpop.f32.mrf.mxu0  ;;  %1714 = vmatpush.bf16.msrb.mxu1 %v4794_v25  ;;  %v4792_v25 = vld [vmem:[%s6793_s4 + $0x188] sm:$0xff]  ;;  %v840_v35 = vpop.f32.mrf.mxu1 }
 0x102   : > { %1382 = vmatmul.bf16.gmra.mxu0 %v1284_v19  ;;  %v4788_v19 = vld [vmem:[%s6793_s4 + $0x168] sm:$0xff] }
 0x103   : > { %1814 = vmatpush.bf16.msrb.mxu2 %v4788_v19 }
 0x107   : > { %v5679_v39 = vpop.f32.mrf.mxu0  ;;  %1815 = vmatpush.bf16.msrb.mxu2 %v4787_v50  ;;  %v4800_v50 = vld [vmem:[%s6793_s4 + $0x1c8] sm:$0xff] }
 0x108   : > { %1946 = vmatpush.bf16.msrb.mxu3 %v4800_v50  ;;  %v4783_v50 = vld [vmem:[%s6793_s4 + $0x140] sm:$0xff] }
 0x10b   : > { %1816 = vmatpush.bf16.msrb.mxu2 %v4786_v61  ;;  %v4784_v61 = vld [vmem:[%s6793_s4 + $0x148] sm:$0xff] }
 0x10c   : > { %1947 = vmatpush.bf16.msrb.mxu3 %v4799_v42  ;;  %v1259_v42 = vrot.slane %v5605_v6, 2  ;;  %v5830_v6 = vld [vmem:[%s6794_s5] ss:$0 sm:$0xff] }
 0x10e   : > { %v1260_v23 = vsel %vm6862_vm3, %v1257_v41, %v1259_v42  ;;  %v836_v41 = vadd.f32 %v5729_v52, %v5638_v51  ;;  %vm6994_vm3 = vcmask 1046528  }
 0x10f   : > { %v5685_v60 = vpop.f32.mrf.mxu0  ;;  %1817 = vmatpush.bf16.msrb.mxu2 %v4785_v46  ;;  %v4791_v46 = vld [vmem:[%s6793_s4 + $0x180] sm:$0xff]  ;;  %v4141_v18 = vpack.c.bf16 %v1259_v42, %v1260_v23 }
 0x112   : > { %1387 = vmatmul.bf16.gmra.mxu0 %v1285_v57  ;;  %v5734_v57 = vpop.f32.mrf.mxu2 }
 0x113   : > { %1818 = vmatpush.bf16.msrb.mxu2 %v4784_v61 }
 0x117   : > { %v5703_v62 = vpop.f32.mrf.mxu0  ;;  %1819 = vmatpush.bf16.msrb.mxu2 %v4783_v50  ;;  %v5821_v50 = vpop.f32.mrf.mxu1 }
 0x11a   : > { %v966_v0 = vpop.f32.mrf.mxu2 }
 0x11b   : > { %v1008_v52 = vadd.f32 %v966_v0, %v839_v43 }
 0x11f   : > { %v5736_v55 = vpop.f32.mrf.mxu0  ;;  %v5846_v42 = vpop.f32.mrf.mxu1 }
 0x122   : > { %1392 = vmatmul.bf16.gmra.mxu0 %v1286_v59  ;;  %v4793_v59 = vld [vmem:[%s6793_s4 + $0x190] sm:$0xff]  ;;  %v968_v2 = vpop.f32.mrf.mxu2 }
 0x123   : > { %1715 = vmatpush.bf16.msrb.mxu1 %v4793_v59 }
 0x127   : > { %v5766_v19 = vpop.f32.mrf.mxu0  ;;  %1716 = vmatpush.bf16.msrb.mxu1 %v4792_v25  ;;  %v5810_v25 = vpop.f32.mrf.mxu3 }
 0x12a   : > { %v5824_v28 = vpop.f32.mrf.mxu2 }
 0x12b   : > { %1717 = vmatpush.bf16.msrb.mxu1 %v4791_v46  ;;  %v1006_v46 = vadd.f32 %v5701_v13, %v834_v48  ;;  %v6989_v13 = vmov 0 }
 0x12c   : > { %v6990_v13 = vsel %vm5834_vm5, 4294967295, %v6989_v13 }
 0x12d   : > { %v1207_v26 = vadd.f32 %v5716_v63, %v1006_v46  ;;  %6991 = vst [vmem:[#allocation21_spill] sm:$0xff] %v6990_v13  ;;  %v1007_v63 = vadd.f32 %v5734_v57, %v836_v41 }
 0x12f   : > { %v5796_v59 = vpop.f32.mrf.mxu0  ;;  %v5840_v48 = vpop.f32.mrf.mxu3  ;;  %v1208_v46 = vadd.f32 %v5750_v5, %v1007_v63 }
 0x132   : > { %1397 = vmatmul.bf16.gmra.mxu0 %v1287_v40  ;;  %v4807_v40 = vld [vmem:[%s6793_s4 + $0x200] sm:$0xff]  ;;  %v5851_v22 = vpop.f32.mrf.mxu2 }
 0x133   : > { %2147 = vmatpush.bf16.msra.mxu0 %v4807_v40 }
 0x137   : > { %v5812_v61 = vpop.f32.mrf.mxu0  ;;  %v5856_v41 = vpop.f32.mrf.mxu3 }
 0x138   : > { %6988 = vst [vmem:[#allocation20_spill] sm:$0xff] %v5812_v61  ;;  %v5860_v61 = vpop.f32.mrf.mxu1 }
 0x13f   : > { %v1363_v14 = vpop.f32.mrf.mxu0 }
 0x140   : > { %v1408_v37 = vadd.f32 %v1363_v14, %v1207_v26 }
 0x142   : > { %v1430_v40 = vadd.f32 %v5830_v6, %v1408_v37  ;;  %4142 = vmatmul.msk.bf16.gmra.mxu0 %vm5834_vm5, %v4141_v18  ;;  %v1209_v37 = vadd.f32 %v1167_v53, %v1008_v52  ;;  %v5865_v53 = vpop.f32.mrf.mxu2 }
 0x144   : > { %v1448_v23 = vmax.f32 %v1430_v40, 0.0 }
 0x146   : > { %v1466_v57 = vsel %vm5095_vm4, %v1448_v23, 0.0 }
 0x147   : > { %v1365_v26 = vpop.f32.mrf.mxu0  ;;  %v1502_v13 = vrot.slane %v1466_v57, 6  ;;  %v1582_v5 = vrot.slane %v1466_v57, 7  ;;  %v2012_v63 = vrot.slane %v1466_v57, 1  ;;  %v2212_v40 = vrot.slane %v1466_v57, 2 }
 0x148   : > { %v1409_v51 = vadd.f32 %v1365_v26, %v1208_v46 }
 0x14a   : > { %v1431_v14 = vadd.f32 %v5830_v6, %v1409_v51  ;;  %v841_v51 = vadd.f32 %v840_v35, %v5647_v31  ;;  %v5878_v31 = vpop.f32.mrf.mxu3 }
 0x14c   : > { %v1449_v18 = vmax.f32 %v1431_v14, 0.0 }
 0x14e   : > { %v1467_v10 = vsel %vm5101_vm7, %v1449_v18, 0.0  ;;  %v4296_v20 = vpack.c.bf16 %v1449_v18, %v1448_v23  ;;  %vm6995_vm7 = vcmask 1045504   ;;  %v1009_v18 = vadd.f32 %v968_v2, %v841_v51 }
 0x14f   : > { %v1503_v43 = vrot.slane %v1467_v10, 6  ;;  %v1583_v0 = vrot.slane %v1467_v10, 7  ;;  %v2013_v46 = vrot.slane %v1467_v10, 1  ;;  %v2213_v26 = vrot.slane %v1467_v10, 2  ;;  %v1368_v29 = vpop.f32.mrf.mxu0 }
 0x150   : > { %v1410_v3 = vadd.f32 %v1368_v29, %v1209_v37  ;;  %4297 = vmatmul.msk.bf16.vlgmr.msrb.gmra.mxu3 %vm5207_vm6, %v4296_v20  ;;  %v1210_v37 = vadd.f32 %v5810_v25, %v1009_v18 }
 0x151   : > { %v1584_v52 = vsel %vm6992_vm0, %v1582_v5, %v1583_v0  ;;  %v1504_v57 = vsel %vm6993_vm10, %v1502_v13, %v1503_v43  ;;  %v2014_v23 = vsel %vm6994_vm3, %v2012_v63, %v2013_v46  ;;  %v5871_v14 = vsel %vm6995_vm7, %v2212_v40, %v2213_v26  ;;  %vm6996_vm7 = vmmov %vm6994_vm3 }
 0x152   : > { %v1432_v10 = vadd.f32 %v5830_v6, %v1410_v3  ;;  %v4209_v30 = vpack.c.bf16 %v1584_v52, %v1582_v5  ;;  %v4245_v35 = vpack.c.bf16 %v1504_v57, %v1502_v13  ;;  %v844_v13 = vadd.f32 %v5821_v50, %v5653_v38  ;;  %vm6997_vm3 = vmmov %vm6992_vm0  ;;  %v5897_v50 = vpop.f32.mrf.mxu2 }
 0x153   : > { %vm6998_vm0 = vmmov %vm6993_vm10  ;;  %vm6999_vm10 = vcmask 1045504  }
 0x154   : > { %v1450_v29 = vmax.f32 %v1432_v10, 0.0  ;;  %4210 = vmatmul.msk.bf16.vlgmr.msrb.gmra.mxu1 %vm5190_vm15, %v4209_v30  ;;  %4246 = vmatmul.msk.bf16.vlgmr.msrb.gmra.mxu2 %vm5196_vm2, %v4245_v35  ;;  %v5885_v30 = vpop.f32.mrf.mxu1  ;;  %v1010_v10 = vadd.f32 %v5824_v28, %v844_v13 }
 0x156   : > { %v1468_v63 = vsel %vm5119_vm8, %v1450_v29, 0.0  ;;  %vm7005_vm8 = vcmask 1045504  }
 0x157   : > { %v2015_v40 = vrot.slane %v1468_v63, 1  ;;  %v2215_v2 = vrot.slane %v1468_v63, 2  ;;  %v1370_v20 = vpop.f32.mrf.mxu0  ;;  %v1585_v3 = vrot.slane %v1468_v63, 7  ;;  %v1505_v5 = vrot.slane %v1468_v63, 6 }
 0x158   : > { %v1411_v51 = vadd.f32 %v1370_v20, %v1210_v37 }
 0x159   : > { %v2016_v52 = vsel %vm6996_vm7, %v2013_v46, %v2015_v40  ;;  %v1586_v57 = vsel %vm6997_vm3, %v1583_v0, %v1585_v3  ;;  %v1506_v25 = vsel %vm6998_vm0, %v1503_v43, %v1505_v5  ;;  %v5891_v18 = vsel %vm6999_vm10, %v2213_v26, %v2215_v2  ;;  %v5902_v26 = vpop.f32.mrf.mxu3 }
 0x15a   : > { %v1433_v35 = vadd.f32 %v5830_v6, %v1411_v51  ;;  %v2066_v63 = vpack.c.bf16 %v2016_v52, %v2014_v23  ;;  %v1211_v46 = vadd.f32 %v5840_v48, %v1010_v10  ;;  %vm7000_vm7 = vnez %v6888_v9 }
 0x15b   : > { %v846_v52 = vadd.f32 %v5846_v42, %v5655_v7  ;;  %vm7001_vm3 = vnez %v6893_v44  ;;  %vm7002_vm0 = vcmask 1040384   ;;  %vm7003_vm10 = vcmask 1041408  }
 0x15c   : > { %v1451_v37 = vmax.f32 %v1433_v35, 0.0  ;;  %2148 = vmatmul.bf16.vlgmr.msra.gmra.mxu0 %v2066_v63  ;;  %v853_v7 = vpop.f32.mrf.mxu1 }
 0x15d   : > { %v1011_v63 = vadd.f32 %v5851_v22, %v846_v52  ;;  %v849_v22 = vadd.f32 %v5860_v61, %v5661_v15 }
 0x15e   : > { %v1469_v43 = vsel %vm7000_vm7, %v1451_v37, 0.0  ;;  %v4299_v0 = vpack.c.bf16 %v1451_v37, %v1450_v29  ;;  %vm7004_vm7 = vcmask 1046528  }
 0x15f   : > { %v1373_v20 = vpop.f32.mrf.mxu0  ;;  %v1587_v28 = vrot.slane %v1469_v43, 7  ;;  %v1507_v13 = vrot.slane %v1469_v43, 6  ;;  %v2017_v51 = vrot.slane %v1469_v43, 1  ;;  %v2217_v23 = vrot.slane %v1469_v43, 2 }
 0x160   : > { %v1412_v38 = vadd.f32 %v1373_v20, %v1211_v46  ;;  %4300 = vmatmul.msk.bf16.gmra.mxu3 %vm7001_vm3, %v4299_v0  ;;  %v981_v46 = vpop.f32.mrf.mxu2  ;;  %vm7009_vm3 = vcmask 1045504  }
 0x161   : > { %v1588_v48 = vsel %vm7002_vm0, %v1585_v3, %v1587_v28  ;;  %v1508_v10 = vsel %vm7003_vm10, %v1505_v5, %v1507_v13  ;;  %v2018_v29 = vsel %vm7004_vm7, %v2015_v40, %v2017_v51  ;;  %v5912_v35 = vsel %vm7005_vm8, %v2215_v2, %v2217_v23  ;;  %vm7007_vm8 = vmmov %vm7004_vm7 }
 0x162   : > { %v1434_v37 = vadd.f32 %v5830_v6, %v1412_v38  ;;  %v1637_v43 = vpack.c.bf16 %v1588_v48, %v1586_v57  ;;  %v1557_v9 = vpack.c.bf16 %v1508_v10, %v1506_v25  ;;  %v1212_v3 = vadd.f32 %v5856_v41, %v1011_v63  ;;  %v1182_v25 = vpop.f32.mrf.mxu3 }
 0x163   : > { %vm7006_vm0 = vnez %v6891_v11  ;;  %vm7008_vm7 = vcmask 1040384   ;;  %v1012_v48 = vadd.f32 %v5865_v53, %v849_v22 }
 0x164   : > { %v1452_v42 = vmax.f32 %v1434_v37, 0.0  ;;  %1723 = vmatmul.bf16.gmra.mxu1 %v1637_v43  ;;  %1825 = vmatmul.bf16.gmra.mxu2 %v1557_v9  ;;  %v855_v61 = vpop.f32.mrf.mxu1 }
 0x166   : > { %v1470_v5 = vsel %vm7006_vm0, %v1452_v42, 0.0  ;;  %vm7012_vm0 = vcmask 1046528  }
 0x167   : > { %v2019_v40 = vrot.slane %v1470_v5, 1  ;;  %v2219_v0 = vrot.slane %v1470_v5, 2  ;;  %v1375_v2 = vpop.f32.mrf.mxu0  ;;  %v1589_v20 = vrot.slane %v1470_v5, 7  ;;  %v1509_v44 = vrot.slane %v1470_v5, 6 }
 0x168   : > { %v1413_v57 = vadd.f32 %v1375_v2, %v1212_v3  ;;  %v983_v43 = vpop.f32.mrf.mxu2 }
 0x169   : > { %v2020_v38 = vsel %vm7007_vm8, %v2017_v51, %v2019_v40  ;;  %v1590_v9 = vsel %vm7008_vm7, %v1587_v28, %v1589_v20  ;;  %v1510_v52 = vsel %vm7003_vm10, %v1507_v13, %v1509_v44  ;;  %v5925_v41 = vsel %vm7009_vm3, %v2217_v23, %v2219_v0 }
 0x16a   : > { %v1435_v10 = vadd.f32 %v5830_v6, %v1413_v57  ;;  %v2067_v63 = vpack.c.bf16 %v2020_v38, %v2018_v29  ;;  %v1213_v51 = vadd.f32 %v5878_v31, %v1012_v48  ;;  %vm7010_vm8 = vnez %v6896_v45 }
 0x16b   : > { %v851_v29 = vadd.f32 %v5885_v30, %v5663_v34  ;;  %vm7011_vm3 = vnez %v6904_v16  ;;  %v1184_v34 = vpop.f32.mrf.mxu3 }
 0x16c   : > { %v1453_v15 = vmax.f32 %v1435_v10, 0.0  ;;  %2153 = vmatmul.bf16.gmra.mxu0 %v2067_v63 }
 0x16d   : > { %v1013_v48 = vadd.f32 %v5897_v50, %v851_v29  ;;  %v854_v50 = vadd.f32 %v853_v7, %v5669_v49 }
 0x16e   : > { %v1471_v28 = vsel %vm7010_vm8, %v1453_v15, 0.0  ;;  %v4302_v13 = vpack.c.bf16 %v1453_v15, %v1452_v42  ;;  %vm7013_vm8 = vcmask 1045504  }
 0x16f   : > { %v1378_v23 = vpop.f32.mrf.mxu0  ;;  %v1591_v3 = vrot.slane %v1471_v28, 7  ;;  %v1511_v5 = vrot.slane %v1471_v28, 6  ;;  %v2021_v53 = vrot.slane %v1471_v28, 1  ;;  %v2221_v2 = vrot.slane %v1471_v28, 2 }
 0x170   : > { %v1414_v22 = vadd.f32 %v1378_v23, %v1213_v51  ;;  %4303 = vmatmul.msk.bf16.gmra.mxu3 %vm7011_vm3, %v4302_v13  ;;  %v1214_v51 = vadd.f32 %v5902_v26, %v1013_v48  ;;  %vm7016_vm3 = vcmask 1045504  }
 0x171   : > { %v1592_v57 = vsel %vm7008_vm7, %v1589_v20, %v1591_v3  ;;  %v1512_v31 = vsel %vm7003_vm10, %v1509_v44, %v1511_v5  ;;  %v2022_v38 = vsel %vm7012_vm0, %v2019_v40, %v2021_v53  ;;  %v5942_v42 = vsel %vm7013_vm8, %v2219_v0, %v2221_v2  ;;  %v858_v20 = vpop.f32.mrf.mxu1 }
 0x172   : > { %v1436_v10 = vadd.f32 %v5830_v6, %v1414_v22  ;;  %v1638_v63 = vpack.c.bf16 %v1592_v57, %v1590_v9  ;;  %v1558_v15 = vpack.c.bf16 %v1512_v31, %v1510_v52  ;;  %vm7014_vm7 = vnez %v6898_v33  ;;  %v986_v9 = vpop.f32.mrf.mxu2 }
 0x173   : > { %vm7015_vm8 = vcmask 1040384   ;;  %v1014_v31 = vadd.f32 %v981_v46, %v854_v50  ;;  %v1187_v49 = vpop.f32.mrf.mxu3  ;;  %v856_v46 = vadd.f32 %v855_v61, %v5671_v24 }
 0x174   : > { %v1454_v30 = vmax.f32 %v1436_v10, 0.0  ;;  %1728 = vmatmul.bf16.gmra.mxu1 %v1638_v63  ;;  %1830 = vmatmul.bf16.gmra.mxu2 %v1558_v15 }
 0x175   : > { %v1215_v7 = vadd.f32 %v1182_v25, %v1014_v31  ;;  %v1015_v31 = vadd.f32 %v983_v43, %v856_v46  ;;  %v859_v43 = vadd.f32 %v858_v20, %v5677_v21 }
 0x176   : > { %v1472_v44 = vsel %vm7014_vm7, %v1454_v30, 0.0  ;;  %vm7019_vm7 = vcmask 1046528  }
 0x177   : > { %v1513_v40 = vrot.slane %v1472_v44, 6  ;;  %v1593_v28 = vrot.slane %v1472_v44, 7  ;;  %v2023_v0 = vrot.slane %v1472_v44, 1  ;;  %v2223_v13 = vrot.slane %v1472_v44, 2  ;;  %v1380_v23 = vpop.f32.mrf.mxu0 }
 0x178   : > { %v1415_v29 = vadd.f32 %v1380_v23, %v1214_v51 }
 0x179   : > { %v2024_v52 = vsel %vm7012_vm0, %v2021_v53, %v2023_v0  ;;  %v1594_v22 = vsel %vm7015_vm8, %v1591_v3, %v1593_v28  ;;  %v1514_v57 = vsel %vm7003_vm10, %v1511_v5, %v1513_v40  ;;  %v5954_v26 = vsel %vm7016_vm3, %v2221_v2, %v2223_v13 }
 0x17a   : > { %v1437_v48 = vadd.f32 %v5830_v6, %v1415_v29  ;;  %v2068_v10 = vpack.c.bf16 %v2024_v52, %v2022_v38  ;;  %vm7017_vm0 = vnez %v6906_v17  ;;  %vm7018_vm3 = vnez %v6916_v54  ;;  %v860_v38 = vpop.f32.mrf.mxu1  ;;  %v988_v24 = vpop.f32.mrf.mxu2 }
 0x17c   : > { %v1455_v15 = vmax.f32 %v1437_v48, 0.0  ;;  %2158 = vmatmul.bf16.gmra.mxu0 %v2068_v10 }
 0x17e   : > { %v1473_v53 = vsel %vm7017_vm0, %v1455_v15, 0.0  ;;  %v4305_v3 = vpack.c.bf16 %v1455_v15, %v1454_v30  ;;  %vm7020_vm0 = vcmask 1045504  }
 0x17f   : > { %v1383_v51 = vpop.f32.mrf.mxu0  ;;  %v1595_v5 = vrot.slane %v1473_v53, 7  ;;  %v1515_v44 = vrot.slane %v1473_v53, 6  ;;  %v2025_v2 = vrot.slane %v1473_v53, 1  ;;  %v2225_v23 = vrot.slane %v1473_v53, 2  ;;  %v1189_v53 = vpop.f32.mrf.mxu3 }
 0x180   : > { %v1416_v50 = vadd.f32 %v1383_v51, %v1215_v7  ;;  %4306 = vmatmul.msk.bf16.gmra.mxu3 %vm7018_vm3, %v4305_v3  ;;  %v1216_v7 = vadd.f32 %v1184_v34, %v1015_v31  ;;  %vm7021_vm3 = vnez %v6908_v12 }
 0x181   : > { %v1596_v29 = vsel %vm7015_vm8, %v1593_v28, %v1595_v5  ;;  %v1516_v25 = vsel %vm7003_vm10, %v1513_v40, %v1515_v44  ;;  %v2026_v52 = vsel %vm7019_vm7, %v2023_v0, %v2025_v2  ;;  %v5968_v30 = vsel %vm7020_vm0, %v2223_v13, %v2225_v23  ;;  %vm7022_vm0 = vmmov %vm7015_vm8 }
 0x182   : > { %v1438_v48 = vadd.f32 %v5830_v6, %v1416_v50  ;;  %v1639_v10 = vpack.c.bf16 %v1596_v29, %v1594_v22  ;;  %v1559_v15 = vpack.c.bf16 %v1516_v25, %v1514_v57  ;;  %vm7023_vm8 = vmmov %vm7003_vm10  ;;  %vm7024_vm10 = vcmask 1045504   ;;  %v991_v21 = vpop.f32.mrf.mxu2 }
 0x183   : > { %v1016_v29 = vadd.f32 %v986_v9, %v859_v43 }
 0x184   : > { %v1456_v61 = vmax.f32 %v1438_v48, 0.0  ;;  %1733 = vmatmul.bf16.gmra.mxu1 %v1639_v10  ;;  %1835 = vmatmul.bf16.gmra.mxu2 %v1559_v15  ;;  %v863_v10 = vpop.f32.mrf.mxu1 }
 0x185   : > { %v1217_v20 = vadd.f32 %v1187_v49, %v1016_v29 }
 0x186   : > { %v1474_v28 = vsel %vm7021_vm3, %v1456_v61, 0.0  ;;  %vm7029_vm3 = vcmask 1046528  }
 0x187   : > { %v1517_v40 = vrot.slane %v1474_v28, 6  ;;  %v1597_v3 = vrot.slane %v1474_v28, 7  ;;  %v2027_v0 = vrot.slane %v1474_v28, 1  ;;  %v2227_v51 = vrot.slane %v1474_v28, 2  ;;  %v1385_v13 = vpop.f32.mrf.mxu0  ;;  %v1192_v43 = vpop.f32.mrf.mxu3 }
 0x188   : > { %v1417_v46 = vadd.f32 %v1385_v13, %v1216_v7  ;;  %v861_v13 = vadd.f32 %v860_v38, %v5679_v39 }
 0x189   : > { %v2028_v22 = vsel %vm7019_vm7, %v2025_v2, %v2027_v0  ;;  %v1598_v57 = vsel %vm7022_vm0, %v1595_v5, %v1597_v3  ;;  %v1518_v50 = vsel %vm7023_vm8, %v1515_v44, %v1517_v40  ;;  %v5978_v34 = vsel %vm7024_vm10, %v2225_v23, %v2227_v51 }
 0x18a   : > { %v1439_v25 = vadd.f32 %v5830_v6, %v1417_v46  ;;  %v2069_v31 = vpack.c.bf16 %v2028_v22, %v2026_v52  ;;  %vm7025_vm7 = vnez %v6918_v56  ;;  %vm7026_vm0 = vnez %v6928_v27 }
 0x18b   : > { %vm7027_vm8 = vcmask 1040384   ;;  %vm7028_vm10 = vcmask 1041408   ;;  %v1017_v29 = vadd.f32 %v988_v24, %v861_v13  ;;  %v864_v24 = vadd.f32 %v863_v10, %v5685_v60 }
 0x18c   : > { %v1457_v15 = vmax.f32 %v1439_v25, 0.0  ;;  %2163 = vmatmul.bf16.gmra.mxu0 %v2069_v31  ;;  %v865_v38 = vpop.f32.mrf.mxu1 }
 0x18e   : > { %v1475_v5 = vsel %vm7025_vm7, %v1457_v15, 0.0  ;;  %v4308_v2 = vpack.c.bf16 %v1457_v15, %v1456_v61  ;;  %vm7030_vm7 = vcmask 1045504  }
 0x18f   : > { %v1388_v44 = vpop.f32.mrf.mxu0  ;;  %v1599_v7 = vrot.slane %v1475_v5, 7  ;;  %v1519_v23 = vrot.slane %v1475_v5, 6  ;;  %v2029_v28 = vrot.slane %v1475_v5, 1  ;;  %v2229_v9 = vrot.slane %v1475_v5, 2  ;;  %v993_v5 = vpop.f32.mrf.mxu2 }
 0x190   : > { %v1418_v52 = vadd.f32 %v1388_v44, %v1217_v20  ;;  %4309 = vmatmul.msk.bf16.gmra.mxu3 %vm7026_vm0, %v4308_v2  ;;  %v1218_v20 = vadd.f32 %v1189_v53, %v1017_v29  ;;  %vm7031_vm0 = vnez %v6920_v47 }
 0x191   : > { %v1600_v46 = vsel %vm7027_vm8, %v1597_v3, %v1599_v7  ;;  %v1520_v49 = vsel %vm7028_vm10, %v1517_v40, %v1519_v23  ;;  %v2030_v22 = vsel %vm7029_vm3, %v2027_v0, %v2029_v28  ;;  %v5992_v61 = vsel %vm7030_vm7, %v2227_v51, %v2229_v9  ;;  %vm7032_vm7 = vmmov %vm7027_vm8 }
 0x192   : > { %v1440_v25 = vadd.f32 %v5830_v6, %v1418_v52  ;;  %v1640_v31 = vpack.c.bf16 %v1600_v46, %v1598_v57  ;;  %v1560_v15 = vpack.c.bf16 %v1520_v49, %v1518_v50  ;;  %vm7033_vm8 = vmmov %vm7028_vm10  ;;  %vm7034_vm10 = vcmask 1045504  }
 0x193   : > { %v1018_v46 = vadd.f32 %v991_v21, %v864_v24  ;;  %v7036_v24 = vld [vmem:[#allocation10_spill] sm:$0xff] }
 0x194   : > { %v1458_v39 = vmax.f32 %v1440_v25, 0.0  ;;  %1738 = vmatmul.bf16.gmra.mxu1 %v1640_v31  ;;  %1840 = vmatmul.bf16.gmra.mxu2 %v1560_v15  ;;  %v1194_v31 = vpop.f32.mrf.mxu3  ;;  %v7056_v25 = vld [vmem:[#allocation16_spill] sm:$0xff] }
 0x195   : > { %v1219_v60 = vadd.f32 %v1192_v43, %v1018_v46 }
 0x196   : > { %v1476_v3 = vsel %vm7031_vm0, %v1458_v39, 0.0  ;;  %vm7040_vm0 = vcmask 1046528  }
 0x197   : > { %v1521_v40 = vrot.slane %v1476_v3, 6  ;;  %v1601_v2 = vrot.slane %v1476_v3, 7  ;;  %v2031_v0 = vrot.slane %v1476_v3, 1  ;;  %v2231_v44 = vrot.slane %v1476_v3, 2  ;;  %v1390_v51 = vpop.f32.mrf.mxu0 }
 0x198   : > { %v1419_v13 = vadd.f32 %v1390_v51, %v1218_v20  ;;  %v866_v51 = vadd.f32 %v865_v38, %v5703_v62  ;;  %v4822_v38 = vld [vmem:[%s6793_s4 + $0x278] sm:$0xff] }
 0x199   : > { %v2032_v57 = vsel %vm7029_vm3, %v2029_v28, %v2031_v0  ;;  %v1602_v50 = vsel %vm7032_vm7, %v1599_v7, %v1601_v2  ;;  %v1522_v52 = vsel %vm7033_vm8, %v1519_v23, %v1521_v40  ;;  %v6002_v53 = vsel %vm7034_vm10, %v2229_v9, %v2231_v44  ;;  %v868_v28 = vpop.f32.mrf.mxu1  ;;  %2340 = vmatpush.bf16.msra.mxu1 %v4822_v38 }
 0x19a   : > { %v1441_v49 = vadd.f32 %v5830_v6, %v1419_v13  ;;  %v2070_v29 = vpack.c.bf16 %v2032_v57, %v2030_v22  ;;  %vm7035_vm3 = vnez %v6930_v32  ;;  %vm7037_vm7 = vnez %v7036_v24  ;;  %v996_v13 = vpop.f32.mrf.mxu2  ;;  %v4862_v24 = vld [vmem:[%s6793_s4 + $0x3b8] sm:$0xff] }
 0x19b   : > { %vm7038_vm8 = vcmask 1040384   ;;  %vm7039_vm10 = vcmask 1041408  }
 0x19c   : > { %v1459_v15 = vmax.f32 %v1441_v49, 0.0  ;;  %2168 = vmatmul.bf16.gmra.mxu0 %v2070_v29  ;;  %v1019_v49 = vadd.f32 %v993_v5, %v866_v51 }
 0x19e   : > { %v1477_v10 = vsel %vm7035_vm3, %v1459_v15, 0.0  ;;  %v4311_v7 = vpack.c.bf16 %v1459_v15, %v1458_v39  ;;  %vm7041_vm3 = vcmask 1045504  }
 0x19f   : > { %v1393_v23 = vpop.f32.mrf.mxu0  ;;  %v1603_v20 = vrot.slane %v1477_v10, 7  ;;  %v1523_v9 = vrot.slane %v1477_v10, 6  ;;  %v2033_v3 = vrot.slane %v1477_v10, 1  ;;  %v2233_v21 = vrot.slane %v1477_v10, 2 }
 0x1a0   : > { %v1420_v22 = vadd.f32 %v1393_v23, %v1219_v60  ;;  %4312 = vmatmul.msk.bf16.gmra.mxu3 %vm7037_vm7, %v4311_v7  ;;  %v1220_v60 = vadd.f32 %v1194_v31, %v1019_v49  ;;  %v869_v23 = vadd.f32 %v868_v28, %v5736_v55  ;;  %v4821_v31 = vld [vmem:[%s6793_s4 + $0x270] sm:$0xff] }
 0x1a1   : > { %v1604_v57 = vsel %vm7038_vm8, %v1601_v2, %v1603_v20  ;;  %v1524_v43 = vsel %vm7039_vm10, %v1521_v40, %v1523_v9  ;;  %v2034_v46 = vsel %vm7040_vm0, %v2031_v0, %v2033_v3  ;;  %v6016_v39 = vsel %vm7041_vm3, %v2231_v44, %v2233_v21  ;;  %v1197_v2 = vpop.f32.mrf.mxu3  ;;  %v7042_v40 = vld [vmem:[#allocation9_spill] sm:$0xff]  ;;  %2341 = vmatpush.bf16.msra.mxu1 %v4821_v31 }
 0x1a2   : > { %v1442_v29 = vadd.f32 %v5830_v6, %v1420_v22  ;;  %v1641_v15 = vpack.c.bf16 %v1604_v57, %v1602_v50  ;;  %v1561_v10 = vpack.c.bf16 %v1524_v43, %v1522_v52  ;;  %vm7043_vm8 = vnez %v7042_v40  ;;  %v870_v22 = vpop.f32.mrf.mxu1  ;;  %v998_v28 = vpop.f32.mrf.mxu2 }
 0x1a3   : > { %vm7044_vm3 = vcmask 1040384   ;;  %v871_v31 = vadd.f32 %v870_v22, %v5766_v19 }
 0x1a4   : > { %v1460_v62 = vmax.f32 %v1442_v29, 0.0  ;;  %1743 = vmatmul.bf16.gmra.mxu1 %v1641_v15  ;;  %1845 = vmatmul.bf16.gmra.mxu2 %v1561_v10  ;;  %v1020_v15 = vadd.f32 %v996_v13, %v869_v23 }
 0x1a6   : > { %v6024_v0 = vsel %vm7043_vm8, %v1460_v62, 0.0  ;;  %vm7045_vm8 = vcmask 1045504  }
 0x1a7   : > { %v1525_v5 = vrot.slane %v6024_v0, 6  ;;  %v1605_v44 = vrot.slane %v6024_v0, 7  ;;  %v2035_v50 = vrot.slane %v6024_v0, 1  ;;  %v2235_v52 = vrot.slane %v6024_v0, 2  ;;  %v1395_v7 = vpop.f32.mrf.mxu0 }
 0x1a8   : > { %v1421_v51 = vadd.f32 %v1395_v7, %v1220_v60 }
 0x1a9   : > { %v2036_v57 = vsel %vm7040_vm0, %v2033_v3, %v2035_v50  ;;  %v1606_v43 = vsel %vm7044_vm3, %v1603_v20, %v1605_v44  ;;  %v1526_v49 = vsel %vm7039_vm10, %v1523_v9, %v1525_v5  ;;  %v6038_v29 = vsel %vm7045_vm8, %v2233_v21, %v2235_v52  ;;  %v4820_v20 = vld [vmem:[%s6793_s4 + $0x268] sm:$0xff]  ;;  %v7046_v9 = vld [vmem:[#allocation11_spill] sm:$0xff]  ;;  %v1199_v0 = vpop.f32.mrf.mxu3 }
 0x1aa   : > { %v1443_v10 = vadd.f32 %v5830_v6, %v1421_v51  ;;  %v2071_v38 = vpack.c.bf16 %v2036_v57, %v2034_v46  ;;  %v1221_v3 = vadd.f32 %v1197_v2, %v1020_v15  ;;  %vm7047_vm0 = vnez %v7046_v9  ;;  %2342 = vmatpush.bf16.msra.mxu1 %v4820_v20  ;;  %v4819_v2 = vld [vmem:[%s6793_s4 + $0x260] sm:$0xff]  ;;  %v873_v22 = vpop.f32.mrf.mxu1 }
 0x1ac   : > { %v1461_v60 = vmax.f32 %v1443_v10, 0.0  ;;  %2173 = vmatmul.bf16.gmra.mxu0 %v2071_v38  ;;  %v7048_v10 = vld [vmem:[#allocation13_spill] sm:$0xff] }
 0x1ad   : > { %vm7049_vm8 = vnez %v7048_v10 }
 0x1ae   : > { %v6048_v21 = vsel %vm7047_vm0, %v1461_v60, 0.0  ;;  %v4314_v13 = vpack.c.bf16 %v1461_v60, %v1460_v62  ;;  %vm7050_vm0 = vcmask 1045504   ;;  %v1021_v60 = vadd.f32 %v998_v28, %v871_v31  ;;  %2343 = vmatpush.bf16.msra.mxu1 %v4819_v2 }
 0x1af   : > { %v1398_v46 = vpop.f32.mrf.mxu0  ;;  %v1607_v7 = vrot.slane %v6048_v21, 7  ;;  %v1527_v23 = vrot.slane %v6048_v21, 6  ;;  %v2237_v51 = vrot.slane %v6048_v21, 2  ;;  %v874_v31 = vadd.f32 %v873_v22, %v5796_v59  ;;  %v7055_v59 = vld [vmem:[#allocation20_spill] sm:$0xff] }
 0x1b0   : > { %v1422_v57 = vadd.f32 %v1398_v46, %v1221_v3  ;;  %4315 = vmatmul.msk.bf16.gmra.mxu3 %vm7049_vm8, %v4314_v13  ;;  %v4818_v13 = vld [vmem:[%s6793_s4 + $0x258] sm:$0xff]  ;;  %v1222_v46 = vadd.f32 %v1199_v0, %v1021_v60  ;;  %vm7062_vm8 = vcmask 1045504  }
 0x1b1   : > { %v1608_v62 = vsel %vm7044_vm3, %v1605_v44, %v1607_v7  ;;  %v1528_v15 = vsel %vm7039_vm10, %v1525_v5, %v1527_v23  ;;  %v6062_v38 = vsel %vm7050_vm0, %v2235_v52, %v2237_v51  ;;  %v1001_v44 = vpop.f32.mrf.mxu2  ;;  %v2037_v5 = vrot.slane %v6048_v21, 1  ;;  %v1202_v2 = vpop.f32.mrf.mxu3 }
 0x1b2   : > { %v1444_v20 = vadd.f32 %v5830_v6, %v1422_v57  ;;  %v1642_v55 = vpack.c.bf16 %v1608_v62, %v1606_v43  ;;  %v1562_v19 = vpack.c.bf16 %v1528_v15, %v1526_v49  ;;  %2344 = vmatpush.bf16.msra.mxu1 %v4818_v13  ;;  %vm7051_vm0 = vcmask 1046528   ;;  %v875_v13 = vpop.f32.mrf.mxu1 }
 0x1b3   : > { %v2038_v62 = vsel %vm7051_vm0, %v2035_v50, %v2037_v5  ;;  %vm7052_vm3 = vmmov %vm7051_vm0  ;;  %vm7053_vm10 = vcmask 1045504   ;;  %v1022_v15 = vadd.f32 %v1001_v44, %v874_v31  ;;  %v4816_v50 = vld [vmem:[%s6793_s4 + $0x248] sm:$0xff]  ;;  %vm7057_vm0 = vnez %v7056_v25 }
 0x1b4   : > { %v1462_v3 = vmax.f32 %v1444_v20, 0.0  ;;  %1748 = vmatmul.bf16.gmra.mxu1 %v1642_v55  ;;  %1850 = vmatmul.bf16.gmra.mxu2 %v1562_v19  ;;  %v4817_v55 = vld [vmem:[%s6793_s4 + $0x250] sm:$0xff] }
 0x1b6   : > { %v1480_v52 = vsel %vm5474_vm14, %v1462_v3, 0.0  ;;  %2345 = vmatpush.bf16.msra.mxu1 %v4817_v55 }
 0x1b7   : > { %v2039_v28 = vrot.slane %v1480_v52, 1  ;;  %v2239_v43 = vrot.slane %v1480_v52, 2  ;;  %v1400_v49 = vpop.f32.mrf.mxu0  ;;  %v1609_v19 = vrot.slane %v1480_v52, 7 }
 0x1b8   : > { %v1423_v57 = vadd.f32 %v1400_v49, %v1222_v46  ;;  %v1223_v46 = vadd.f32 %v1202_v2, %v1022_v15 }
 0x1b9   : > { %v2040_v21 = vsel %vm7052_vm3, %v2037_v5, %v2039_v28  ;;  %v6078_v0 = vsel %vm7053_vm10, %v2237_v51, %v2239_v43  ;;  %v1529_v5 = vrot.slane %v1480_v52, 6  ;;  %v1003_v31 = vpop.f32.mrf.mxu2  ;;  %vm7058_vm3 = vcmask 1040384   ;;  %v4815_v52 = vld [vmem:[%s6793_s4 + $0x240] sm:$0xff] }
 0x1ba   : > { %v1445_v60 = vadd.f32 %v5830_v6, %v1423_v57  ;;  %v2072_v20 = vpack.c.bf16 %v2040_v21, %v2038_v62  ;;  %2346 = vmatpush.bf16.msra.mxu1 %v4816_v50  ;;  %v1610_v48 = vsel %vm7058_vm3, %v1607_v7, %v1609_v19  ;;  %vm7059_vm10 = vmmov %vm7058_vm3  ;;  %v1204_v7 = vpop.f32.mrf.mxu3 }
 0x1bc   : > { %v1463_v22 = vmax.f32 %v1445_v60, 0.0  ;;  %2178 = vmatmul.bf16.gmra.mxu0 %v2072_v20  ;;  %v876_v60 = vadd.f32 %v875_v13, %v7055_v59 }
 0x1be   : > { %v1481_v44 = vsel %vm5535_vm9, %v1463_v22, 0.0  ;;  %v4317_v49 = vpack.c.bf16 %v1463_v22, %v1462_v3  ;;  %vm7060_vm9 = vcmask 1041408   ;;  %v1023_v59 = vadd.f32 %v1003_v31, %v876_v60  ;;  %2347 = vmatpush.bf16.msra.mxu1 %v4815_v52 }
 0x1bf   : > { %v1403_v57 = vpop.f32.mrf.mxu0  ;;  %v1611_v55 = vrot.slane %v1481_v44, 7  ;;  %v1531_v62 = vrot.slane %v1481_v44, 6  ;;  %v2241_v21 = vrot.slane %v1481_v44, 2  ;;  %v1530_v2 = vsel %vm7060_vm9, %v1527_v23, %v1529_v5  ;;  %vm7061_vm14 = vmmov %vm7060_vm9 }
 0x1c0   : > { %v1424_v20 = vadd.f32 %v1403_v57, %v1223_v46  ;;  %4318 = vmatmul.msk.bf16.gmra.mxu3 %vm7057_vm0, %v4317_v49  ;;  %v2041_v57 = vrot.slane %v1481_v44, 1  ;;  %v1224_v63 = vadd.f32 %v1204_v7, %v1023_v59 }
 0x1c1   : > { %v1612_v3 = vsel %vm7059_vm10, %v1609_v19, %v1611_v55  ;;  %v1532_v15 = vsel %vm7061_vm14, %v1529_v5, %v1531_v62  ;;  %v6099_v22 = vsel %vm7062_vm8, %v2239_v43, %v2241_v21  ;;  %vm7064_vm14 = vcmask 1046528   ;;  %vm7068_vm10 = vmmov %vm7058_vm3 }
 0x1c2   : > { %v1446_v50 = vadd.f32 %v5830_v6, %v1424_v20  ;;  %v1643_v13 = vpack.c.bf16 %v1612_v3, %v1610_v48  ;;  %v1563_v46 = vpack.c.bf16 %v1532_v15, %v1530_v2  ;;  %v2042_v31 = vsel %vm7064_vm14, %v2039_v28, %v2041_v57  ;;  %vm7065_vm9 = vmmov %vm7064_vm14 }
 0x1c3   : > { %vm7069_vm14 = vcmask 1041408  }
 0x1c4   : > { %v1464_v49 = vmax.f32 %v1446_v50, 0.0  ;;  %1753 = vmatmul.bf16.gmra.mxu1 %v1643_v13  ;;  %1855 = vmatmul.bf16.gmra.mxu2 %v1563_v46 }
 0x1c6   : > { %v1482_v23 = vsel %vm5540_vm1, %v1464_v49, 0.0 }
 0x1c7   : > { %v2043_v37 = vrot.slane %v1482_v23, 1  ;;  %v2243_v5 = vrot.slane %v1482_v23, 2  ;;  %v1405_v25 = vpop.f32.mrf.mxu0  ;;  %v1613_v3 = vrot.slane %v1482_v23, 7  ;;  %v1533_v15 = vrot.slane %v1482_v23, 6 }
 0x1c8   : > { %v1425_v43 = vadd.f32 %v1405_v25, %v1224_v63 }
 0x1c9   : > { %v2044_v60 = vsel %vm7065_vm9, %v2041_v57, %v2043_v37  ;;  %v6107_v48 = vsel %vm7062_vm8, %v2241_v21, %v2243_v5  ;;  %v1534_v57 = vsel %vm7069_vm14, %v1531_v62, %v1533_v15  ;;  %vm7070_vm9 = vmmov %vm7069_vm14 }
 0x1ca   : > { %v1447_v20 = vadd.f32 %v5830_v6, %v1425_v43  ;;  %v2073_v52 = vpack.c.bf16 %v2044_v60, %v2042_v31  ;;  %v2273_v44 = vpack.c.bf16 %v6107_v48, %v6099_v22  ;;  %v1614_v6 = vsel %vm7058_vm3, %v1611_v55, %v1613_v3  ;;  %v4847_v22 = vld [vmem:[%s6793_s4 + $0x340] sm:$0xff]  ;;  %vm7088_vm14 = vmmov %vm7062_vm8 }
 0x1cc   : > { %v1465_v2 = vmax.f32 %v1447_v20, 0.0  ;;  %2183 = vmatmul.bf16.gmra.mxu0 %v2073_v52 }
 0x1ce   : > { %v1483_v63 = vsel %vm5597_vm13, %v1465_v2, 0.0  ;;  %v4320_v25 = vpack.c.bf16 %v1465_v2, %v1464_v49 }
 0x1cf   : > { %v1615_v28 = vrot.slane %v1483_v63, 7  ;;  %v1535_v50 = vrot.slane %v1483_v63, 6  ;;  %v2245_v13 = vrot.slane %v1483_v63, 2  ;;  %v2045_v20 = vrot.slane %v1483_v63, 1 }
 0x1d0   : > { %4321 = vmatmul.msk.bf16.gmra.mxu3 %vm5623_vm11, %v4320_v25  ;;  %vm7071_vm11 = vcmask 1046528   ;;  %v7074_v63 = vpack.c.bf16 %v5925_v41, %v5912_v35  ;;  %v7077_v41 = vpack.c.bf16 %v6002_v53, %v5992_v61  ;;  %v4830_v61 = vld [vmem:[%s6793_s4 + $0x2b8] sm:$0xff]  ;;  %v4845_v53 = vld [vmem:[%s6793_s4 + $0x330] sm:$0xff] }
 0x1d1   : > { %v6117_v21 = vpop.f32.mrf.mxu1  ;;  %v1616_v7 = vsel %vm7068_vm10, %v1613_v3, %v1615_v28  ;;  %v1536_v23 = vsel %vm7070_vm9, %v1533_v15, %v1535_v50  ;;  %v2246_v43 = vsel %vm7062_vm8, %v2243_v5, %v2245_v13  ;;  %v2046_v52 = vsel %vm7071_vm11, %v2043_v37, %v2045_v20  ;;  %2797 = vmatpush.bf16.msra.mxu3 %v4830_v61 }
 0x1d2   : > { %v1644_v31 = vpack.c.bf16 %v1616_v7, %v1614_v6  ;;  %v1564_v49 = vpack.c.bf16 %v1536_v23, %v1534_v57  ;;  %v6123_v60 = vpack.c.bf16 %v2245_v13, %v2246_v43  ;;  %v4371_v2 = vpack.c.bf16 %v2045_v20, %v2046_v52  ;;  %v4836_v52 = vld [vmem:[%s6793_s4 + $0x2e8] sm:$0xff] }
 0x1d3   : > { %v7073_v5 = vpack.c.bf16 %v5891_v18, %v5871_v14  ;;  %v7075_v50 = vpack.c.bf16 %v5954_v26, %v5942_v42  ;;  %v7076_v18 = vpack.c.bf16 %v5978_v34, %v5968_v30  ;;  %v4846_v26 = vld [vmem:[%s6793_s4 + $0x338] sm:$0xff]  ;;  %v7078_v30 = vpack.c.bf16 %v6038_v29, %v6016_v39  ;;  %v6184_v23 = vpop.f32.mrf.mxu3  ;;  %v4837_v39 = vld [vmem:[%s6793_s4 + $0x2f0] sm:$0xff] }
 0x1d4   : > { %1758 = vmatmul.bf16.gmra.mxu1 %v1644_v31  ;;  %1860 = vmatmul.bf16.gmra.mxu2 %v1564_v49  ;;  %v4838_v34 = vld [vmem:[%s6793_s4 + $0x2f8] sm:$0xff]  ;;  %v4829_v29 = vld [vmem:[%s6793_s4 + $0x2b0] sm:$0xff]  ;;  %v4844_v31 = vld [vmem:[%s6793_s4 + $0x328] sm:$0xff]  ;;  %v7079_v61 = vpack.c.bf16 %v6078_v0, %v6062_v38  ;;  %vm7087_vm10 = vcmask 1046528  }
 0x1d5   : > { %2923 = vmatpush.bf16.msrb.mxu0 %v4846_v26  ;;  %2697 = vmatpush.bf16.msra.mxu2 %v4838_v34  ;;  %v4842_v26 = vld [vmem:[%s6793_s4 + $0x318] sm:$0xff]  ;;  %v4853_v34 = vld [vmem:[%s6793_s4 + $0x370] sm:$0xff]  ;;  %v4852_v38 = vld [vmem:[%s6793_s4 + $0x368] sm:$0xff] }
 0x1d6   : > { %2798 = vmatpush.bf16.msra.mxu3 %v4829_v29  ;;  %v4826_v29 = vld [vmem:[%s6793_s4 + $0x298] sm:$0xff] }
 0x1d7   : > { %v6170_v57 = vpop.f32.mrf.mxu2 }
 0x1d9   : > { %v6126_v55 = vpop.f32.mrf.mxu1  ;;  %2924 = vmatpush.bf16.msrb.mxu0 %v4845_v53  ;;  %v6197_v49 = vpop.f32.mrf.mxu0  ;;  %2698 = vmatpush.bf16.msra.mxu2 %v4837_v39  ;;  %v4834_v39 = vld [vmem:[%s6793_s4 + $0x2d8] sm:$0xff] }
 0x1dc   : > { %4372 = vmatmul.msk.bf16.gmra.mxu0 %vm5630_vm12, %v4371_v2  ;;  %v4828_v2 = vld [vmem:[%s6793_s4 + $0x2a8] sm:$0xff] }
 0x1dd   : > { %2925 = vmatpush.bf16.msrb.mxu0 %v4844_v31  ;;  %2699 = vmatpush.bf16.msra.mxu2 %v4836_v52  ;;  %v4841_v31 = vld [vmem:[%s6793_s4 + $0x310] sm:$0xff] }
 0x1de   : > { %2799 = vmatpush.bf16.msra.mxu3 %v4828_v2  ;;  %v4833_v2 = vld [vmem:[%s6793_s4 + $0x2d0] sm:$0xff] }
 0x1df   : > { %v6199_v20 = vpop.f32.mrf.mxu2 }
 0x1e1   : > { %v6130_v62 = vpop.f32.mrf.mxu1  ;;  %v2151_v53 = vpop.f32.mrf.mxu0 }
 0x1e4   : > { %2348 = vmatmul.bf16.vlgmr.msra.gmra.mxu1 %v7073_v5  ;;  %v4843_v5 = vld [vmem:[%s6793_s4 + $0x320] sm:$0xff] }
 0x1e5   : > { %2926 = vmatpush.bf16.msrb.mxu0 %v4843_v5  ;;  %v4825_v5 = vld [vmem:[%s6793_s4 + $0x290] sm:$0xff] }
 0x1e7   : > { %v1826_v52 = vpop.f32.mrf.mxu2 }
 0x1e9   : > { %v6135_v3 = vpop.f32.mrf.mxu1  ;;  %2927 = vmatpush.bf16.msrb.mxu0 %v4842_v26  ;;  %v4832_v26 = vld [vmem:[%s6793_s4 + $0x2c8] sm:$0xff] }
 0x1ed   : > { %2928 = vmatpush.bf16.msrb.mxu0 %v4841_v31 }
 0x1ef   : > { %v1828_v31 = vpop.f32.mrf.mxu2 }
 0x1f1   : > { %v6137_v15 = vpop.f32.mrf.mxu1 }
 0x1f4   : > { %2353 = vmatmul.bf16.gmra.mxu1 %v7074_v63  ;;  %v4854_v63 = vld [vmem:[%s6793_s4 + $0x378] sm:$0xff] }
 0x1f5   : > { %3119 = vmatpush.bf16.msrb.mxu1 %v4854_v63  ;;  %v4840_v63 = vld [vmem:[%s6793_s4 + $0x308] sm:$0xff] }
 0x1f6   : > { %2929 = vmatpush.bf16.msrb.mxu0 %v4840_v63  ;;  %v4849_v63 = vld [vmem:[%s6793_s4 + $0x350] sm:$0xff] }
 0x1f7   : > { %v1831_v48 = vpop.f32.mrf.mxu2 }
 0x1f9   : > { %v6142_v37 = vpop.f32.mrf.mxu1  ;;  %3120 = vmatpush.bf16.msrb.mxu1 %v4853_v34  ;;  %v4824_v34 = vld [vmem:[%s6793_s4 + $0x288] sm:$0xff] }
 0x1fd   : > { %3121 = vmatpush.bf16.msrb.mxu1 %v4852_v38 }
 0x201   : > { %v6144_v28 = vpop.f32.mrf.mxu1 }
 0x204   : > { %2358 = vmatmul.bf16.gmra.mxu1 %v7075_v50 }
 0x209   : > { %v6149_v13 = vpop.f32.mrf.mxu1 }
 0x211   : > { %v6151_v14 = vpop.f32.mrf.mxu1 }
 0x214   : > { %2363 = vmatmul.bf16.gmra.mxu1 %v7076_v18  ;;  %v4835_v18 = vld [vmem:[%s6793_s4 + $0x2e0] sm:$0xff] }
 0x215   : > { %2700 = vmatpush.bf16.msra.mxu2 %v4835_v18  ;;  %v4851_v18 = vld [vmem:[%s6793_s4 + $0x360] sm:$0xff] }
 0x216   : > { %3122 = vmatpush.bf16.msrb.mxu1 %v4851_v18  ;;  %v4848_v18 = vld [vmem:[%s6793_s4 + $0x348] sm:$0xff] }
 0x219   : > { %v6156_v6 = vpop.f32.mrf.mxu1  ;;  %2701 = vmatpush.bf16.msra.mxu2 %v4834_v39  ;;  %v4850_v39 = vld [vmem:[%s6793_s4 + $0x358] sm:$0xff] }
 0x21a   : > { %3123 = vmatpush.bf16.msrb.mxu1 %v4850_v39 }
 0x21d   : > { %2702 = vmatpush.bf16.msra.mxu2 %v4833_v2  ;;  %v4831_v2 = vld [vmem:[%s6793_s4 + $0x2c0] sm:$0xff] }
 0x21e   : > { %3124 = vmatpush.bf16.msrb.mxu1 %v4849_v63 }
 0x221   : > { %v6158_v35 = vpop.f32.mrf.mxu1  ;;  %2703 = vmatpush.bf16.msra.mxu2 %v4832_v26 }
 0x222   : > { %3125 = vmatpush.bf16.msrb.mxu1 %v4848_v18 }
 0x224   : > { %2368 = vmatmul.bf16.gmra.mxu1 %v7077_v41  ;;  %v4827_v41 = vld [vmem:[%s6793_s4 + $0x2a0] sm:$0xff] }
 0x225   : > { %2800 = vmatpush.bf16.msra.mxu3 %v4827_v41  ;;  %2704 = vmatpush.bf16.msra.mxu2 %v4831_v2 }
 0x226   : > { %3126 = vmatpush.bf16.msrb.mxu1 %v4847_v22 }
 0x229   : > { %v6163_v7 = vpop.f32.mrf.mxu1  ;;  %2801 = vmatpush.bf16.msra.mxu3 %v4826_v29  ;;  %v2154_v29 = vpop.f32.mrf.mxu0  ;;  %3315 = vmatpush.bf16.msrb.mxu2 %v4862_v24 }
 0x22d   : > { %2802 = vmatpush.bf16.msra.mxu3 %v4825_v5  ;;  %v4823_v5 = vld [vmem:[%s6793_s4 + $0x280] sm:$0xff] }
 0x231   : > { %v6165_v42 = vpop.f32.mrf.mxu1  ;;  %2803 = vmatpush.bf16.msra.mxu3 %v4824_v34  ;;  %v1822_v34 = vadd.f32 %v6170_v57, %v6117_v21  ;;  %v2156_v39 = vpop.f32.mrf.mxu0  ;;  %v6299_v21 = vld [vmem:[%s6794_s5 + $0x1] ss:$0 sm:$0xff] }
 0x234   : > { %2373 = vmatmul.bf16.gmra.mxu1 %v7078_v30  ;;  %v1951_v30 = vpop.f32.mrf.mxu3 }
 0x235   : > { %2804 = vmatpush.bf16.msra.mxu3 %v4823_v5  ;;  %v1824_v5 = vadd.f32 %v6199_v20, %v6126_v55  ;;  %v1827_v55 = vadd.f32 %v1826_v52, %v6130_v62 }
 0x237   : > { %v1995_v25 = vadd.f32 %v1951_v30, %v1824_v5 }
 0x239   : > { %v6186_v43 = vpop.f32.mrf.mxu1  ;;  %v6303_v46 = vpop.f32.mrf.mxu0  ;;  %v2195_v20 = vadd.f32 %v2151_v53, %v1995_v25 }
 0x23c   : > { %v1954_v41 = vpop.f32.mrf.mxu3 }
 0x23d   : > { %v1996_v19 = vadd.f32 %v1954_v41, %v1827_v55  ;;  %v7084_v41 = vld [vmem:[#allocation6_spill] sm:$0xff] }
 0x23e   : > { %vm7085_vm11 = vnez %v7084_v41 }
 0x241   : > { %v6213_v50 = vpop.f32.mrf.mxu1 }
 0x244   : > { %2378 = vmatmul.bf16.gmra.mxu1 %v7079_v61  ;;  %v4839_v61 = vld [vmem:[%s6793_s4 + $0x300] sm:$0xff]  ;;  %v1956_v26 = vpop.f32.mrf.mxu3 }
 0x245   : > { %2930 = vmatpush.bf16.msrb.mxu0 %v4839_v61 }
 0x249   : > { %v6242_v0 = vpop.f32.mrf.mxu1 }
 0x24c   : > { %v6301_v57 = vpop.f32.mrf.mxu3 }
 0x251   : > { %v6268_v38 = vpop.f32.mrf.mxu1 }
 0x252   : > { %7080 = vst [vmem:[#allocation10_spill] sm:$0xff] %v6268_v38 }
 0x254   : > { %2383 = vmatmul.bf16.gmra.mxu1 %v2273_v44  ;;  %v1994_v44 = vadd.f32 %v6184_v23, %v1822_v34  ;;  %v6312_v51 = vpop.f32.mrf.mxu3  ;;  %v1829_v34 = vadd.f32 %v1828_v31, %v6135_v3 }
 0x256   : > { %v2194_v2 = vadd.f32 %v6197_v49, %v1994_v44  ;;  %v6309_v49 = vpop.f32.mrf.mxu2 }
 0x259   : > { %v6287_v61 = vpop.f32.mrf.mxu1 }
 0x25a   : > { %7081 = vst [vmem:[#allocation9_spill] sm:$0xff] %v6287_v61 }
 0x25c   : > { %v6333_v41 = vpop.f32.mrf.mxu3 }
 0x25e   : > { %v6320_v61 = vpop.f32.mrf.mxu2 }
 0x261   : > { %v2349_v63 = vpop.f32.mrf.mxu1 }
 0x262   : > { %v2394_v18 = vadd.f32 %v2349_v63, %v2194_v2  ;;  %v6317_v63 = vpop.f32.mrf.mxu0 }
 0x264   : > { %v2417_v23 = vadd.f32 %v6299_v21, %v2394_v18  ;;  %4423 = vmatmul.msk.bf16.gmra.mxu1 %vm5834_vm5, %v6123_v60  ;;  %v2196_v60 = vadd.f32 %v2154_v29, %v1996_v19 }
 0x266   : > { %v2435_v22 = vmax.f32 %v2417_v23, 0.0 }
 0x268   : > { %v2453_v2 = vsel %vm5095_vm4, %v2435_v22, 0.0  ;;  %vm7086_vm4 = vmmov %vm7070_vm9 }
 0x269   : > { %v2351_v44 = vpop.f32.mrf.mxu1  ;;  %v2489_v25 = vrot.slane %v2453_v2, 6  ;;  %v2569_v62 = vrot.slane %v2453_v2, 7  ;;  %v2991_v53 = vrot.slane %v2453_v2, 1  ;;  %v3187_v52 = vrot.slane %v2453_v2, 2  ;;  %vm7091_vm9 = vmmov %vm7058_vm3 }
 0x26a   : > { %v2395_v59 = vadd.f32 %v2351_v44, %v2195_v20  ;;  %v1997_v2 = vadd.f32 %v1956_v26, %v1829_v34  ;;  %v6344_v34 = vpop.f32.mrf.mxu2 }
 0x26c   : > { %v2418_v5 = vadd.f32 %v6299_v21, %v2395_v59  ;;  %v2197_v8 = vadd.f32 %v2156_v39, %v1997_v2 }
 0x26e   : > { %v2436_v18 = vmax.f32 %v2418_v5, 0.0 }
 0x270   : > { %v2454_v23 = vsel %vm7085_vm11, %v2436_v18, 0.0  ;;  %v4578_v55 = vpack.c.bf16 %v2436_v18, %v2435_v22 }
 0x271   : > { %v2490_v20 = vrot.slane %v2454_v23, 6  ;;  %v2570_v44 = vrot.slane %v2454_v23, 7  ;;  %v2992_v30 = vrot.slane %v2454_v23, 1  ;;  %v3188_v59 = vrot.slane %v2454_v23, 2  ;;  %v2354_v58 = vpop.f32.mrf.mxu1 }
 0x272   : > { %v2396_v38 = vadd.f32 %v2354_v58, %v2196_v60  ;;  %4579 = vmatmul.msk.bf16.vlgmr.msrb.gmra.mxu0 %vm5207_vm6, %v4578_v55  ;;  %v1832_v60 = vadd.f32 %v1831_v48, %v6137_v15  ;;  %vm7089_vm6 = vnez %v6880_v36 }
 0x273   : > { %v2491_v19 = vsel %vm7086_vm4, %v2489_v25, %v2490_v20  ;;  %v2571_v3 = vsel %vm7058_vm3, %v2569_v62, %v2570_v44  ;;  %v2993_v29 = vsel %vm7087_vm10, %v2991_v53, %v2992_v30  ;;  %v6330_v31 = vsel %vm7088_vm14, %v3187_v52, %v3188_v59  ;;  %v6340_v53 = vpop.f32.mrf.mxu0 }
 0x274   : > { %v4491_v22 = vpack.c.bf16 %v2571_v3, %v2569_v62  ;;  %v4527_v5 = vpack.c.bf16 %v2491_v19, %v2489_v25  ;;  %v2419_v18 = vadd.f32 %v6299_v21, %v2396_v38  ;;  %v1998_v36 = vadd.f32 %v6301_v57, %v1832_v60 }
 0x276   : > { %v2437_v58 = vmax.f32 %v2419_v18, 0.0  ;;  %4492 = vmatmul.msk.bf16.vlgmr.msra.gmra.mxu2 %vm5190_vm15, %v4491_v22  ;;  %4528 = vmatmul.msk.bf16.vlgmr.msra.gmra.mxu3 %vm5196_vm2, %v4527_v5  ;;  %vm7090_vm15 = vmmov %vm7087_vm10  ;;  %v6356_v22 = vpop.f32.mrf.mxu3 }
 0x277   : > { %vm7092_vm2 = vmmov %vm7086_vm4 }
 0x278   : > { %v2455_v26 = vsel %vm7089_vm6, %v2437_v58, 0.0  ;;  %vm7097_vm10 = vmmov %vm7092_vm2 }
 0x279   : > { %v2492_v38 = vrot.slane %v2455_v26, 6  ;;  %v2572_v25 = vrot.slane %v2455_v26, 7  ;;  %v2994_v62 = vrot.slane %v2455_v26, 1  ;;  %v3190_v52 = vrot.slane %v2455_v26, 2  ;;  %v2356_v23 = vpop.f32.mrf.mxu1  ;;  %vm7098_vm14 = vmmov %vm7090_vm15 }
 0x27a   : > { %v2397_v1 = vadd.f32 %v2356_v23, %v2197_v8  ;;  %vm7099_vm6 = vmmov %vm7062_vm8 }
 0x27b   : > { %v2995_v55 = vsel %vm7090_vm15, %v2992_v30, %v2994_v62  ;;  %v2573_v4 = vsel %vm7091_vm9, %v2570_v44, %v2572_v25  ;;  %v2493_v39 = vsel %vm7092_vm2, %v2490_v20, %v2492_v38  ;;  %v6350_v15 = vsel %vm7062_vm8, %v3188_v59, %v3190_v52  ;;  %v7093_v44 = vld [vmem:[#allocation7_spill] sm:$0xff]  ;;  %v2166_v26 = vpop.f32.mrf.mxu0  ;;  %vm7101_vm9 = vmmov %vm7098_vm14 }
 0x27c   : > { %v2420_v48 = vadd.f32 %v6299_v21, %v2397_v1  ;;  %v3045_v19 = vpack.c.bf16 %v2995_v55, %v2993_v29  ;;  %v3241_v3 = vpack.c.bf16 %v6350_v15, %v6330_v31  ;;  %v2198_v30 = vadd.f32 %v6303_v46, %v1998_v36  ;;  %v7095_v1 = vld [vmem:[#allocation8_spill] sm:$0xff]  ;;  %v1841_v55 = vpop.f32.mrf.mxu2  ;;  %vm7102_vm2 = vmmov %vm7058_vm3 }
 0x27d   : > { %v1834_v20 = vadd.f32 %v6309_v49, %v6142_v37  ;;  %vm7094_vm11 = vnez %v7093_v44  ;;  %vm7096_vm4 = vnez %v7095_v1  ;;  %vm7100_vm15 = vnez %v6891_v11  ;;  %vm7103_vm8 = vmmov %vm7097_vm10 }
 0x27e   : > { %v2438_v2 = vmax.f32 %v2420_v48, 0.0  ;;  %3127 = vmatmul.bf16.vlgmr.msrb.gmra.mxu1 %v3045_v19 }
 0x280   : > { %v2456_v59 = vsel %vm7094_vm11, %v2438_v2, 0.0  ;;  %v4581_v5 = vpack.c.bf16 %v2438_v2, %v2437_v58  ;;  %v1999_v58 = vadd.f32 %v6312_v51, %v1834_v20  ;;  %vm7104_vm11 = vmmov %vm7099_vm6 }
 0x281   : > { %v2359_v57 = vpop.f32.mrf.mxu1  ;;  %v2574_v18 = vrot.slane %v2456_v59, 7  ;;  %v2494_v8 = vrot.slane %v2456_v59, 6  ;;  %v2996_v29 = vrot.slane %v2456_v59, 1  ;;  %v3192_v60 = vrot.slane %v2456_v59, 2 }
 0x282   : > { %v2398_v23 = vadd.f32 %v2359_v57, %v2198_v30  ;;  %4582 = vmatmul.msk.bf16.gmra.mxu0 %vm7096_vm4, %v4581_v5  ;;  %v2199_v44 = vadd.f32 %v6317_v63, %v1999_v58  ;;  %vm7105_vm4 = vnez %v6896_v45 }
 0x283   : > { %v2575_v46 = vsel %vm7058_vm3, %v2572_v25, %v2574_v18  ;;  %v2495_v36 = vsel %vm7097_vm10, %v2492_v38, %v2494_v8  ;;  %v2997_v37 = vsel %vm7098_vm14, %v2994_v62, %v2996_v29  ;;  %v6369_v49 = vsel %vm7099_vm6, %v3190_v52, %v3192_v60  ;;  %v1969_v62 = vpop.f32.mrf.mxu3  ;;  %v2169_v11 = vpop.f32.mrf.mxu0  ;;  %vm7107_vm10 = vmmov %vm7102_vm2 }
 0x284   : > { %v2421_v48 = vadd.f32 %v6299_v21, %v2398_v23  ;;  %v2624_v19 = vpack.c.bf16 %v2575_v46, %v2573_v4  ;;  %v2544_v2 = vpack.c.bf16 %v2495_v36, %v2493_v39  ;;  %v1837_v25 = vadd.f32 %v6320_v61, %v6144_v28  ;;  %v1843_v36 = vpop.f32.mrf.mxu2  ;;  %vm7108_vm14 = vmmov %vm7103_vm8 }
 0x285   : > { %vm7106_vm3 = vnez %v6904_v16  ;;  %vm7109_vm6 = vmmov %vm7101_vm9 }
 0x286   : > { %v2439_v30 = vmax.f32 %v2421_v48, 0.0  ;;  %2709 = vmatmul.bf16.gmra.mxu2 %v2624_v19  ;;  %2809 = vmatmul.bf16.gmra.mxu3 %v2544_v2  ;;  %v2000_v28 = vadd.f32 %v6333_v41, %v1837_v25 }
 0x288   : > { %v2457_v38 = vsel %vm7100_vm15, %v2439_v30, 0.0  ;;  %vm7110_vm15 = vmmov %vm7104_vm11 }
 0x289   : > { %v2496_v52 = vrot.slane %v2457_v38, 6  ;;  %v2576_v59 = vrot.slane %v2457_v38, 7  ;;  %v2998_v5 = vrot.slane %v2457_v38, 1  ;;  %v3194_v51 = vrot.slane %v2457_v38, 2  ;;  %v2361_v20 = vpop.f32.mrf.mxu1 }
 0x28a   : > { %v2399_v57 = vadd.f32 %v2361_v20, %v2199_v44 }
 0x28b   : > { %v2999_v4 = vsel %vm7101_vm9, %v2996_v29, %v2998_v5  ;;  %v2577_v39 = vsel %vm7102_vm2, %v2574_v18, %v2576_v59  ;;  %v2497_v23 = vsel %vm7103_vm8, %v2494_v8, %v2496_v52  ;;  %v6382_v63 = vsel %vm7104_vm11, %v3192_v60, %v3194_v51  ;;  %v1971_v25 = vpop.f32.mrf.mxu3  ;;  %vm7112_vm2 = vmmov %vm7109_vm6 }
 0x28c   : > { %v2422_v61 = vadd.f32 %v6299_v21, %v2399_v57  ;;  %v3046_v1 = vpack.c.bf16 %v2999_v4, %v2997_v37  ;;  %v3242_v46 = vpack.c.bf16 %v6382_v63, %v6369_v49  ;;  %v2200_v29 = vadd.f32 %v6340_v53, %v2000_v28  ;;  %v2171_v4 = vpop.f32.mrf.mxu0  ;;  %v1846_v16 = vpop.f32.mrf.mxu2  ;;  %vm7113_vm8 = vmmov %vm7107_vm10 }
 0x28d   : > { %v1839_v18 = vadd.f32 %v6344_v34, %v6149_v13  ;;  %vm7111_vm9 = vnez %v6898_v33  ;;  %vm7114_vm11 = vmmov %vm7108_vm14 }
 0x28e   : > { %v2440_v58 = vmax.f32 %v2422_v61, 0.0  ;;  %3131 = vmatmul.bf16.gmra.mxu1 %v3046_v1 }
 0x28f   : > { %v2001_v34 = vadd.f32 %v6356_v22, %v1839_v18 }
 0x290   : > { %v2458_v8 = vsel %vm7105_vm4, %v2440_v58, 0.0  ;;  %v4584_v60 = vpack.c.bf16 %v2440_v58, %v2439_v30  ;;  %vm7115_vm4 = vmmov %vm7110_vm15 }
 0x291   : > { %v2364_v41 = vpop.f32.mrf.mxu1  ;;  %v2578_v48 = vrot.slane %v2458_v8, 7  ;;  %v2498_v19 = vrot.slane %v2458_v8, 6  ;;  %v3000_v2 = vrot.slane %v2458_v8, 1  ;;  %v3196_v37 = vrot.slane %v2458_v8, 2 }
 0x292   : > { %v2400_v44 = vadd.f32 %v2364_v41, %v2200_v29  ;;  %4585 = vmatmul.msk.bf16.gmra.mxu0 %vm7106_vm3, %v4584_v60  ;;  %v2201_v61 = vadd.f32 %v2166_v26, %v2001_v34  ;;  %vm7116_vm3 = vnez %v6906_v17 }
 0x293   : > { %v2579_v38 = vsel %vm7107_vm10, %v2576_v59, %v2578_v48  ;;  %v2499_v53 = vsel %vm7108_vm14, %v2496_v52, %v2498_v19  ;;  %v3001_v13 = vsel %vm7109_vm6, %v2998_v5, %v3000_v2  ;;  %v6399_v45 = vsel %vm7110_vm15, %v3194_v51, %v3196_v37  ;;  %v1974_v60 = vpop.f32.mrf.mxu3  ;;  %vm7118_vm14 = vmmov %vm7113_vm8 }
 0x294   : > { %v2423_v30 = vadd.f32 %v6299_v21, %v2400_v44  ;;  %v2625_v20 = vpack.c.bf16 %v2579_v38, %v2577_v39  ;;  %v2545_v57 = vpack.c.bf16 %v2499_v53, %v2497_v23  ;;  %v1842_v59 = vadd.f32 %v1841_v55, %v6151_v14  ;;  %v2174_v38 = vpop.f32.mrf.mxu0  ;;  %vm7119_vm6 = vmmov %vm7114_vm11 }
 0x295   : > { %vm7117_vm10 = vnez %v6916_v54  ;;  %vm7120_vm15 = vmmov %vm7112_vm2 }
 0x296   : > { %v2441_v28 = vmax.f32 %v2423_v30, 0.0  ;;  %2714 = vmatmul.bf16.gmra.mxu2 %v2625_v20  ;;  %2814 = vmatmul.bf16.gmra.mxu3 %v2545_v57  ;;  %v2002_v26 = vadd.f32 %v1969_v62, %v1842_v59 }
 0x298   : > { %v2459_v52 = vsel %vm7111_vm9, %v2441_v28, 0.0  ;;  %v2202_v44 = vadd.f32 %v2169_v11, %v2002_v26  ;;  %vm7121_vm9 = vmmov %vm7115_vm4 }
 0x299   : > { %v2500_v5 = vrot.slane %v2459_v52, 6  ;;  %v2580_v51 = vrot.slane %v2459_v52, 7  ;;  %v3002_v1 = vrot.slane %v2459_v52, 1  ;;  %v3198_v58 = vrot.slane %v2459_v52, 2  ;;  %v2366_v22 = vpop.f32.mrf.mxu1 }
 0x29a   : > { %v2401_v29 = vadd.f32 %v2366_v22, %v2201_v61 }
 0x29b   : > { %v3003_v39 = vsel %vm7112_vm2, %v3000_v2, %v3002_v1  ;;  %v2581_v23 = vsel %vm7113_vm8, %v2578_v48, %v2580_v51  ;;  %v2501_v18 = vsel %vm7114_vm11, %v2498_v19, %v2500_v5  ;;  %v6410_v8 = vsel %vm7115_vm4, %v3196_v37, %v3198_v58  ;;  %v1848_v37 = vpop.f32.mrf.mxu2  ;;  %v1976_v22 = vpop.f32.mrf.mxu3  ;;  %vm7123_vm8 = vmmov %vm7120_vm15 }
 0x29c   : > { %v2424_v14 = vadd.f32 %v6299_v21, %v2401_v29  ;;  %v3047_v33 = vpack.c.bf16 %v3003_v39, %v3001_v13  ;;  %v3243_v55 = vpack.c.bf16 %v6410_v8, %v6399_v45  ;;  %v1844_v2 = vadd.f32 %v1843_v36, %v6156_v6  ;;  %vm7124_vm11 = vmmov %vm7118_vm14 }
 0x29d   : > { %v1847_v29 = vadd.f32 %v1846_v16, %v6158_v35  ;;  %vm7122_vm2 = vnez %v6908_v12  ;;  %vm7125_vm4 = vmmov %vm7119_vm6 }
 0x29e   : > { %v2442_v41 = vmax.f32 %v2424_v14, 0.0  ;;  %3136 = vmatmul.bf16.gmra.mxu1 %v3047_v33  ;;  %v2003_v36 = vadd.f32 %v1971_v25, %v1844_v2  ;;  %v2176_v25 = vpop.f32.mrf.mxu0 }
 0x29f   : > { %v2004_v35 = vadd.f32 %v1974_v60, %v1847_v29 }
 0x2a0   : > { %v2460_v48 = vsel %vm7116_vm3, %v2442_v41, 0.0  ;;  %v4587_v19 = vpack.c.bf16 %v2442_v41, %v2441_v28  ;;  %v2203_v54 = vadd.f32 %v2171_v4, %v2003_v36  ;;  %vm7126_vm3 = vmmov %vm7121_vm9 }
 0x2a1   : > { %v2369_v53 = vpop.f32.mrf.mxu1  ;;  %v2582_v62 = vrot.slane %v2460_v48, 7  ;;  %v2502_v34 = vrot.slane %v2460_v48, 6  ;;  %v3004_v30 = vrot.slane %v2460_v48, 1  ;;  %v3200_v13 = vrot.slane %v2460_v48, 2 }
 0x2a2   : > { %v2402_v20 = vadd.f32 %v2369_v53, %v2202_v44  ;;  %4588 = vmatmul.msk.bf16.gmra.mxu0 %vm7117_vm10, %v4587_v19  ;;  %v2204_v48 = vadd.f32 %v2174_v38, %v2004_v35  ;;  %v1849_v19 = vadd.f32 %v1848_v37, %v6163_v7  ;;  %vm7127_vm10 = vnez %v6918_v56 }
 0x2a3   : > { %v2583_v57 = vsel %vm7118_vm14, %v2580_v51, %v2582_v62  ;;  %v2503_v11 = vsel %vm7119_vm6, %v2500_v5, %v2502_v34  ;;  %v3005_v6 = vsel %vm7120_vm15, %v3002_v1, %v3004_v30  ;;  %v6424_v17 = vsel %vm7121_vm9, %v3198_v58, %v3200_v13  ;;  %v1851_v33 = vpop.f32.mrf.mxu2  ;;  %vm7129_vm6 = vmmov %vm7124_vm11 }
 0x2a4   : > { %v2425_v28 = vadd.f32 %v6299_v21, %v2402_v20  ;;  %v2626_v61 = vpack.c.bf16 %v2583_v57, %v2581_v23  ;;  %v2546_v59 = vpack.c.bf16 %v2503_v11, %v2501_v18  ;;  %vm7128_vm14 = vnez %v6928_v27  ;;  %vm7130_vm15 = vmmov %vm7125_vm4 }
 0x2a5   : > { %vm7131_vm9 = vmmov %vm7123_vm8  ;;  %v2005_v37 = vadd.f32 %v1976_v22, %v1849_v19  ;;  %v1852_v29 = vadd.f32 %v1851_v33, %v6165_v42 }
 0x2a6   : > { %v2443_v52 = vmax.f32 %v2425_v28, 0.0  ;;  %2719 = vmatmul.bf16.gmra.mxu2 %v2626_v61  ;;  %2819 = vmatmul.bf16.gmra.mxu3 %v2546_v59  ;;  %v2179_v36 = vpop.f32.mrf.mxu0 }
 0x2a7   : > { %v2205_v27 = vadd.f32 %v2176_v25, %v2005_v37 }
 0x2a8   : > { %v2461_v5 = vsel %vm7122_vm2, %v2443_v52, 0.0  ;;  %vm7132_vm2 = vmmov %vm7126_vm3 }
 0x2a9   : > { %v2504_v51 = vrot.slane %v2461_v5, 6  ;;  %v2584_v1 = vrot.slane %v2461_v5, 7  ;;  %v3006_v39 = vrot.slane %v2461_v5, 1  ;;  %v3202_v58 = vrot.slane %v2461_v5, 2  ;;  %v2371_v26 = vpop.f32.mrf.mxu1 }
 0x2aa   : > { %v2403_v14 = vadd.f32 %v2371_v26, %v2203_v54 }
 0x2ab   : > { %v3007_v23 = vsel %vm7123_vm8, %v3004_v30, %v3006_v39  ;;  %v2585_v18 = vsel %vm7124_vm11, %v2582_v62, %v2584_v1  ;;  %v2505_v41 = vsel %vm7125_vm4, %v2502_v34, %v2504_v51  ;;  %v6434_v4 = vsel %vm7126_vm3, %v3200_v13, %v3202_v58  ;;  %v1979_v34 = vpop.f32.mrf.mxu3  ;;  %vm7134_vm11 = vmmov %vm7131_vm9 }
 0x2ac   : > { %v2426_v12 = vadd.f32 %v6299_v21, %v2403_v14  ;;  %v3048_v16 = vpack.c.bf16 %v3007_v23, %v3005_v6  ;;  %v3244_v44 = vpack.c.bf16 %v6434_v4, %v6424_v17  ;;  %vm7133_vm8 = vnez %v6920_v47  ;;  %vm7135_vm4 = vmmov %vm7129_vm6 }
 0x2ad   : > { %vm7136_vm3 = vmmov %vm7130_vm15  ;;  %v2006_v42 = vadd.f32 %v1979_v34, %v1852_v29 }
 0x2ae   : > { %v2444_v2 = vmax.f32 %v2426_v12, 0.0  ;;  %3141 = vmatmul.bf16.gmra.mxu1 %v3048_v16  ;;  %v2181_v12 = vpop.f32.mrf.mxu0 }
 0x2b0   : > { %v2462_v53 = vsel %vm7127_vm10, %v2444_v2, 0.0  ;;  %v4590_v62 = vpack.c.bf16 %v2444_v2, %v2443_v52  ;;  %v1853_v52 = vpop.f32.mrf.mxu2  ;;  %vm7137_vm10 = vmmov %vm7132_vm2 }
 0x2b1   : > { %v2374_v30 = vpop.f32.mrf.mxu1  ;;  %v2586_v13 = vrot.slane %v2462_v53, 7  ;;  %v2506_v20 = vrot.slane %v2462_v53, 6  ;;  %v3008_v60 = vrot.slane %v2462_v53, 1  ;;  %v3204_v57 = vrot.slane %v2462_v53, 2 }
 0x2b2   : > { %v2404_v11 = vadd.f32 %v2374_v30, %v2204_v48  ;;  %4591 = vmatmul.msk.bf16.gmra.mxu0 %vm7128_vm14, %v4590_v62  ;;  %v2206_v48 = vadd.f32 %v2179_v36, %v2006_v42  ;;  %v1854_v19 = vadd.f32 %v1853_v52, %v6186_v43  ;;  %vm7138_vm14 = vnez %v6930_v32 }
 0x2b3   : > { %v2587_v6 = vsel %vm7129_vm6, %v2584_v1, %v2586_v13  ;;  %v2507_v38 = vsel %vm7130_vm15, %v2504_v51, %v2506_v20  ;;  %v3009_v7 = vsel %vm7131_vm9, %v3006_v39, %v3008_v60  ;;  %v6448_v56 = vsel %vm7132_vm2, %v3202_v58, %v3204_v57  ;;  %v1981_v14 = vpop.f32.mrf.mxu3  ;;  %vm7139_vm6 = vmmov %vm7135_vm4 }
 0x2b4   : > { %v2427_v28 = vadd.f32 %v6299_v21, %v2404_v11  ;;  %v2627_v61 = vpack.c.bf16 %v2587_v6, %v2585_v18  ;;  %v2547_v59 = vpack.c.bf16 %v2507_v38, %v2505_v41  ;;  %vm7140_vm15 = vmmov %vm7136_vm3  ;;  %v2007_v32 = vadd.f32 %v1981_v14, %v1854_v19 }
 0x2b6   : > { %v2445_v54 = vmax.f32 %v2427_v28, 0.0  ;;  %2724 = vmatmul.bf16.gmra.mxu2 %v2627_v61  ;;  %2824 = vmatmul.bf16.gmra.mxu3 %v2547_v59  ;;  %v2207_v59 = vadd.f32 %v2181_v12, %v2007_v32  ;;  %v4860_v12 = vld [vmem:[%s6793_s4 + $0x3a8] sm:$0xff] }
 0x2b8   : > { %v2463_v5 = vsel %vm7133_vm8, %v2445_v54, 0.0  ;;  %v1856_v2 = vpop.f32.mrf.mxu2  ;;  %vm7142_vm8 = vmmov %vm7131_vm9 }
 0x2b9   : > { %v2508_v51 = vrot.slane %v2463_v5, 6  ;;  %v2588_v1 = vrot.slane %v2463_v5, 7  ;;  %v3010_v39 = vrot.slane %v2463_v5, 1  ;;  %v3206_v58 = vrot.slane %v2463_v5, 2  ;;  %v2376_v22 = vpop.f32.mrf.mxu1 }
 0x2ba   : > { %v2405_v26 = vadd.f32 %v2376_v22, %v2205_v27  ;;  %v1857_v52 = vadd.f32 %v1856_v2, %v6213_v50 }
 0x2bb   : > { %v3011_v23 = vsel %vm7134_vm11, %v3008_v60, %v3010_v39  ;;  %v2589_v18 = vsel %vm7135_vm4, %v2586_v13, %v2588_v1  ;;  %v2509_v41 = vsel %vm7136_vm3, %v2506_v20, %v2508_v51  ;;  %v6458_v25 = vsel %vm7137_vm10, %v3204_v57, %v3206_v58  ;;  %v1984_v28 = vpop.f32.mrf.mxu3  ;;  %vm7143_vm11 = vmmov %vm7135_vm4 }
 0x2bc   : > { %v2428_v47 = vadd.f32 %v6299_v21, %v2405_v26  ;;  %v3049_v33 = vpack.c.bf16 %v3011_v23, %v3009_v7  ;;  %v3245_v35 = vpack.c.bf16 %v6458_v25, %v6448_v56  ;;  %v4861_v26 = vld [vmem:[%s6793_s4 + $0x3b0] sm:$0xff]  ;;  %vm7144_vm4 = vmmov %vm7136_vm3  ;;  %vm7146_vm10 = vnez %v7046_v9 }
 0x2bd   : > { %vm7145_vm3 = vmmov %vm7132_vm2  ;;  %3316 = vmatpush.bf16.msrb.mxu2 %v4861_v26  ;;  %v4857_v26 = vld [vmem:[%s6793_s4 + $0x390] sm:$0xff] }
 0x2be   : > { %v2446_v16 = vmax.f32 %v2428_v47, 0.0  ;;  %3146 = vmatmul.bf16.gmra.mxu1 %v3049_v33 }
 0x2c0   : > { %v2464_v53 = vsel %vm7138_vm14, %v2446_v16, 0.0  ;;  %v4593_v62 = vpack.c.bf16 %v2446_v16, %v2445_v54  ;;  %v2184_v54 = vpop.f32.mrf.mxu0  ;;  %v1858_v29 = vpop.f32.mrf.mxu2  ;;  %vm7147_vm14 = vnez %v7048_v10 }
 0x2c1   : > { %v2379_v30 = vpop.f32.mrf.mxu1  ;;  %v2590_v13 = vrot.slane %v2464_v53, 7  ;;  %v2510_v34 = vrot.slane %v2464_v53, 6  ;;  %v3012_v20 = vrot.slane %v2464_v53, 1  ;;  %v3208_v60 = vrot.slane %v2464_v53, 2  ;;  %3317 = vmatpush.bf16.msrb.mxu2 %v4860_v12 }
 0x2c2   : > { %v2406_v57 = vadd.f32 %v2379_v30, %v2206_v48  ;;  %4594 = vmatmul.msk.bf16.gmra.mxu0 %vm7037_vm7, %v4593_v62  ;;  %vm7141_vm7 = vnez %v7042_v40  ;;  %v1859_v48 = vadd.f32 %v1858_v29, %v6242_v0 }
 0x2c3   : > { %v2591_v11 = vsel %vm7139_vm6, %v2588_v1, %v2590_v13  ;;  %v2511_v6 = vsel %vm7140_vm15, %v2508_v51, %v2510_v34  ;;  %v3013_v38 = vsel %vm7131_vm9, %v3010_v39, %v3012_v20  ;;  %v6472_v43 = vsel %vm7132_vm2, %v3206_v58, %v3208_v60  ;;  %v1986_v16 = vpop.f32.mrf.mxu3  ;;  %vm7148_vm15 = vmmov %vm7144_vm4 }
 0x2c4   : > { %v2429_v7 = vadd.f32 %v6299_v21, %v2406_v57  ;;  %v2628_v37 = vpack.c.bf16 %v2591_v11, %v2589_v18  ;;  %v2548_v36 = vpack.c.bf16 %v2511_v6, %v2509_v41  ;;  %v2008_v18 = vadd.f32 %v1984_v28, %v1857_v52  ;;  %v4859_v57 = vld [vmem:[%s6793_s4 + $0x3a0] sm:$0xff]  ;;  %vm7149_vm9 = vmmov %vm7142_vm8 }
 0x2c5   : > { %3318 = vmatpush.bf16.msrb.mxu2 %v4859_v57 }
 0x2c6   : > { %v2447_v61 = vmax.f32 %v2429_v7, 0.0  ;;  %2729 = vmatmul.bf16.gmra.mxu2 %v2628_v37  ;;  %2829 = vmatmul.bf16.gmra.mxu3 %v2548_v36  ;;  %v2208_v2 = vadd.f32 %v2184_v54, %v2008_v18  ;;  %v2009_v7 = vadd.f32 %v1986_v16, %v1859_v48  ;;  %v7151_v54 = vld [vmem:[#allocation12_spill] sm:$0xff] }
 0x2c8   : > { %v2465_v27 = vsel %vm7141_vm7, %v2447_v61, 0.0  ;;  %v2186_v11 = vpop.f32.mrf.mxu0  ;;  %v1861_v0 = vpop.f32.mrf.mxu2  ;;  %vm7152_vm7 = vnez %v7151_v54 }
 0x2c9   : > { %v2512_v5 = vrot.slane %v2465_v27, 6  ;;  %v2592_v51 = vrot.slane %v2465_v27, 7  ;;  %v3014_v1 = vrot.slane %v2465_v27, 1  ;;  %v3210_v39 = vrot.slane %v2465_v27, 2  ;;  %v2381_v58 = vpop.f32.mrf.mxu1 }
 0x2ca   : > { %v2407_v22 = vadd.f32 %v2381_v58, %v2207_v59  ;;  %v2209_v24 = vadd.f32 %v2186_v11, %v2009_v7  ;;  %v7150_v59 = vld [vmem:[#allocation10_spill] sm:$0xff]  ;;  %v4855_v7 = vld [vmem:[%s6793_s4 + $0x380] sm:$0xff] }
 0x2cb   : > { %v3015_v14 = vsel %vm7142_vm8, %v3012_v20, %v3014_v1  ;;  %v2593_v50 = vsel %vm7143_vm11, %v2590_v13, %v2592_v51  ;;  %v2513_v23 = vsel %vm7144_vm4, %v2510_v34, %v2512_v5  ;;  %v6488_v40 = vsel %vm7145_vm3, %v3208_v60, %v3210_v39  ;;  %v1989_v29 = vpop.f32.mrf.mxu3  ;;  %vm7153_vm11 = vmmov %vm7139_vm6 }
 0x2cc   : > { %v2430_v41 = vadd.f32 %v6299_v21, %v2407_v22  ;;  %v3050_v42 = vpack.c.bf16 %v3015_v14, %v3013_v38  ;;  %v3246_v47 = vpack.c.bf16 %v6488_v40, %v6472_v43  ;;  %v1862_v52 = vadd.f32 %v1861_v0, %v7150_v59  ;;  %vm7154_vm3 = vmmov %vm7132_vm2 }
 0x2ce   : > { %v2448_v33 = vmax.f32 %v2430_v41, 0.0  ;;  %3151 = vmatmul.bf16.gmra.mxu1 %v3050_v42  ;;  %v2010_v41 = vadd.f32 %v1989_v29, %v1862_v52 }
 0x2d0   : > { %v2466_v19 = vsel %vm7146_vm10, %v2448_v33, 0.0  ;;  %v4596_v53 = vpack.c.bf16 %v2448_v33, %v2447_v61  ;;  %v4858_v61 = vld [vmem:[%s6793_s4 + $0x398] sm:$0xff]  ;;  %v2189_v16 = vpop.f32.mrf.mxu0 }
 0x2d1   : > { %v2514_v62 = vrot.slane %v2466_v19, 6  ;;  %v2594_v30 = vrot.slane %v2466_v19, 7  ;;  %v3016_v13 = vrot.slane %v2466_v19, 1  ;;  %v3212_v34 = vrot.slane %v2466_v19, 2  ;;  %v2384_v20 = vpop.f32.mrf.mxu1  ;;  %3319 = vmatpush.bf16.msrb.mxu2 %v4858_v61  ;;  %v4856_v19 = vld [vmem:[%s6793_s4 + $0x388] sm:$0xff] }
 0x2d2   : > { %v2408_v60 = vadd.f32 %v2384_v20, %v2208_v2  ;;  %4597 = vmatmul.msk.bf16.gmra.mxu0 %vm7147_vm14, %v4596_v53  ;;  %v1863_v2 = vpop.f32.mrf.mxu2  ;;  %v2210_v53 = vadd.f32 %v2189_v16, %v2010_v41  ;;  %vm7159_vm14 = vmmov %vm7139_vm6 }
 0x2d3   : > { %v2595_v9 = vsel %vm7139_vm6, %v2592_v51, %v2594_v30  ;;  %v2515_v6 = vsel %vm7148_vm15, %v2512_v5, %v2514_v62  ;;  %v3017_v38 = vsel %vm7149_vm9, %v3014_v1, %v3016_v13  ;;  %v6508_v32 = vsel %vm7132_vm2, %v3210_v39, %v3212_v34  ;;  %vm7160_vm6 = vmmov %vm7144_vm4 }
 0x2d4   : > { %v2431_v37 = vadd.f32 %v6299_v21, %v2408_v60  ;;  %v2629_v10 = vpack.c.bf16 %v2595_v9, %v2593_v50  ;;  %v2549_v36 = vpack.c.bf16 %v2515_v6, %v2513_v23  ;;  %vm7161_vm15 = vmmov %vm7142_vm8 }
 0x2d5   : > { %3320 = vmatpush.bf16.msrb.mxu2 %v4857_v26  ;;  %vm7162_vm9 = vmmov %vm7132_vm2 }
 0x2d6   : > { %v2449_v28 = vmax.f32 %v2431_v37, 0.0  ;;  %2734 = vmatmul.bf16.gmra.mxu2 %v2629_v10  ;;  %2834 = vmatmul.bf16.gmra.mxu3 %v2549_v36  ;;  %v1991_v37 = vpop.f32.mrf.mxu3  ;;  %vm7165_vm2 = vmmov %vm7153_vm11 }
 0x2d8   : > { %v2467_v27 = vsel %vm7152_vm7, %v2449_v28, 0.0  ;;  %v2191_v29 = vpop.f32.mrf.mxu0  ;;  %vm7166_vm7 = vmmov %vm7144_vm4 }
 0x2d9   : > { %v2516_v5 = vrot.slane %v2467_v27, 6  ;;  %v2596_v51 = vrot.slane %v2467_v27, 7  ;;  %v3018_v1 = vrot.slane %v2467_v27, 1  ;;  %v3214_v39 = vrot.slane %v2467_v27, 2  ;;  %v2386_v58 = vpop.f32.mrf.mxu1  ;;  %3321 = vmatpush.bf16.msrb.mxu2 %v4856_v19 }
 0x2da   : > { %v2409_v22 = vadd.f32 %v2386_v58, %v2209_v24 }
 0x2db   : > { %v3019_v14 = vsel %vm7142_vm8, %v3016_v13, %v3018_v1  ;;  %v2597_v50 = vsel %vm7153_vm11, %v2594_v30, %v2596_v51  ;;  %v2517_v23 = vsel %vm7144_vm4, %v2514_v62, %v2516_v5  ;;  %v6524_v18 = vsel %vm7154_vm3, %v3212_v34, %v3214_v39  ;;  %v7155_v62 = vld [vmem:[#allocation9_spill] sm:$0xff]  ;;  %v7156_v13 = vld [vmem:[#allocation14_spill] sm:$0xff]  ;;  %vm7171_vm11 = vmmov %vm7165_vm2 }
 0x2dc   : > { %v2432_v42 = vadd.f32 %v6299_v21, %v2409_v22  ;;  %v3051_v33 = vpack.c.bf16 %v3019_v14, %v3017_v38  ;;  %v3247_v12 = vpack.c.bf16 %v6524_v18, %v6508_v32  ;;  %v1864_v30 = vadd.f32 %v1863_v2, %v7155_v62 }
 0x2dd   : > { %vm7157_vm10 = vnez %v7156_v13  ;;  %3322 = vmatpush.bf16.msrb.mxu2 %v4855_v7 }
 0x2de   : > { %v2450_v48 = vmax.f32 %v2432_v42, 0.0  ;;  %3156 = vmatmul.bf16.gmra.mxu1 %v3051_v33  ;;  %v2011_v24 = vadd.f32 %v1991_v37, %v1864_v30 }
 0x2e0   : > { %v2468_v34 = vsel %vm7157_vm10, %v2450_v48, 0.0  ;;  %v4599_v20 = vpack.c.bf16 %v2450_v48, %v2449_v28  ;;  %v2211_v58 = vadd.f32 %v2191_v29, %v2011_v24 }
 0x2e1   : > { %v2518_v60 = vrot.slane %v2468_v34, 6  ;;  %v2598_v57 = vrot.slane %v2468_v34, 7  ;;  %v3020_v11 = vrot.slane %v2468_v34, 1  ;;  %v3216_v0 = vrot.slane %v2468_v34, 2  ;;  %v2389_v9 = vpop.f32.mrf.mxu1 }
 0x2e2   : > { %v2410_v6 = vadd.f32 %v2389_v9, %v2210_v53  ;;  %4600 = vmatmul.msk.bf16.gmra.mxu0 %vm7057_vm0, %v4599_v20  ;;  %vm7164_vm0 = vmmov %vm7142_vm8 }
 0x2e3   : > { %v2599_v10 = vsel %vm7159_vm14, %v2596_v51, %v2598_v57  ;;  %v2519_v36 = vsel %vm7160_vm6, %v2516_v5, %v2518_v60  ;;  %v3021_v28 = vsel %vm7161_vm15, %v3018_v1, %v3020_v11  ;;  %v6544_v61 = vsel %vm7162_vm9, %v3214_v39, %v3216_v0  ;;  %vm7167_vm8 = vmmov %vm7154_vm3 }
 0x2e4   : > { %v2433_v59 = vadd.f32 %v6299_v21, %v2410_v6  ;;  %v2630_v52 = vpack.c.bf16 %v2599_v10, %v2597_v50  ;;  %v2550_v54 = vpack.c.bf16 %v2519_v36, %v2517_v23  ;;  %vm7172_vm3 = vmmov %vm7164_vm0 }
 0x2e5   : > { %vm7173_vm10 = vmmov %vm7167_vm8 }
 0x2e6   : > { %v2451_v27 = vmax.f32 %v2433_v59, 0.0  ;;  %2739 = vmatmul.bf16.gmra.mxu2 %v2630_v52  ;;  %2839 = vmatmul.bf16.gmra.mxu3 %v2550_v54 }
 0x2e8   : > { %v2469_v51 = vsel %vm5540_vm1, %v2451_v27, 0.0 }
 0x2e9   : > { %v2520_v5 = vrot.slane %v2469_v51, 6  ;;  %v2600_v26 = vrot.slane %v2469_v51, 7  ;;  %v3022_v1 = vrot.slane %v2469_v51, 1  ;;  %v3218_v14 = vrot.slane %v2469_v51, 2  ;;  %v2391_v39 = vpop.f32.mrf.mxu1 }
 0x2ea   : > { %v2411_v41 = vadd.f32 %v2391_v39, %v2211_v58 }
 0x2eb   : > { %v3023_v42 = vsel %vm7164_vm0, %v3020_v11, %v3022_v1  ;;  %v2601_v50 = vsel %vm7165_vm2, %v2598_v57, %v2600_v26  ;;  %v2521_v23 = vsel %vm7166_vm7, %v2518_v60, %v2520_v5  ;;  %v6553_v33 = vsel %vm7167_vm8, %v3216_v0, %v3218_v14  ;;  %v7169_v11 = vld [vmem:[#allocation18_spill] sm:$0xff] }
 0x2ec   : > { %v2434_v16 = vadd.f32 %v6299_v21, %v2411_v41  ;;  %v3052_v2 = vpack.c.bf16 %v3023_v42, %v3021_v28  ;;  %v3248_v48 = vpack.c.bf16 %v6553_v33, %v6544_v61  ;;  %vm7170_vm1 = vnez %v7169_v11  ;;  %v6632_v61 = vld [vmem:[%s6794_s5 + $0x2] ss:$0 sm:$0xff] }
 0x2ee   : > { %v2452_v19 = vmax.f32 %v2434_v16, 0.0  ;;  %3161 = vmatmul.bf16.gmra.mxu1 %v3052_v2 }
 0x2ef   : > { %v2932_v53 = vpop.f32.mrf.mxu0 }
 0x2f0   : > { %v2470_v30 = vsel %vm5597_vm13, %v2452_v19, 0.0  ;;  %v4602_v13 = vpack.c.bf16 %v2452_v19, %v2451_v27 }
 0x2f1   : > { %v2522_v34 = vrot.slane %v2470_v30, 6  ;;  %v2602_v20 = vrot.slane %v2470_v30, 7  ;;  %v3024_v57 = vrot.slane %v2470_v30, 1  ;;  %v3220_v60 = vrot.slane %v2470_v30, 2 }
 0x2f2   : > { %4603 = vmatmul.msk.bf16.gmra.mxu0 %vm7170_vm1, %v4602_v13 }
 0x2f3   : > { %v2603_v21 = vsel %vm7171_vm11, %v2600_v26, %v2602_v20  ;;  %v2523_v0 = vsel %vm7144_vm4, %v2520_v5, %v2522_v34  ;;  %v3025_v9 = vsel %vm7172_vm3, %v3022_v1, %v3024_v57  ;;  %v3221_v6 = vsel %vm7173_vm10, %v3218_v14, %v3220_v60 }
 0x2f4   : > { %v2631_v38 = vpack.c.bf16 %v2603_v21, %v2601_v50  ;;  %v2551_v7 = vpack.c.bf16 %v2523_v0, %v2521_v23  ;;  %v4653_v37 = vpack.c.bf16 %v3024_v57, %v3025_v9  ;;  %v6566_v10 = vpack.c.bf16 %v3220_v60, %v3221_v6 }
 0x2f6   : > { %2744 = vmatmul.bf16.gmra.mxu2 %v2631_v38  ;;  %2844 = vmatmul.bf16.gmra.mxu3 %v2551_v7 }
 0x2f7   : > { %v2933_v36 = vpop.f32.mrf.mxu0 }
 0x2f9   : > { %v2706_v28 = vpop.f32.mrf.mxu2  ;;  %v2806_v24 = vpop.f32.mrf.mxu3 }
 0x2fb   : > { %v3128_v59 = vpop.f32.mrf.mxu1 }
 0x2fe   : > { %4654 = vmatmul.msk.bf16.gmra.mxu1 %vm5630_vm12, %v4653_v37 }
 0x2ff   : > { %v2936_v54 = vpop.f32.mrf.mxu0 }
 0x301   : > { %v2707_v27 = vpop.f32.mrf.mxu2  ;;  %v2807_v29 = vpop.f32.mrf.mxu3 }
 0x302   : > { %v2808_v58 = vadd.f32 %v2807_v29, %v2707_v27 }
 0x303   : > { %v3129_v22 = vpop.f32.mrf.mxu1 }
 0x304   : > { %v2975_v51 = vadd.f32 %v2933_v36, %v2808_v58 }
 0x306   : > { %v6570_v5 = vadd.f32 %v3129_v22, %v2975_v51  ;;  %3323 = vmatmul.bf16.vlgmr.msrb.gmra.mxu2 %v3241_v3 }
 0x307   : > { %v2938_v26 = vpop.f32.mrf.mxu0 }
 0x309   : > { %v2710_v1 = vpop.f32.mrf.mxu2  ;;  %v2810_v14 = vpop.f32.mrf.mxu3 }
 0x30a   : > { %v2811_v39 = vadd.f32 %v2810_v14, %v2710_v1 }
 0x30b   : > { %v3132_v41 = vpop.f32.mrf.mxu1 }
 0x30c   : > { %v2976_v42 = vadd.f32 %v2936_v54, %v2811_v39 }
 0x30e   : > { %v6575_v50 = vadd.f32 %v3132_v41, %v2976_v42 }
 0x30f   : > { %v2941_v23 = vpop.f32.mrf.mxu0 }
 0x311   : > { %v2712_v16 = vpop.f32.mrf.mxu2  ;;  %v2812_v2 = vpop.f32.mrf.mxu3 }
 0x312   : > { %v2813_v19 = vadd.f32 %v2812_v2, %v2712_v16 }
 0x313   : > { %v3134_v53 = vpop.f32.mrf.mxu1 }
 0x314   : > { %v2977_v62 = vadd.f32 %v2938_v26, %v2813_v19 }
 0x316   : > { %v6577_v30 = vadd.f32 %v3134_v53, %v2977_v62  ;;  %3327 = vmatmul.bf16.gmra.mxu2 %v3242_v46 }
 0x317   : > { %v2943_v31 = vpop.f32.mrf.mxu0 }
 0x319   : > { %v2715_v15 = vpop.f32.mrf.mxu2  ;;  %v2815_v3 = vpop.f32.mrf.mxu3 }
 0x31a   : > { %v2816_v13 = vadd.f32 %v2815_v3, %v2715_v15 }
 0x31b   : > { %v3137_v34 = vpop.f32.mrf.mxu1 }
 0x31c   : > { %v2978_v20 = vadd.f32 %v2941_v23, %v2816_v13 }
 0x31e   : > { %v6582_v57 = vadd.f32 %v3137_v34, %v2978_v20 }
 0x31f   : > { %v2946_v60 = vpop.f32.mrf.mxu0 }
 0x321   : > { %v2717_v11 = vpop.f32.mrf.mxu2  ;;  %v2817_v21 = vpop.f32.mrf.mxu3 }
 0x322   : > { %v2818_v0 = vadd.f32 %v2817_v21, %v2717_v11 }
 0x323   : > { %v3139_v9 = vpop.f32.mrf.mxu1 }
 0x324   : > { %v2979_v6 = vadd.f32 %v2943_v31, %v2818_v0 }
 0x326   : > { %v6584_v38 = vadd.f32 %v3139_v9, %v2979_v6  ;;  %3332 = vmatmul.bf16.gmra.mxu2 %v3243_v55 }
 0x327   : > { %v2948_v49 = vpop.f32.mrf.mxu0 }
 0x329   : > { %v2720_v63 = vpop.f32.mrf.mxu2  ;;  %v2820_v46 = vpop.f32.mrf.mxu3 }
 0x32a   : > { %v2821_v7 = vadd.f32 %v2820_v46, %v2720_v63 }
 0x32b   : > { %v3142_v37 = vpop.f32.mrf.mxu1 }
 0x32c   : > { %v2980_v36 = vadd.f32 %v2946_v60, %v2821_v7 }
 0x32e   : > { %v6589_v28 = vadd.f32 %v3142_v37, %v2980_v36 }
 0x32f   : > { %v2951_v24 = vpop.f32.mrf.mxu0 }
 0x331   : > { %v2722_v59 = vpop.f32.mrf.mxu2  ;;  %v2822_v52 = vpop.f32.mrf.mxu3 }
 0x332   : > { %v2823_v54 = vadd.f32 %v2822_v52, %v2722_v59 }
 0x333   : > { %v3144_v27 = vpop.f32.mrf.mxu1 }
 0x334   : > { %v2981_v29 = vadd.f32 %v2948_v49, %v2823_v54 }
 0x336   : > { %v6591_v58 = vadd.f32 %v3144_v27, %v2981_v29  ;;  %3337 = vmatmul.bf16.gmra.mxu2 %v3244_v44 }
 0x337   : > { %v2953_v45 = vpop.f32.mrf.mxu0 }
 0x339   : > { %v2725_v8 = vpop.f32.mrf.mxu2  ;;  %v2825_v55 = vpop.f32.mrf.mxu3 }
 0x33a   : > { %v2826_v22 = vadd.f32 %v2825_v55, %v2725_v8 }
 0x33b   : > { %v3147_v51 = vpop.f32.mrf.mxu1 }
 0x33c   : > { %v2982_v26 = vadd.f32 %v2951_v24, %v2826_v22 }
 0x33e   : > { %v6596_v1 = vadd.f32 %v3147_v51, %v2982_v26 }
 0x33f   : > { %v2956_v14 = vpop.f32.mrf.mxu0 }
 0x341   : > { %v2727_v39 = vpop.f32.mrf.mxu2  ;;  %v2827_v41 = vpop.f32.mrf.mxu3 }
 0x342   : > { %v2828_v42 = vadd.f32 %v2827_v41, %v2727_v39 }
 0x343   : > { %v3149_v23 = vpop.f32.mrf.mxu1 }
 0x344   : > { %v2983_v16 = vadd.f32 %v2953_v45, %v2828_v42 }
 0x346   : > { %v6598_v2 = vadd.f32 %v3149_v23, %v2983_v16  ;;  %3342 = vmatmul.bf16.gmra.mxu2 %v3245_v35 }
 0x347   : > { %v2958_v17 = vpop.f32.mrf.mxu0 }
 0x349   : > { %v2730_v4 = vpop.f32.mrf.mxu2  ;;  %v2830_v44 = vpop.f32.mrf.mxu3 }
 0x34a   : > { %v2831_v19 = vadd.f32 %v2830_v44, %v2730_v4 }
 0x34b   : > { %v3152_v53 = vpop.f32.mrf.mxu1 }
 0x34c   : > { %v2984_v62 = vadd.f32 %v2956_v14, %v2831_v19 }
 0x34e   : > { %v6603_v31 = vadd.f32 %v3152_v53, %v2984_v62 }
 0x34f   : > { %v2961_v15 = vpop.f32.mrf.mxu0 }
 0x351   : > { %v2732_v3 = vpop.f32.mrf.mxu2  ;;  %v2832_v13 = vpop.f32.mrf.mxu3 }
 0x352   : > { %v2833_v34 = vadd.f32 %v2832_v13, %v2732_v3 }
 0x353   : > { %v3154_v20 = vpop.f32.mrf.mxu1 }
 0x354   : > { %v2985_v60 = vadd.f32 %v2958_v17, %v2833_v34 }
 0x356   : > { %v6605_v11 = vadd.f32 %v3154_v20, %v2985_v60  ;;  %3347 = vmatmul.bf16.gmra.mxu2 %v3246_v47 }
 0x357   : > { %v2963_v56 = vpop.f32.mrf.mxu0 }
 0x359   : > { %v2735_v25 = vpop.f32.mrf.mxu2  ;;  %v2835_v35 = vpop.f32.mrf.mxu3 }
 0x35a   : > { %v2836_v21 = vadd.f32 %v2835_v35, %v2735_v25 }
 0x35b   : > { %v3157_v0 = vpop.f32.mrf.mxu1 }
 0x35c   : > { %v2986_v9 = vadd.f32 %v2961_v15, %v2836_v21 }
 0x35e   : > { %v6610_v6 = vadd.f32 %v3157_v0, %v2986_v9 }
 0x35f   : > { %v2966_v49 = vpop.f32.mrf.mxu0 }
 0x361   : > { %v2737_v63 = vpop.f32.mrf.mxu2  ;;  %v2837_v46 = vpop.f32.mrf.mxu3 }
 0x362   : > { %v2838_v7 = vadd.f32 %v2837_v46, %v2737_v63 }
 0x363   : > { %v3159_v37 = vpop.f32.mrf.mxu1 }
 0x364   : > { %v2987_v36 = vadd.f32 %v2963_v56, %v2838_v7 }
 0x366   : > { %v6612_v24 = vadd.f32 %v3159_v37, %v2987_v36  ;;  %3352 = vmatmul.bf16.gmra.mxu2 %v3247_v12 }
 0x367   : > { %v2968_v43 = vpop.f32.mrf.mxu0 }
 0x369   : > { %v2740_v40 = vpop.f32.mrf.mxu2  ;;  %v2840_v47 = vpop.f32.mrf.mxu3 }
 0x36a   : > { %v2841_v59 = vadd.f32 %v2840_v47, %v2740_v40 }
 0x36b   : > { %v3162_v52 = vpop.f32.mrf.mxu1 }
 0x36c   : > { %v2988_v54 = vadd.f32 %v2966_v49, %v2841_v59 }
 0x36e   : > { %v6617_v27 = vadd.f32 %v3162_v52, %v2988_v54 }
 0x36f   : > { %v2971_v29 = vpop.f32.mrf.mxu0 }
 0x371   : > { %v2742_v45 = vpop.f32.mrf.mxu2  ;;  %v2842_v8 = vpop.f32.mrf.mxu3 }
 0x372   : > { %v2843_v55 = vadd.f32 %v2842_v8, %v2742_v45 }
 0x373   : > { %v3164_v22 = vpop.f32.mrf.mxu1 }
 0x374   : > { %v2989_v51 = vadd.f32 %v2968_v43, %v2843_v55 }
 0x376   : > { %v6619_v26 = vadd.f32 %v3164_v22, %v2989_v51  ;;  %3357 = vmatmul.bf16.gmra.mxu2 %v3248_v48 }
 0x377   : > { %v2973_v32 = vpop.f32.mrf.mxu0 }
 0x379   : > { %v2745_v18 = vpop.f32.mrf.mxu2  ;;  %v2845_v12 = vpop.f32.mrf.mxu3 }
 0x37a   : > { %v2846_v14 = vadd.f32 %v2845_v12, %v2745_v18 }
 0x37b   : > { %v3167_v39 = vpop.f32.mrf.mxu1 }
 0x37c   : > { %v2990_v41 = vadd.f32 %v2971_v29, %v2846_v14 }
 0x37e   : > { %v6624_v42 = vadd.f32 %v3167_v39, %v2990_v41 }
 0x381   : > { %v2747_v23 = vpop.f32.mrf.mxu2  ;;  %v2847_v16 = vpop.f32.mrf.mxu3 }
 0x383   : > { %v3169_v17 = vpop.f32.mrf.mxu1 }
 0x386   : > { %4705 = vmatmul.msk.bf16.gmra.mxu2 %vm5834_vm5, %v6566_v10 }
 0x389   : > { %v3324_v44 = vpop.f32.mrf.mxu2 }
 0x391   : > { %v3325_v33 = vpop.f32.mrf.mxu2 }
 0x392   : > { %v3367_v48 = vadd.f32 %v3325_v33, %v6570_v5 }
 0x394   : > { %v3388_v19 = vadd.f32 %v6632_v61, %v3367_v48 }
 0x396   : > { %v3404_v53 = vmax.f32 %v3388_v19, 0.0 }
 0x398   : > { %3436 = vxpose.xlu0.b32.start [1/16] %v3404_v53, 128 }
 0x399   : > { %v3328_v62 = vpop.f32.mrf.mxu2 }
 0x39a   : > { %v3368_v15 = vadd.f32 %v3328_v62, %v6575_v50 }
 0x39c   : > { %v3389_v3 = vadd.f32 %v6632_v61, %v3368_v15 }
 0x39e   : > { %v3405_v13 = vmax.f32 %v3389_v3, 0.0 }
 0x3a0   : > { %3437 = vxpose.xlu0.b32.cont [2/16] %v3405_v13, 128 }
 0x3a1   : > { %v3330_v10 = vpop.f32.mrf.mxu2 }
 0x3a2   : > { %v3369_v34 = vadd.f32 %v3330_v10, %v6577_v30 }
 0x3a4   : > { %v3390_v20 = vadd.f32 %v6632_v61, %v3369_v34 }
 0x3a6   : > { %v3406_v60 = vmax.f32 %v3390_v20, 0.0 }
 0x3a8   : > { %3438 = vxpose.xlu0.b32.cont [3/16] %v3406_v60, 128 }
 0x3a9   : > { %v3333_v56 = vpop.f32.mrf.mxu2 }
 0x3aa   : > { %v3370_v5 = vadd.f32 %v3333_v56, %v6582_v57 }
 0x3ac   : > { %v3391_v25 = vadd.f32 %v6632_v61, %v3370_v5 }
 0x3ae   : > { %v3407_v35 = vmax.f32 %v3391_v25, 0.0 }
 0x3b0   : > { %3439 = vxpose.xlu0.b32.cont [4/16] %v3407_v35, 128 }
 0x3b1   : > { %v3335_v21 = vpop.f32.mrf.mxu2 }
 0x3b2   : > { %v3371_v50 = vadd.f32 %v3335_v21, %v6584_v38 }
 0x3b4   : > { %v3392_v0 = vadd.f32 %v6632_v61, %v3371_v50 }
 0x3b6   : > { %v3408_v9 = vmax.f32 %v3392_v0, 0.0 }
 0x3b8   : > { %3440 = vxpose.xlu0.b32.cont [5/16] %v3408_v9, 128 }
 0x3b9   : > { %v3338_v49 = vpop.f32.mrf.mxu2 }
 0x3ba   : > { %v3372_v30 = vadd.f32 %v3338_v49, %v6589_v28 }
 0x3bc   : > { %v3393_v63 = vadd.f32 %v6632_v61, %v3372_v30 }
 0x3be   : > { %v3409_v46 = vmax.f32 %v3393_v63, 0.0 }
 0x3c0   : > { %3441 = vxpose.xlu0.b32.cont [6/16] %v3409_v46, 128 }
 0x3c1   : > { %v3340_v7 = vpop.f32.mrf.mxu2 }
 0x3c2   : > { %v3373_v57 = vadd.f32 %v3340_v7, %v6591_v58 }
 0x3c4   : > { %v3394_v37 = vadd.f32 %v6632_v61, %v3373_v57  ;;  %v4928_v57 = vmov 0  }
 0x3c5   : > { %4897 = vset.pattern.permute.xlu1 %v4928_v57  ;;  %4898 = vset.pattern.permute.xlu2 %v4928_v57 }
 0x3c6   : > { %v3410_v36 = vmax.f32 %v3394_v37, 0.0  ;;  %v3476_v37 = vld [vmem:[%s6796_s7] sm:$0xff] }
 0x3c7   : > { %3494 = vperm.xlu1 %4897, %v3476_v37  }
 0x3c8   : > { %3442 = vxpose.xlu0.b32.cont [7/16] %v3410_v36, 128  ;;  %v3477_v36 = vld [vmem:[%s6796_s7 + $0x8] sm:$0xff] }
 0x3c9   : > { %v3343_v43 = vpop.f32.mrf.mxu2 }
 0x3ca   : > { %v3374_v38 = vadd.f32 %v3343_v43, %v6596_v1  ;;  %v4863_v43 = vld [vmem:[%s6795_s6] sm:$0xff] }
 0x3cc   : > { %v3395_v40 = vadd.f32 %v6632_v61, %v3374_v38  ;;  %v3480_v38 = vld [vmem:[%s6796_s7 + $0x20] sm:$0xff] }
 0x3ce   : > { %v3411_v47 = vmax.f32 %v3395_v40, 0.0  ;;  %v4864_v40 = vld [vmem:[%s6795_s6 + $0x8] sm:$0xff] }
 0x3cf   : > { %3499 = vperm.xlu1 %4897, %v3477_v36  }
 0x3d0   : > { %3443 = vxpose.xlu0.b32.cont [8/16] %v3411_v47, 128  ;;  %v3478_v47 = vld [vmem:[%s6796_s7 + $0x10] sm:$0xff] }
 0x3d1   : > { %v3345_v59 = vpop.f32.mrf.mxu2  ;;  %3504 = vperm.xlu2 %4898, %v3478_v47  }
 0x3d2   : > { %v3375_v28 = vadd.f32 %v3345_v59, %v6598_v2  ;;  %v3482_v59 = vld [vmem:[%s6796_s7 + $0x30] sm:$0xff] }
 0x3d4   : > { %v3396_v52 = vadd.f32 %v6632_v61, %v3375_v28  ;;  %v3479_v28 = vld [vmem:[%s6796_s7 + $0x18] sm:$0xff] }
 0x3d6   : > { %v3412_v54 = vmax.f32 %v3396_v52, 0.0  ;;  %v3484_v52 = vld [vmem:[%s6796_s7 + $0x40] sm:$0xff] }
 0x3d7   : > { %3514 = vperm.xlu1 %4897, %v3480_v38  }
 0x3d8   : > { %3444 = vxpose.xlu0.b32.cont [9/16] %v3412_v54, 128  ;;  %v4865_v54 = vld [vmem:[%s6795_s6 + $0x10] sm:$0xff] }
 0x3d9   : > { %v3348_v29 = vpop.f32.mrf.mxu2  ;;  %3509 = vperm.xlu2 %4898, %v3479_v28  }
 0x3da   : > { %v3376_v58 = vadd.f32 %v3348_v29, %v6603_v31  ;;  %v3481_v29 = vld [vmem:[%s6796_s7 + $0x28] sm:$0xff] }
 0x3dc   : > { %v3397_v45 = vadd.f32 %v6632_v61, %v3376_v58  ;;  %v3486_v58 = vld [vmem:[%s6796_s7 + $0x50] sm:$0xff] }
 0x3de   : > { %v3413_v8 = vmax.f32 %v3397_v45, 0.0  ;;  %v3483_v45 = vld [vmem:[%s6796_s7 + $0x38] sm:$0xff] }
 0x3df   : > { %3524 = vperm.xlu1 %4897, %v3482_v59  }
 0x3e0   : > { %3445 = vxpose.xlu0.b32.cont [10/16] %v3413_v8, 128  ;;  %v3488_v8 = vld [vmem:[%s6796_s7 + $0x60] sm:$0xff] }
 0x3e1   : > { %v3350_v55 = vpop.f32.mrf.mxu2  ;;  %3519 = vperm.xlu2 %4898, %v3481_v29  }
 0x3e2   : > { %v3377_v1 = vadd.f32 %v3350_v55, %v6605_v11  ;;  %v4866_v55 = vld [vmem:[%s6795_s6 + $0x18] sm:$0xff] }
 0x3e4   : > { %v3398_v22 = vadd.f32 %v6632_v61, %v3377_v1  ;;  %v3485_v1 = vld [vmem:[%s6796_s7 + $0x48] sm:$0xff] }
 0x3e6   : > { %v3414_v51 = vmax.f32 %v3398_v22, 0.0  ;;  %v3490_v22 = vld [vmem:[%s6796_s7 + $0x70] sm:$0xff] }
 0x3e7   : > { %3534 = vperm.xlu1 %4897, %v3484_v52  }
 0x3e8   : > { %3446 = vxpose.xlu0.b32.cont [11/16] %v3414_v51, 128  ;;  %v3487_v51 = vld [vmem:[%s6796_s7 + $0x58] sm:$0xff] }
 0x3e9   : > { %v3353_v32 = vpop.f32.mrf.mxu2  ;;  %3529 = vperm.xlu2 %4898, %v3483_v45  }
 0x3ea   : > { %v3378_v2 = vadd.f32 %v3353_v32, %v6610_v6  ;;  %v4867_v32 = vld [vmem:[%s6795_s6 + $0x20] sm:$0xff] }
 0x3ec   : > { %v3399_v18 = vadd.f32 %v6632_v61, %v3378_v2  ;;  %v3489_v2 = vld [vmem:[%s6796_s7 + $0x68] sm:$0xff] }
 0x3ee   : > { %v3415_v12 = vmax.f32 %v3399_v18, 0.0  ;;  %v3491_v18 = vld [vmem:[%s6796_s7 + $0x78] sm:$0xff] }
 0x3ef   : > { %3544 = vperm.xlu1 %4897, %v3486_v58  }
 0x3f0   : > { %3447 = vxpose.xlu0.b32.cont [12/16] %v3415_v12, 128  ;;  %v4868_v12 = vld [vmem:[%s6795_s6 + $0x28] sm:$0xff] }
 0x3f1   : > { %v3355_v14 = vpop.f32.mrf.mxu2  ;;  %3539 = vperm.xlu2 %4898, %v3485_v1  }
 0x3f2   : > { %v3379_v31 = vadd.f32 %v3355_v14, %v6612_v24  ;;  %v4869_v14 = vld [vmem:[%s6795_s6 + $0x30] sm:$0xff] }
 0x3f4   : > { %v3400_v39 = vadd.f32 %v6632_v61, %v3379_v31  ;;  %v4870_v31 = vld [vmem:[%s6795_s6 + $0x38] sm:$0xff] }
 0x3f6   : > { %v3416_v41 = vmax.f32 %v3400_v39, 0.0 }
 0x3f7   : > { %3554 = vperm.xlu1 %4897, %v3488_v8  }
 0x3f8   : > { %3448 = vxpose.xlu0.b32.cont [13/16] %v3416_v41, 128 }
 0x3f9   : > { %v3358_v23 = vpop.f32.mrf.mxu2  ;;  %3549 = vperm.xlu2 %4898, %v3487_v51  }
 0x3fa   : > { %v3380_v11 = vadd.f32 %v3358_v23, %v6617_v27 }
 0x3fc   : > { %v3401_v16 = vadd.f32 %v6632_v61, %v3380_v11 }
 0x3fe   : > { %v3417_v17 = vmax.f32 %v3401_v16, 0.0 }
 0x3ff   : > { %3564 = vperm.xlu1 %4897, %v3490_v22  }
 0x400   : > { %3449 = vxpose.xlu0.b32.cont [14/16] %v3417_v17, 128 }
 0x401   : > { %v3360_v4 = vpop.f32.mrf.mxu2  ;;  %3559 = vperm.xlu2 %4898, %v3489_v2  }
 0x402   : > { %v3381_v6 = vadd.f32 %v3360_v4, %v6619_v26 }
 0x404   : > { %v3402_v44 = vadd.f32 %v6632_v61, %v3381_v6 }
 0x406   : > { %v3418_v33 = vmax.f32 %v3402_v44, 0.0 }
 0x408   : > { %3450 = vxpose.xlu0.b32.cont [15/16] %v3418_v33, 128 }
 0x409   : > { %v3363_v48 = vpop.f32.mrf.mxu2  ;;  %3569 = vperm.xlu2 %4898, %v3491_v18  }
 0x40a   : > { %v3382_v24 = vadd.f32 %v3363_v48, %v6624_v42 }
 0x40c   : > { %v3403_v19 = vadd.f32 %v6632_v61, %v3382_v24 }
 0x40e   : > { %v3419_v53 = vmax.f32 %v3403_v19, 0.0 }
 0x410   : > { %3451 = vxpose.xlu0.b32.end [16/16] %v3419_v53, 128 }
 0x411   : > { %v3365_v62 = vpop.f32.mrf.mxu2 }
 0x42b   : > { %v3505_v4 = vpop.permute.xlu2 %3504 }
 0x433   : > { %v3510_v48 = vpop.permute.xlu2 %3509 }
 0x439   : > { %v3495_v39 = vpop.permute.xlu1 %3494 }
 0x43c   : > { %v3452_v27 = vpop.trf.xlu0 }
 0x441   : > { %v3500_v11 = vpop.permute.xlu1 %3499 }
 0x444   : > { %v3453_v15 = vpop.trf.xlu0 }
 0x445   : > { %v3468_v3 = vpack.c.bf16 %v3453_v15, %v3452_v27  ;;  %v3520_v15 = vpop.permute.xlu2 %3519 }
 0x449   : > { %v3515_v53 = vpop.permute.xlu1 %3514 }
 0x44c   : > { %v3454_v13 = vpop.trf.xlu0 }
 0x454   : > { %v3455_v10 = vpop.trf.xlu0 }
 0x455   : > { %v3469_v34 = vpack.c.bf16 %v3455_v10, %v3454_v13  ;;  %v3525_v10 = vpop.permute.xlu1 %3524 }
 0x45c   : > { %v3456_v20 = vpop.trf.xlu0 }
 0x464   : > { %v3457_v26 = vpop.trf.xlu0 }
 0x465   : > { %v3470_v60 = vpack.c.bf16 %v3457_v26, %v3456_v20  ;;  %v3530_v26 = vpop.permute.xlu2 %3529 }
 0x46c   : > { %v3458_v56 = vpop.trf.xlu0 }
 0x474   : > { %v3459_v5 = vpop.trf.xlu0 }
 0x475   : > { %v3471_v25 = vpack.c.bf16 %v3459_v5, %v3458_v56  ;;  %v3535_v5 = vpop.permute.xlu1 %3534 }
 0x477   : > { %4899 = vset.pattern.permute.xlu0 %v4928_v57 }
 0x47c   : > { %v3460_v35 = vpop.trf.xlu0 }
 0x484   : > { %v3461_v21 = vpop.trf.xlu0 }
 0x485   : > { %v3472_v7 = vpack.c.bf16 %v3461_v21, %v3460_v35  ;;  %v3540_v21 = vpop.permute.xlu2 %3539 }
 0x48c   : > { %v3462_v42 = vpop.trf.xlu0 }
 0x494   : > { %v3463_v50 = vpop.trf.xlu0 }
 0x495   : > { %v3473_v46 = vpack.c.bf16 %v3463_v50, %v3462_v42 }
 0x49c   : > { %v3464_v61 = vpop.trf.xlu0 }
 0x4a4   : > { %v3465_v0 = vpop.trf.xlu0 }
 0x4a5   : > { %v3474_v63 = vpack.c.bf16 %v3465_v0, %v3464_v61  ;;  %v3545_v61 = vpop.permute.xlu1 %3544 }
 0x4ac   : > { %v3466_v9 = vpop.trf.xlu0 }
 0x4b4   : > { %v3467_v49 = vpop.trf.xlu0 }
 0x4b5   : > { %v3475_v30 = vpack.c.bf16 %v3467_v49, %v3466_v9  ;;  %v3550_v49 = vpop.permute.xlu2 %3549 }
 0x4b7   : > { %3620 = vmatpush.bf16.msrb.mxu3 %v3475_v30 }
 0x4bb   : > { %3621 = vmatpush.bf16.msrb.mxu3 %v3474_v63 }
 0x4bd   : > { %v3560_v37 = vpop.permute.xlu2 %3559 }
 0x4bf   : > { %3622 = vmatpush.bf16.msrb.mxu3 %v3473_v46  ;;  %v3555_v46 = vpop.permute.xlu1 %3554 }
 0x4c3   : > { %3623 = vmatpush.bf16.msrb.mxu3 %v3472_v7 }
 0x4c5   : > { %v3570_v47 = vpop.permute.xlu2 %3569 }
 0x4c7   : > { %3624 = vmatpush.bf16.msrb.mxu3 %v3471_v25  ;;  %v3565_v38 = vpop.permute.xlu1 %3564 }
 0x4cb   : > { %3625 = vmatpush.bf16.msrb.mxu3 %v3470_v60 }
 0x4cf   : > { %3626 = vmatpush.bf16.msrb.mxu3 %v3469_v34 }
 0x4d3   : > { %3627 = vmatpush.bf16.msrb.mxu3 %v3468_v3 }
 0x4d6   : > { %3628 = vmatmul.bf16.vlgmr.msrb.gmra.mxu3 %v4863_v43 }
 0x4e6   : > { %3633 = vmatmul.bf16.gmra.mxu3 %v4864_v40 }
 0x4f6   : > { %3638 = vmatmul.bf16.gmra.mxu3 %v4865_v54 }
 0x506   : > { %3643 = vmatmul.bf16.gmra.mxu3 %v4866_v55 }
 0x516   : > { %3648 = vmatmul.bf16.gmra.mxu3 %v4867_v32 }
 0x526   : > { %3653 = vmatmul.bf16.gmra.mxu3 %v4868_v12 }
 0x536   : > { %3658 = vmatmul.bf16.gmra.mxu3 %v4869_v14 }
 0x546   : > { %3663 = vmatmul.bf16.gmra.mxu3 %v4870_v31 }
 0x559   : > { %v3629_v41 = vpop.f32.mrf.mxu3 }
 0x55a   : > { %v3630_v23 = vadd.f32 %v3629_v41, %v3495_v39 }
 0x55c   : > { %3669 = vst [vmem:[%s6739_s9] sm:$0xff] %v3630_v23 }
 0x561   : > { %v3631_v16 = vpop.f32.mrf.mxu3 }
 0x562   : > { %v3632_v17 = vadd.f32 %v3631_v16, %v3500_v11 }
 0x563   : > { %v3752_v52 = vld [vmem:[%s6739_s9] sm:$0xff] (%p5002_p4) }
 0x564   : > { %3670 = vst [vmem:[%s6739_s9 + $0x8] sm:$0xff] %v3632_v17 }
 0x565   : > { %3753 = vst [vmem:[%s3693_s15] sm:$0xff] (%p5002_p4), %v3752_v52 }
 0x569   : > { %v3634_v6 = vpop.f32.mrf.mxu3 }
 0x56a   : > { %v3635_v44 = vadd.f32 %v3634_v6, %v3505_v4 }
 0x56b   : > { %v3754_v54 = vld [vmem:[%s6739_s9 + $0x8] sm:$0xff] (%p5002_p4) }
 0x56c   : > { %3671 = vst [vmem:[%s6739_s9 + $0x10] sm:$0xff] %v3635_v44 }
 0x56d   : > { %3755 = vst [vmem:[%s3693_s15 + $0x10] sm:$0xff] (%p5002_p4), %v3754_v54 }
 0x571   : > { %v3636_v33 = vpop.f32.mrf.mxu3 }
 0x572   : > { %v3637_v24 = vadd.f32 %v3636_v33, %v3510_v48 }
 0x573   : > { %v3756_v29 = vld [vmem:[%s6739_s9 + $0x10] sm:$0xff] (%p5002_p4) }
 0x574   : > { %3672 = vst [vmem:[%s6739_s9 + $0x18] sm:$0xff] %v3637_v24 }
 0x575   : > { %3757 = vst [vmem:[%s3693_s15 + $0x20] sm:$0xff] (%p5002_p4), %v3756_v29 }
 0x579   : > { %v3639_v19 = vpop.f32.mrf.mxu3 }
 0x57a   : > { %v3640_v62 = vadd.f32 %v3639_v19, %v3515_v53 }
 0x57b   : > { %v3758_v58 = vld [vmem:[%s6739_s9 + $0x18] sm:$0xff] (%p5002_p4) }
 0x57c   : > { %3673 = vst [vmem:[%s6739_s9 + $0x20] sm:$0xff] %v3640_v62 }
 0x57d   : > { %3759 = vst [vmem:[%s3693_s15 + $0x30] sm:$0xff] (%p5002_p4), %v3758_v58 }
 0x581   : > { %v3641_v27 = vpop.f32.mrf.mxu3 }
 0x582   : > { %v3642_v3 = vadd.f32 %v3641_v27, %v3520_v15 }
 0x583   : > { %v3760_v45 = vld [vmem:[%s6739_s9 + $0x20] sm:$0xff] (%p5002_p4) }
 0x584   : > { %3674 = vst [vmem:[%s6739_s9 + $0x28] sm:$0xff] %v3642_v3 }
 0x585   : > { %3761 = vst [vmem:[%s3693_s15 + $0x40] sm:$0xff] (%p5002_p4), %v3760_v45 }
 0x589   : > { %v3644_v13 = vpop.f32.mrf.mxu3 }
 0x58a   : > { %v3645_v34 = vadd.f32 %v3644_v13, %v3525_v10 }
 0x58b   : > { %v3762_v8 = vld [vmem:[%s6739_s9 + $0x28] sm:$0xff] (%p5002_p4) }
 0x58c   : > { %3675 = vst [vmem:[%s6739_s9 + $0x30] sm:$0xff] %v3645_v34 }
 0x58d   : > { %3763 = vst [vmem:[%s3693_s15 + $0x50] sm:$0xff] (%p5002_p4), %v3762_v8 }
 0x591   : > { %v3646_v20 = vpop.f32.mrf.mxu3 }
 0x592   : > { %v3647_v60 = vadd.f32 %v3646_v20, %v3530_v26 }
 0x593   : > { %v3764_v55 = vld [vmem:[%s6739_s9 + $0x30] sm:$0xff] (%p5002_p4) }
 0x594   : > { %3676 = vst [vmem:[%s6739_s9 + $0x38] sm:$0xff] %v3647_v60 }
 0x595   : > { %3765 = vst [vmem:[%s3693_s15 + $0x60] sm:$0xff] (%p5002_p4), %v3764_v55 }
 0x599   : > { %v3649_v56 = vpop.f32.mrf.mxu3 }
 0x59a   : > { %v3650_v25 = vadd.f32 %v3649_v56, %v3535_v5 }
 0x59b   : > { %v3766_v1 = vld [vmem:[%s6739_s9 + $0x38] sm:$0xff] (%p5002_p4) }
 0x59c   : > { %3677 = vst [vmem:[%s6739_s9 + $0x40] sm:$0xff] %v3650_v25 }
 0x59d   : > { %3767 = vst [vmem:[%s3693_s15 + $0x70] sm:$0xff] (%p5002_p4), %v3766_v1 }
 0x5a1   : > { %v3651_v35 = vpop.f32.mrf.mxu3 }
 0x5a2   : > { %v3652_v42 = vadd.f32 %v3651_v35, %v3540_v21 }
 0x5a3   : > { %v3768_v22 = vld [vmem:[%s6739_s9 + $0x40] sm:$0xff] (%p5002_p4) }
 0x5a4   : > { %3678 = vst [vmem:[%s6739_s9 + $0x48] sm:$0xff] %v3652_v42 }
 0x5a5   : > { %3769 = vst [vmem:[%s3693_s15 + $0x80] sm:$0xff] (%p5002_p4), %v3768_v22 }
 0x5a9   : > { %v3654_v50 = vpop.f32.mrf.mxu3 }
 0x5aa   : > { %v3655_v0 = vadd.f32 %v3654_v50, %v3545_v61 }
 0x5ab   : > { %v3770_v51 = vld [vmem:[%s6739_s9 + $0x48] sm:$0xff] (%p5002_p4) }
 0x5ac   : > { %3679 = vst [vmem:[%s6739_s9 + $0x50] sm:$0xff] %v3655_v0 }
 0x5ad   : > { %3771 = vst [vmem:[%s3693_s15 + $0x90] sm:$0xff] (%p5002_p4), %v3770_v51 }
 0x5b1   : > { %v3656_v9 = vpop.f32.mrf.mxu3 }
 0x5b2   : > { %v3657_v30 = vadd.f32 %v3656_v9, %v3550_v49 }
 0x5b3   : > { %v3772_v32 = vld [vmem:[%s6739_s9 + $0x50] sm:$0xff] (%p5002_p4) }
 0x5b4   : > { %3680 = vst [vmem:[%s6739_s9 + $0x58] sm:$0xff] %v3657_v30 }
 0x5b5   : > { %3773 = vst [vmem:[%s3693_s15 + $0xa0] sm:$0xff] (%p5002_p4), %v3772_v32 }
 0x5b9   : > { %v3659_v63 = vpop.f32.mrf.mxu3 }
 0x5ba   : > { %v3660_v7 = vadd.f32 %v3659_v63, %v3555_v46 }
 0x5bb   : > { %v3774_v2 = vld [vmem:[%s6739_s9 + $0x58] sm:$0xff] (%p5002_p4) }
 0x5bc   : > { %3681 = vst [vmem:[%s6739_s9 + $0x60] sm:$0xff] %v3660_v7 }
 0x5bd   : > { %3775 = vst [vmem:[%s3693_s15 + $0xb0] sm:$0xff] (%p5002_p4), %v3774_v2 }
 0x5c1   : > { %v3661_v57 = vpop.f32.mrf.mxu3 }
 0x5c2   : > { %v3662_v36 = vadd.f32 %v3661_v57, %v3560_v37 }
 0x5c3   : > { %v3776_v18 = vld [vmem:[%s6739_s9 + $0x60] sm:$0xff] (%p5002_p4) }
 0x5c4   : > { %3682 = vst [vmem:[%s6739_s9 + $0x68] sm:$0xff] %v3662_v36 }
 0x5c5   : > { %3777 = vst [vmem:[%s3693_s15 + $0xc0] sm:$0xff] (%p5002_p4), %v3776_v18 }
 0x5c9   : > { %v3664_v43 = vpop.f32.mrf.mxu3 }
 0x5ca   : > { %v3665_v40 = vadd.f32 %v3664_v43, %v3565_v38 }
 0x5cb   : > { %v3778_v12 = vld [vmem:[%s6739_s9 + $0x68] sm:$0xff] (%p5002_p4) }
 0x5cc   : > { %3683 = vst [vmem:[%s6739_s9 + $0x70] sm:$0xff] %v3665_v40 }
 0x5cd   : > { %3779 = vst [vmem:[%s3693_s15 + $0xd0] sm:$0xff] (%p5002_p4), %v3778_v12 }
 0x5d0   : > { %3691 = sbr.rel (!%p5002_p4) target bundleno = 1501 (0x5dd), region = 52 }
 0x5d1   : > { %v3666_v59 = vpop.f32.mrf.mxu3 }
 0x5d2   : > { %v3667_v28 = vadd.f32 %v3666_v59, %v3570_v47 }
 0x5d3   : > { %v3780_v14 = vld [vmem:[%s6739_s9 + $0x70] sm:$0xff] (%p5002_p4) }
 0x5d4   : > { %3684 = vst [vmem:[%s6739_s9 + $0x78] sm:$0xff] %v3667_v28 }
 0x5d5   : > { %3781 = vst [vmem:[%s3693_s15 + $0xe0] sm:$0xff] %v3780_v14 }
 0x5db   : > { %v3782_v31 = vld [vmem:[%s6739_s9 + $0x78] sm:$0xff] }
 0x5dc   : > { %3783 = vst [vmem:[%s3693_s15 + $0xf0] sm:$0xff] %v3782_v31 }
 0x5dd PF: > { %p16_p12 = scmp.ge.s32.totalorder %s4992_s10, 4   ;;  %s7176_s29 = smov %s4921_s30 }
 0x5de   : > { %s7177_s30 = smov %s5000_s13  ;;  %s7178_s9 = smov %s4992_s10 }
 0x5df   :  { %18 = sbr.rel (!%p16_p12) target bundleno = 4 (0x4), region = 138 }

</bundles_post_ra>
